<compile_context>
chip_gen: v7x
topology: tpu7x:2x2x1
jax: 0.10.0
libtpu: 0.0.40
codegen_flags: <defaults>
</compile_context>

<pallas_src>
import numpy as np
import jax
import jax.numpy as jnp
from jax import lax
from jax.experimental import pallas as pl
from jax.experimental.pallas import tpu as pltpu


# ------------------------------ fused kernel --------------------------------

def _fused_kernel(x_ref,
                  w1_ref, s1_ref, b1_ref,
                  w2_ref, s2_ref, b2_ref,
                  w3_ref, s3_ref, b3_ref,
                  w4t_ref, b4_ref, mt_ref,
                  o_ref,
                  p1, p2, p3, p4, h1, h2, y3s, h3s):
    """Whole SmallScaleModel forward for one batch element, fully VMEM-resident."""
    f32 = jnp.float32

    # ---------------- stage 1: conv1 3->32 (16x16) + BN + ReLU + pool -> 8x8 ----
    p1[...] = jnp.zeros(p1.shape, f32)                       # zero halo buffer
    p1[pl.ds(1, 16), pl.ds(8, 16), :] = x_ref[0]             # interior (aligned store)
    acc = jnp.zeros((256, 32), f32)
    for kh in range(3):
        for kw in range(3):
            patch = p1[pl.ds(kh, 16), pl.ds(7 + kw, 16), :]  # (16,16,3)
            acc = acc + jnp.dot(patch.reshape(256, 3), w1_ref[kh, kw],
                                preferred_element_type=f32)  # (256,32)
    y = jnp.maximum(acc * s1_ref[...] + b1_ref[...], 0.0)    # folded BN + ReLU
    yr = y.reshape(8, 2, 16, 32)                             # layout-preserving split
    h1[...] = jnp.maximum(yr[:, 0], yr[:, 1])                # H-direction pool (8,16,32)
    pooled = jnp.maximum(h1[:, pl.ds(0, 8, 2), :],
                         h1[:, pl.ds(1, 8, 2), :])           # W-direction pool (8,8,32)

    # ---------------- stage 2: conv2 32->64 (8x8) + BN + ReLU + pool -> 4x4 -----
    p2[...] = jnp.zeros(p2.shape, f32)
    p2[pl.ds(1, 8), pl.ds(8, 8), :] = pooled
    acc = jnp.zeros((64, 64), f32)
    for kh in range(3):
        for kw in range(3):
            patch = p2[pl.ds(kh, 8), pl.ds(7 + kw, 8), :]    # (8,8,32)
            acc = acc + jnp.dot(patch.reshape(64, 32), w2_ref[kh, kw],
                                preferred_element_type=f32)  # (64,64)
    y = jnp.maximum(acc * s2_ref[...] + b2_ref[...], 0.0)
    yr = y.reshape(4, 2, 8, 64)
    h2[...] = jnp.maximum(yr[:, 0], yr[:, 1])                # (4,8,64)
    pooled = jnp.maximum(h2[:, pl.ds(0, 4, 2), :],
                         h2[:, pl.ds(1, 4, 2), :])           # (4,4,64)

    # ---------------- stage 3: conv3 64->128 (4x4) + BN + ReLU + pool -> 2x2 ----
    # Spatial extent (4) is below the 8-sublane tile, so work per output row.
    p3[...] = jnp.zeros(p3.shape, f32)
    p3[pl.ds(1, 4), pl.ds(8, 4), :] = pooled
    for h in range(4):
        acc = jnp.zeros((4, 128), f32)
        for kh in range(3):
            for kw in range(3):
                acc = acc + jnp.dot(p3[h + kh, pl.ds(7 + kw, 4), :],   # (4,64)
                                    w3_ref[kh, kw],
                                    preferred_element_type=f32)        # (4,128)
        y3s[h] = jnp.maximum(acc * s3_ref[...] + b3_ref[...], 0.0)
    hp = jnp.maximum(y3s[pl.ds(0, 2, 2), :, :],
                     y3s[pl.ds(1, 2, 2), :, :])              # H pool (2,4,128)
    h3s[...] = hp
    pooled = jnp.maximum(h3s[:, pl.ds(0, 2, 2), :],
                         h3s[:, pl.ds(1, 2, 2), :])          # (2,2,128)

    # ---------------- stage 4: conv4 128->21 (2x2) + composed bilinear x8 -------
    # conv4 is computed channel-major via NT matmuls (contract over Cin of both
    # operands), then the single composed upsample matrix maps the 2x2 source grid
    # to the 16x16 output grid -> lane-dense (21, 256) result.
    p4[...] = jnp.zeros(p4.shape, f32)
    p4[pl.ds(1, 2), pl.ds(8, 2), :] = pooled
    out = jnp.zeros((21, 256), f32)
    for h in range(2):
        acc = jnp.zeros((21, 2), f32)
        for kh in range(3):
            for kw in range(3):
                patch = p4[h + kh, pl.ds(7 + kw, 2), :]      # (2,128)
                acc = acc + lax.dot_general(
                    w4t_ref[kh, kw], patch,
                    dimension_numbers=(((1,), (1,)), ((), ())),   # NT: contract Cin
                    preferred_element_type=f32)              # (21,2)
        rows_cm = acc + b4_ref[...]                          # + conv4 bias, (21,2)
        out = out + jnp.dot(rows_cm, mt_ref[h],              # (21,2) @ (2,256)
                            preferred_element_type=f32)
    o_ref[0] = out                                           # (21,256) lane-dense


# ------------------------------ host helpers --------------------------------

def _bilinear_matrix(n_in, n_out):
    """1-D bilinear interpolation matrix, align_corners=True (PyTorch semantics)."""
    A = np.zeros((n_out, n_in), dtype=np.float32)
    if n_out == 1 or n_in == 1:
        A[:, 0] = 1.0
        return A
    scale = (n_in - 1) / (n_out - 1)
    for i in range(n_out):
        src = i * scale
        i0 = min(int(np.floor(src)), n_in - 1)
        i1 = min(i0 + 1, n_in - 1)
        frac = src - i0
        A[i, i0] += 1.0 - frac
        A[i, i1] += frac
    return A


def _const_spec(shape):
    return pl.BlockSpec(shape, lambda *_: (0,) * len(shape))


def fused_forward(x_nhwc, params):
    """x_nhwc: (N, 16, 16, 3) -> (N, 21, 256) channel-major flattened output."""
    N, H, W, Cin = x_nhwc.shape
    assert (H, W, Cin) == (16, 16, 3), (H, W, Cin)

    # Compose the three exact bilinear x2 maps (2 -> 4 -> 8 -> 16) into one matrix.
    A = (_bilinear_matrix(8, 16) @ _bilinear_matrix(4, 8) @ _bilinear_matrix(2, 4))
    M = np.kron(A, A).astype(np.float32)                     # (256, 4)
    mt = jnp.asarray(np.stack([M[:, 0:2].T, M[:, 2:4].T]))   # (2, 2, 256)

    w4t = jnp.transpose(params['w4'], (0, 1, 3, 2))          # (3,3,21,128)
    b4 = params['bias4'].reshape(21, 1)
    s1, b1 = params['s1'].reshape(1, 32), params['b1'].reshape(1, 32)
    s2, b2 = params['s2'].reshape(1, 64), params['b2'].reshape(1, 64)
    s3, b3 = params['s3'].reshape(1, 128), params['b3'].reshape(1, 128)

    return pl.pallas_call(
        _fused_kernel,
        out_shape=jax.ShapeDtypeStruct((N, 21, 256), jnp.float32),
        grid_spec=pltpu.PrefetchScalarGridSpec(
            num_scalar_prefetch=0,
            grid=(N,),
            in_specs=[
                pl.BlockSpec((1, 16, 16, 3), lambda n: (n, 0, 0, 0)),
                _const_spec((3, 3, 3, 32)), _const_spec((1, 32)), _const_spec((1, 32)),
                _const_spec((3, 3, 32, 64)), _const_spec((1, 64)), _const_spec((1, 64)),
                _const_spec((3, 3, 64, 128)), _const_spec((1, 128)), _const_spec((1, 128)),
                _const_spec((3, 3, 21, 128)), _const_spec((21, 1)), _const_spec((2, 2, 256)),
            ],
            out_specs=pl.BlockSpec((1, 21, 256), lambda n: (n, 0, 0)),
            scratch_shapes=[
                pltpu.VMEM((18, 25, 3), jnp.float32),    # p1: padded conv1 input
                pltpu.VMEM((10, 17, 32), jnp.float32),   # p2: padded conv2 input
                pltpu.VMEM((6, 13, 64), jnp.float32),    # p3: padded conv3 input
                pltpu.VMEM((4, 11, 128), jnp.float32),   # p4: padded conv4 input
                pltpu.VMEM((8, 16, 32), jnp.float32),    # h1: conv1 H-pooled
                pltpu.VMEM((4, 8, 64), jnp.float32),     # h2: conv2 H-pooled
                pltpu.VMEM((4, 4, 128), jnp.float32),    # y3s: conv3 rows
                pltpu.VMEM((2, 4, 128), jnp.float32),    # h3s: conv3 H-pooled
            ],
        ),
        compiler_params=pltpu.CompilerParams(dimension_semantics=("parallel",)),
    )(x_nhwc,
      params['w1'], s1, b1,
      params['w2'], s2, b2,
      params['w3'], s3, b3,
      w4t, b4, mt)


def small_scale_model(x_nchw, params):
    """Forward pass of SmallScaleModel. Input/output in NCHW like the PyTorch module."""
    N = x_nchw.shape[0]
    x = jnp.transpose(x_nchw, (0, 2, 3, 1)).astype(jnp.float32)  # tiny NCHW->NHWC glue
    out = fused_forward(x, params)                               # (N, 21, 256)
    return out.reshape(N, 21, 16, 16)                            # free reshape -> NCHW


# --------------------------- parameters & reference -------------------------

def init_params(key):
    ks = jax.random.split(key, 8)
    eps = 1e-5
    params = {}
    chans = [(3, 32), (32, 64), (64, 128)]
    for i, (cin, cout) in enumerate(chans, start=1):
        w = 0.1 * jax.random.normal(ks[2 * (i - 1)], (3, 3, cin, cout), jnp.float32)
        b = 0.1 * jax.random.normal(ks[2 * (i - 1) + 1], (cout,), jnp.float32)
        gamma = jnp.ones((cout,), jnp.float32)
        beta = jnp.zeros((cout,), jnp.float32)
        mean = jnp.zeros((cout,), jnp.float32)
        var = jnp.ones((cout,), jnp.float32)
        scale = gamma / jnp.sqrt(var + eps)
        bias = beta + (b - mean) * scale          # conv bias folded through BN
        params[f'w{i}'], params[f's{i}'], params[f'b{i}'] = w, scale, bias
    params['w4'] = 0.1 * jax.random.normal(ks[6], (3, 3, 128, 21), jnp.float32)
    params['bias4'] = 0.1 * jax.random.normal(ks[7], (21,), jnp.float32)
    return params


def ref_forward(x_nchw, params):
    """Pure-JAX reference with identical semantics (numeric sanity check)."""
    x = jnp.transpose(x_nchw, (0, 2, 3, 1)).astype(jnp.float32)

    def conv3x3(x, w):
        N, H, W, cin = x.shape
        xp = jnp.pad(x, ((0, 0), (1, 1), (1, 1), (0, 0)))
        acc = jnp.zeros((N, H, W, w.shape[3]), jnp.float32)
        for kh in range(3):
            for kw in range(3):
                acc = acc + jnp.einsum('nhwc,co->nhwo',
                                       xp[:, kh:kh + H, kw:kw + W, :], w[kh, kw],
                                       precision=jax.lax.Precision.HIGHEST)
        return acc

    def pool2(x):
        N, H, W, C = x.shape
        return x.reshape(N, H // 2, 2, W // 2, 2, C).max(axis=(2, 4))

    def block(x, w, s, b):
        return pool2(jnp.maximum(conv3x3(x, w) * s + b, 0.0))

    x = block(x, params['w1'], params['s1'], params['b1'])
    x = block(x, params['w2'], params['s2'], params['b2'])
    x = block(x, params['w3'], params['s3'], params['b3'])
    x = conv3x3(x, params['w4']) + params['bias4']
    for _ in range(3):
        N, H, W, C = x.shape
        Ah = jnp.asarray(_bilinear_matrix(H, 2 * H))
        Aw = jnp.asarray(_bilinear_matrix(W, 2 * W))
        x = jnp.einsum('ph,qw,nhwc->npqc', Ah, Aw, x,
                       precision=jax.lax.Precision.HIGHEST)
    return jnp.transpose(x, (0, 3, 1, 2))


# --------------------------------- main --------------------------------------

if __name__ == "__main__":
    key = jax.random.PRNGKey(0)
    k_params, k_x = jax.random.split(key)
    params = init_params(k_params)

    # PyTorch-convention input: NCHW, 3 input channels, 16x16 spatial, batch 2.
    x = jax.random.normal(k_x, (2, 3, 16, 16), jnp.float32)

    fwd = jax.jit(small_scale_model)
    out = jax.block_until_ready(fwd(x, params))

    assert out.shape == (2, 21, 16, 16), out.shape
    assert bool(jnp.all(jnp.isfinite(out)))

    ref = ref_forward(x, params)
    max_err = float(jnp.max(jnp.abs(out - ref)))
    denom = max(1.0, float(jnp.max(jnp.abs(ref))))
    assert max_err / denom < 2e-2, f"mismatch: max_err={max_err}, ref_scale={denom}"

    print("KERNEL_OK")
</pallas_src>

<mosaic_0001>
module attributes {stable_mosaic.version = 11 : i64} {
  func.func @_fused_kernel(%arg0: i32, %arg1: memref<1x16x16x3xf32, #tpu.memory_space<vmem>>, %arg2: memref<3x3x3x32xf32, #tpu.memory_space<vmem>>, %arg3: memref<1x32xf32, #tpu.memory_space<vmem>>, %arg4: memref<1x32xf32, #tpu.memory_space<vmem>>, %arg5: memref<3x3x32x64xf32, #tpu.memory_space<vmem>>, %arg6: memref<1x64xf32, #tpu.memory_space<vmem>>, %arg7: memref<1x64xf32, #tpu.memory_space<vmem>>, %arg8: memref<3x3x64x128xf32, #tpu.memory_space<vmem>>, %arg9: memref<1x128xf32, #tpu.memory_space<vmem>>, %arg10: memref<1x128xf32, #tpu.memory_space<vmem>>, %arg11: memref<3x3x21x128xf32, #tpu.memory_space<vmem>>, %arg12: memref<21x1xf32, #tpu.memory_space<vmem>>, %arg13: memref<2x2x256xf32, #tpu.memory_space<vmem>>, %arg14: memref<1x21x256xf32, #tpu.memory_space<vmem>>, %arg15: memref<18x25x3xf32, #tpu.memory_space<vmem>>, %arg16: memref<10x17x32xf32, #tpu.memory_space<vmem>>, %arg17: memref<6x13x64xf32, #tpu.memory_space<vmem>>, %arg18: memref<4x11x128xf32, #tpu.memory_space<vmem>>, %arg19: memref<8x16x32xf32, #tpu.memory_space<vmem>>, %arg20: memref<4x8x64xf32, #tpu.memory_space<vmem>>, %arg21: memref<4x4x128xf32, #tpu.memory_space<vmem>>, %arg22: memref<2x4x128xf32, #tpu.memory_space<vmem>>) attributes {dimension_semantics = [#tpu.dimension_semantics<parallel>], iteration_bounds = array<i64: 2>, scalar_prefetch = 0 : i64, scratch_operands = 8 : i64, tpu.core_type = #tpu.core_type<tc>, window_params = [{transform_indices = @transform_0, window_bounds = array<i64: 1, 16, 16, 3>}, {pipeline_mode = #tpu.pipeline_mode<synchronous>, transform_indices = @transform_1, window_bounds = array<i64: 3, 3, 3, 32>}, {pipeline_mode = #tpu.pipeline_mode<synchronous>, transform_indices = @transform_2, window_bounds = array<i64: 1, 32>}, {pipeline_mode = #tpu.pipeline_mode<synchronous>, transform_indices = @transform_3, window_bounds = array<i64: 1, 32>}, {pipeline_mode = #tpu.pipeline_mode<synchronous>, transform_indices = @transform_4, window_bounds = array<i64: 3, 3, 32, 64>}, {pipeline_mode = #tpu.pipeline_mode<synchronous>, transform_indices = @transform_5, window_bounds = array<i64: 1, 64>}, {pipeline_mode = #tpu.pipeline_mode<synchronous>, transform_indices = @transform_6, window_bounds = array<i64: 1, 64>}, {pipeline_mode = #tpu.pipeline_mode<synchronous>, transform_indices = @transform_7, window_bounds = array<i64: 3, 3, 64, 128>}, {pipeline_mode = #tpu.pipeline_mode<synchronous>, transform_indices = @transform_8, window_bounds = array<i64: 1, 128>}, {pipeline_mode = #tpu.pipeline_mode<synchronous>, transform_indices = @transform_9, window_bounds = array<i64: 1, 128>}, {pipeline_mode = #tpu.pipeline_mode<synchronous>, transform_indices = @transform_10, window_bounds = array<i64: 3, 3, 21, 128>}, {pipeline_mode = #tpu.pipeline_mode<synchronous>, transform_indices = @transform_11, window_bounds = array<i64: 21, 1>}, {pipeline_mode = #tpu.pipeline_mode<synchronous>, transform_indices = @transform_12, window_bounds = array<i64: 2, 2, 256>}, {transform_indices = @transform_13, window_bounds = array<i64: 1, 21, 256>}]} {
    %cst = arith.constant 0.000000e+00 : f32
    %0 = vector.broadcast %cst : f32 to vector<18x25x3xf32>
    %c0 = arith.constant 0 : index
    %c0_0 = arith.constant 0 : index
    %c0_1 = arith.constant 0 : index
    %1 = vector.load %arg15[%c0, %c0_0, %c0_1] : memref<18x25x3xf32, #tpu.memory_space<vmem>>, vector<18x25x3xf32>
    tpu.vector_store %arg15[%c0, %c0_0, %c0_1], %0 {strides = array<i32>} : memref<18x25x3xf32, #tpu.memory_space<vmem>>, vector<18x25x3xf32>,
    %c0_2 = arith.constant 0 : index
    %c0_3 = arith.constant 0 : index
    %c0_4 = arith.constant 0 : index
    %c0_5 = arith.constant 0 : index
    %2 = vector.load %arg1[%c0_2, %c0_3, %c0_4, %c0_5] : memref<1x16x16x3xf32, #tpu.memory_space<vmem>>, vector<1x16x16x3xf32>
    %3 = vector.shape_cast %2 : vector<1x16x16x3xf32> to vector<16x16x3xf32>
    %c1 = arith.constant 1 : index
    %c8 = arith.constant 8 : index
    %c0_6 = arith.constant 0 : index
    %4 = vector.load %arg15[%c1, %c8, %c0_6] : memref<18x25x3xf32, #tpu.memory_space<vmem>>, vector<16x16x3xf32>
    tpu.vector_store %arg15[%c1, %c8, %c0_6], %3 {strides = array<i32>} : memref<18x25x3xf32, #tpu.memory_space<vmem>>, vector<16x16x3xf32>,
    %cst_7 = arith.constant 0.000000e+00 : f32
    %5 = vector.broadcast %cst_7 : f32 to vector<256x32xf32>
    %c0_8 = arith.constant 0 : index
    %c7 = arith.constant 7 : index
    %c0_9 = arith.constant 0 : index
    %6 = vector.load %arg15[%c0_8, %c7, %c0_9] : memref<18x25x3xf32, #tpu.memory_space<vmem>>, vector<16x16x3xf32>
    %7 = vector.shape_cast %6 : vector<16x16x3xf32> to vector<256x3xf32>
    %c0_10 = arith.constant 0 : index
    %c0_11 = arith.constant 0 : index
    %c0_12 = arith.constant 0 : index
    %c0_13 = arith.constant 0 : index
    %8 = vector.load %arg2[%c0_10, %c0_11, %c0_12, %c0_13] : memref<3x3x3x32xf32, #tpu.memory_space<vmem>>, vector<1x1x3x32xf32>
    %9 = vector.shape_cast %8 : vector<1x1x3x32xf32> to vector<3x32xf32>
    %cst_14 = arith.constant dense<0.000000e+00> : vector<256x32xf32>
    %10 = tpu.matmul %7, %9, %cst_14 {dimension_numbers = #tpu.dot_dimension_numbers<[1], [0], [0], [1], [0, 0, 1, 1], [], []>} : vector<256x3xf32>, vector<3x32xf32>, vector<256x32xf32> -> vector<256x32xf32>
    %11 = arith.addf %5, %10 : vector<256x32xf32>
    %c0_15 = arith.constant 0 : index
    %c8_16 = arith.constant 8 : index
    %c0_17 = arith.constant 0 : index
    %12 = vector.load %arg15[%c0_15, %c8_16, %c0_17] : memref<18x25x3xf32, #tpu.memory_space<vmem>>, vector<16x16x3xf32>
    %13 = vector.shape_cast %12 : vector<16x16x3xf32> to vector<256x3xf32>
    %c0_18 = arith.constant 0 : index
    %c1_19 = arith.constant 1 : index
    %c0_20 = arith.constant 0 : index
    %c0_21 = arith.constant 0 : index
    %14 = vector.load %arg2[%c0_18, %c1_19, %c0_20, %c0_21] : memref<3x3x3x32xf32, #tpu.memory_space<vmem>>, vector<1x1x3x32xf32>
    %15 = vector.shape_cast %14 : vector<1x1x3x32xf32> to vector<3x32xf32>
    %cst_22 = arith.constant dense<0.000000e+00> : vector<256x32xf32>
    %16 = tpu.matmul %13, %15, %cst_22 {dimension_numbers = #tpu.dot_dimension_numbers<[1], [0], [0], [1], [0, 0, 1, 1], [], []>} : vector<256x3xf32>, vector<3x32xf32>, vector<256x32xf32> -> vector<256x32xf32>
    %17 = arith.addf %11, %16 : vector<256x32xf32>
    %c0_23 = arith.constant 0 : index
    %c9 = arith.constant 9 : index
    %c0_24 = arith.constant 0 : index
    %18 = vector.load %arg15[%c0_23, %c9, %c0_24] : memref<18x25x3xf32, #tpu.memory_space<vmem>>, vector<16x16x3xf32>
    %19 = vector.shape_cast %18 : vector<16x16x3xf32> to vector<256x3xf32>
    %c0_25 = arith.constant 0 : index
    %c2 = arith.constant 2 : index
    %c0_26 = arith.constant 0 : index
    %c0_27 = arith.constant 0 : index
    %20 = vector.load %arg2[%c0_25, %c2, %c0_26, %c0_27] : memref<3x3x3x32xf32, #tpu.memory_space<vmem>>, vector<1x1x3x32xf32>
    %21 = vector.shape_cast %20 : vector<1x1x3x32xf32> to vector<3x32xf32>
    %cst_28 = arith.constant dense<0.000000e+00> : vector<256x32xf32>
    %22 = tpu.matmul %19, %21, %cst_28 {dimension_numbers = #tpu.dot_dimension_numbers<[1], [0], [0], [1], [0, 0, 1, 1], [], []>} : vector<256x3xf32>, vector<3x32xf32>, vector<256x32xf32> -> vector<256x32xf32>
    %23 = arith.addf %17, %22 : vector<256x32xf32>
    %c1_29 = arith.constant 1 : index
    %c7_30 = arith.constant 7 : index
    %c0_31 = arith.constant 0 : index
    %24 = vector.load %arg15[%c1_29, %c7_30, %c0_31] : memref<18x25x3xf32, #tpu.memory_space<vmem>>, vector<16x16x3xf32>
    %25 = vector.shape_cast %24 : vector<16x16x3xf32> to vector<256x3xf32>
    %c1_32 = arith.constant 1 : index
    %c0_33 = arith.constant 0 : index
    %c0_34 = arith.constant 0 : index
    %c0_35 = arith.constant 0 : index
    %26 = vector.load %arg2[%c1_32, %c0_33, %c0_34, %c0_35] : memref<3x3x3x32xf32, #tpu.memory_space<vmem>>, vector<1x1x3x32xf32>
    %27 = vector.shape_cast %26 : vector<1x1x3x32xf32> to vector<3x32xf32>
    %cst_36 = arith.constant dense<0.000000e+00> : vector<256x32xf32>
    %28 = tpu.matmul %25, %27, %cst_36 {dimension_numbers = #tpu.dot_dimension_numbers<[1], [0], [0], [1], [0, 0, 1, 1], [], []>} : vector<256x3xf32>, vector<3x32xf32>, vector<256x32xf32> -> vector<256x32xf32>
    %29 = arith.addf %23, %28 : vector<256x32xf32>
    %c1_37 = arith.constant 1 : index
    %c8_38 = arith.constant 8 : index
    %c0_39 = arith.constant 0 : index
    %30 = vector.load %arg15[%c1_37, %c8_38, %c0_39] : memref<18x25x3xf32, #tpu.memory_space<vmem>>, vector<16x16x3xf32>
    %31 = vector.shape_cast %30 : vector<16x16x3xf32> to vector<256x3xf32>
    %c1_40 = arith.constant 1 : index
    %c1_41 = arith.constant 1 : index
    %c0_42 = arith.constant 0 : index
    %c0_43 = arith.constant 0 : index
    %32 = vector.load %arg2[%c1_40, %c1_41, %c0_42, %c0_43] : memref<3x3x3x32xf32, #tpu.memory_space<vmem>>, vector<1x1x3x32xf32>
    %33 = vector.shape_cast %32 : vector<1x1x3x32xf32> to vector<3x32xf32>
    %cst_44 = arith.constant dense<0.000000e+00> : vector<256x32xf32>
    %34 = tpu.matmul %31, %33, %cst_44 {dimension_numbers = #tpu.dot_dimension_numbers<[1], [0], [0], [1], [0, 0, 1, 1], [], []>} : vector<256x3xf32>, vector<3x32xf32>, vector<256x32xf32> -> vector<256x32xf32>
    %35 = arith.addf %29, %34 : vector<256x32xf32>
    %c1_45 = arith.constant 1 : index
    %c9_46 = arith.constant 9 : index
    %c0_47 = arith.constant 0 : index
    %36 = vector.load %arg15[%c1_45, %c9_46, %c0_47] : memref<18x25x3xf32, #tpu.memory_space<vmem>>, vector<16x16x3xf32>
    %37 = vector.shape_cast %36 : vector<16x16x3xf32> to vector<256x3xf32>
    %c1_48 = arith.constant 1 : index
    %c2_49 = arith.constant 2 : index
    %c0_50 = arith.constant 0 : index
    %c0_51 = arith.constant 0 : index
    %38 = vector.load %arg2[%c1_48, %c2_49, %c0_50, %c0_51] : memref<3x3x3x32xf32, #tpu.memory_space<vmem>>, vector<1x1x3x32xf32>
    %39 = vector.shape_cast %38 : vector<1x1x3x32xf32> to vector<3x32xf32>
    %cst_52 = arith.constant dense<0.000000e+00> : vector<256x32xf32>
    %40 = tpu.matmul %37, %39, %cst_52 {dimension_numbers = #tpu.dot_dimension_numbers<[1], [0], [0], [1], [0, 0, 1, 1], [], []>} : vector<256x3xf32>, vector<3x32xf32>, vector<256x32xf32> -> vector<256x32xf32>
    %41 = arith.addf %35, %40 : vector<256x32xf32>
    %c2_53 = arith.constant 2 : index
    %c7_54 = arith.constant 7 : index
    %c0_55 = arith.constant 0 : index
    %42 = vector.load %arg15[%c2_53, %c7_54, %c0_55] : memref<18x25x3xf32, #tpu.memory_space<vmem>>, vector<16x16x3xf32>
    %43 = vector.shape_cast %42 : vector<16x16x3xf32> to vector<256x3xf32>
    %c2_56 = arith.constant 2 : index
    %c0_57 = arith.constant 0 : index
    %c0_58 = arith.constant 0 : index
    %c0_59 = arith.constant 0 : index
    %44 = vector.load %arg2[%c2_56, %c0_57, %c0_58, %c0_59] : memref<3x3x3x32xf32, #tpu.memory_space<vmem>>, vector<1x1x3x32xf32>
    %45 = vector.shape_cast %44 : vector<1x1x3x32xf32> to vector<3x32xf32>
    %cst_60 = arith.constant dense<0.000000e+00> : vector<256x32xf32>
    %46 = tpu.matmul %43, %45, %cst_60 {dimension_numbers = #tpu.dot_dimension_numbers<[1], [0], [0], [1], [0, 0, 1, 1], [], []>} : vector<256x3xf32>, vector<3x32xf32>, vector<256x32xf32> -> vector<256x32xf32>
    %47 = arith.addf %41, %46 : vector<256x32xf32>
    %c2_61 = arith.constant 2 : index
    %c8_62 = arith.constant 8 : index
    %c0_63 = arith.constant 0 : index
    %48 = vector.load %arg15[%c2_61, %c8_62, %c0_63] : memref<18x25x3xf32, #tpu.memory_space<vmem>>, vector<16x16x3xf32>
    %49 = vector.shape_cast %48 : vector<16x16x3xf32> to vector<256x3xf32>
    %c2_64 = arith.constant 2 : index
    %c1_65 = arith.constant 1 : index
    %c0_66 = arith.constant 0 : index
    %c0_67 = arith.constant 0 : index
    %50 = vector.load %arg2[%c2_64, %c1_65, %c0_66, %c0_67] : memref<3x3x3x32xf32, #tpu.memory_space<vmem>>, vector<1x1x3x32xf32>
    %51 = vector.shape_cast %50 : vector<1x1x3x32xf32> to vector<3x32xf32>
    %cst_68 = arith.constant dense<0.000000e+00> : vector<256x32xf32>
    %52 = tpu.matmul %49, %51, %cst_68 {dimension_numbers = #tpu.dot_dimension_numbers<[1], [0], [0], [1], [0, 0, 1, 1], [], []>} : vector<256x3xf32>, vector<3x32xf32>, vector<256x32xf32> -> vector<256x32xf32>
    %53 = arith.addf %47, %52 : vector<256x32xf32>
    %c2_69 = arith.constant 2 : index
    %c9_70 = arith.constant 9 : index
    %c0_71 = arith.constant 0 : index
    %54 = vector.load %arg15[%c2_69, %c9_70, %c0_71] : memref<18x25x3xf32, #tpu.memory_space<vmem>>, vector<16x16x3xf32>
    %55 = vector.shape_cast %54 : vector<16x16x3xf32> to vector<256x3xf32>
    %c2_72 = arith.constant 2 : index
    %c2_73 = arith.constant 2 : index
    %c0_74 = arith.constant 0 : index
    %c0_75 = arith.constant 0 : index
    %56 = vector.load %arg2[%c2_72, %c2_73, %c0_74, %c0_75] : memref<3x3x3x32xf32, #tpu.memory_space<vmem>>, vector<1x1x3x32xf32>
    %57 = vector.shape_cast %56 : vector<1x1x3x32xf32> to vector<3x32xf32>
    %cst_76 = arith.constant dense<0.000000e+00> : vector<256x32xf32>
    %58 = tpu.matmul %55, %57, %cst_76 {dimension_numbers = #tpu.dot_dimension_numbers<[1], [0], [0], [1], [0, 0, 1, 1], [], []>} : vector<256x3xf32>, vector<3x32xf32>, vector<256x32xf32> -> vector<256x32xf32>
    %59 = arith.addf %53, %58 : vector<256x32xf32>
    %c0_77 = arith.constant 0 : index
    %c0_78 = arith.constant 0 : index
    %60 = vector.load %arg3[%c0_77, %c0_78] : memref<1x32xf32, #tpu.memory_space<vmem>>, vector<1x32xf32>
    %61 = vector.broadcast %60 : vector<1x32xf32> to vector<256x32xf32>
    %62 = arith.mulf %59, %61 : vector<256x32xf32>
    %c0_79 = arith.constant 0 : index
    %c0_80 = arith.constant 0 : index
    %63 = vector.load %arg4[%c0_79, %c0_80] : memref<1x32xf32, #tpu.memory_space<vmem>>, vector<1x32xf32>
    %64 = vector.broadcast %63 : vector<1x32xf32> to vector<256x32xf32>
    %65 = arith.addf %62, %64 : vector<256x32xf32>
    %cst_81 = arith.constant 0.000000e+00 : f32
    %66 = vector.broadcast %cst_81 : f32 to vector<256x32xf32>
    %67 = arith.maximumf %65, %66 : vector<256x32xf32>
    %68 = vector.shape_cast %67 : vector<256x32xf32> to vector<8x2x16x32xf32>
    %69 = vector.extract_strided_slice %68 {offsets = [0, 0, 0, 0], sizes = [8, 1, 16, 32], strides = [1, 1, 1, 1]} : vector<8x2x16x32xf32> to vector<8x1x16x32xf32>
    %70 = vector.shape_cast %69 : vector<8x1x16x32xf32> to vector<8x16x32xf32>
    %71 = vector.extract_strided_slice %68 {offsets = [0, 1, 0, 0], sizes = [8, 1, 16, 32], strides = [1, 1, 1, 1]} : vector<8x2x16x32xf32> to vector<8x1x16x32xf32>
    %72 = vector.shape_cast %71 : vector<8x1x16x32xf32> to vector<8x16x32xf32>
    %73 = arith.maximumf %70, %72 : vector<8x16x32xf32>
    %c0_82 = arith.constant 0 : index
    %c0_83 = arith.constant 0 : index
    %c0_84 = arith.constant 0 : index
    %74 = vector.load %arg19[%c0_82, %c0_83, %c0_84] : memref<8x16x32xf32, #tpu.memory_space<vmem>>, vector<8x16x32xf32>
    tpu.vector_store %arg19[%c0_82, %c0_83, %c0_84], %73 {strides = array<i32>} : memref<8x16x32xf32, #tpu.memory_space<vmem>>, vector<8x16x32xf32>,
    %c0_85 = arith.constant 0 : index
    %c0_86 = arith.constant 0 : index
    %c0_87 = arith.constant 0 : index
    %75 = tpu.strided_load %arg19[%c0_85, %c0_86, %c0_87] {strides = array<i32: 1, 2, 1>} : memref<8x16x32xf32, #tpu.memory_space<vmem>>, vector<8x8x32xf32>
    %c0_88 = arith.constant 0 : index
    %c1_89 = arith.constant 1 : index
    %c0_90 = arith.constant 0 : index
    %76 = tpu.strided_load %arg19[%c0_88, %c1_89, %c0_90] {strides = array<i32: 1, 2, 1>} : memref<8x16x32xf32, #tpu.memory_space<vmem>>, vector<8x8x32xf32>
    %77 = arith.maximumf %75, %76 : vector<8x8x32xf32>
    %cst_91 = arith.constant 0.000000e+00 : f32
    %78 = vector.broadcast %cst_91 : f32 to vector<10x17x32xf32>
    %c0_92 = arith.constant 0 : index
    %c0_93 = arith.constant 0 : index
    %c0_94 = arith.constant 0 : index
    %79 = vector.load %arg16[%c0_92, %c0_93, %c0_94] : memref<10x17x32xf32, #tpu.memory_space<vmem>>, vector<10x17x32xf32>
    tpu.vector_store %arg16[%c0_92, %c0_93, %c0_94], %78 {strides = array<i32>} : memref<10x17x32xf32, #tpu.memory_space<vmem>>, vector<10x17x32xf32>,
    %c1_95 = arith.constant 1 : index
    %c8_96 = arith.constant 8 : index
    %c0_97 = arith.constant 0 : index
    %80 = vector.load %arg16[%c1_95, %c8_96, %c0_97] : memref<10x17x32xf32, #tpu.memory_space<vmem>>, vector<8x8x32xf32>
    tpu.vector_store %arg16[%c1_95, %c8_96, %c0_97], %77 {strides = array<i32>} : memref<10x17x32xf32, #tpu.memory_space<vmem>>, vector<8x8x32xf32>,
    %cst_98 = arith.constant 0.000000e+00 : f32
    %81 = vector.broadcast %cst_98 : f32 to vector<64x64xf32>
    %c0_99 = arith.constant 0 : index
    %c7_100 = arith.constant 7 : index
    %c0_101 = arith.constant 0 : index
    %82 = vector.load %arg16[%c0_99, %c7_100, %c0_101] : memref<10x17x32xf32, #tpu.memory_space<vmem>>, vector<8x8x32xf32>
    %83 = vector.shape_cast %82 : vector<8x8x32xf32> to vector<64x32xf32>
    %c0_102 = arith.constant 0 : index
    %c0_103 = arith.constant 0 : index
    %c0_104 = arith.constant 0 : index
    %c0_105 = arith.constant 0 : index
    %84 = vector.load %arg5[%c0_102, %c0_103, %c0_104, %c0_105] : memref<3x3x32x64xf32, #tpu.memory_space<vmem>>, vector<1x1x32x64xf32>
    %85 = vector.shape_cast %84 : vector<1x1x32x64xf32> to vector<32x64xf32>
    %cst_106 = arith.constant dense<0.000000e+00> : vector<64x64xf32>
    %86 = tpu.matmul %83, %85, %cst_106 {dimension_numbers = #tpu.dot_dimension_numbers<[1], [0], [0], [1], [0, 0, 1, 1], [], []>} : vector<64x32xf32>, vector<32x64xf32>, vector<64x64xf32> -> vector<64x64xf32>
    %87 = arith.addf %81, %86 : vector<64x64xf32>
    %c0_107 = arith.constant 0 : index
    %c8_108 = arith.constant 8 : index
    %c0_109 = arith.constant 0 : index
    %88 = vector.load %arg16[%c0_107, %c8_108, %c0_109] : memref<10x17x32xf32, #tpu.memory_space<vmem>>, vector<8x8x32xf32>
    %89 = vector.shape_cast %88 : vector<8x8x32xf32> to vector<64x32xf32>
    %c0_110 = arith.constant 0 : index
    %c1_111 = arith.constant 1 : index
    %c0_112 = arith.constant 0 : index
    %c0_113 = arith.constant 0 : index
    %90 = vector.load %arg5[%c0_110, %c1_111, %c0_112, %c0_113] : memref<3x3x32x64xf32, #tpu.memory_space<vmem>>, vector<1x1x32x64xf32>
    %91 = vector.shape_cast %90 : vector<1x1x32x64xf32> to vector<32x64xf32>
    %cst_114 = arith.constant dense<0.000000e+00> : vector<64x64xf32>
    %92 = tpu.matmul %89, %91, %cst_114 {dimension_numbers = #tpu.dot_dimension_numbers<[1], [0], [0], [1], [0, 0, 1, 1], [], []>} : vector<64x32xf32>, vector<32x64xf32>, vector<64x64xf32> -> vector<64x64xf32>
    %93 = arith.addf %87, %92 : vector<64x64xf32>
    %c0_115 = arith.constant 0 : index
    %c9_116 = arith.constant 9 : index
    %c0_117 = arith.constant 0 : index
    %94 = vector.load %arg16[%c0_115, %c9_116, %c0_117] : memref<10x17x32xf32, #tpu.memory_space<vmem>>, vector<8x8x32xf32>
    %95 = vector.shape_cast %94 : vector<8x8x32xf32> to vector<64x32xf32>
    %c0_118 = arith.constant 0 : index
    %c2_119 = arith.constant 2 : index
    %c0_120 = arith.constant 0 : index
    %c0_121 = arith.constant 0 : index
    %96 = vector.load %arg5[%c0_118, %c2_119, %c0_120, %c0_121] : memref<3x3x32x64xf32, #tpu.memory_space<vmem>>, vector<1x1x32x64xf32>
    %97 = vector.shape_cast %96 : vector<1x1x32x64xf32> to vector<32x64xf32>
    %cst_122 = arith.constant dense<0.000000e+00> : vector<64x64xf32>
    %98 = tpu.matmul %95, %97, %cst_122 {dimension_numbers = #tpu.dot_dimension_numbers<[1], [0], [0], [1], [0, 0, 1, 1], [], []>} : vector<64x32xf32>, vector<32x64xf32>, vector<64x64xf32> -> vector<64x64xf32>
    %99 = arith.addf %93, %98 : vector<64x64xf32>
    %c1_123 = arith.constant 1 : index
    %c7_124 = arith.constant 7 : index
    %c0_125 = arith.constant 0 : index
    %100 = vector.load %arg16[%c1_123, %c7_124, %c0_125] : memref<10x17x32xf32, #tpu.memory_space<vmem>>, vector<8x8x32xf32>
    %101 = vector.shape_cast %100 : vector<8x8x32xf32> to vector<64x32xf32>
    %c1_126 = arith.constant 1 : index
    %c0_127 = arith.constant 0 : index
    %c0_128 = arith.constant 0 : index
    %c0_129 = arith.constant 0 : index
    %102 = vector.load %arg5[%c1_126, %c0_127, %c0_128, %c0_129] : memref<3x3x32x64xf32, #tpu.memory_space<vmem>>, vector<1x1x32x64xf32>
    %103 = vector.shape_cast %102 : vector<1x1x32x64xf32> to vector<32x64xf32>
    %cst_130 = arith.constant dense<0.000000e+00> : vector<64x64xf32>
    %104 = tpu.matmul %101, %103, %cst_130 {dimension_numbers = #tpu.dot_dimension_numbers<[1], [0], [0], [1], [0, 0, 1, 1], [], []>} : vector<64x32xf32>, vector<32x64xf32>, vector<64x64xf32> -> vector<64x64xf32>
    %105 = arith.addf %99, %104 : vector<64x64xf32>
    %c1_131 = arith.constant 1 : index
    %c8_132 = arith.constant 8 : index
    %c0_133 = arith.constant 0 : index
    %106 = vector.load %arg16[%c1_131, %c8_132, %c0_133] : memref<10x17x32xf32, #tpu.memory_space<vmem>>, vector<8x8x32xf32>
    %107 = vector.shape_cast %106 : vector<8x8x32xf32> to vector<64x32xf32>
    %c1_134 = arith.constant 1 : index
    %c1_135 = arith.constant 1 : index
    %c0_136 = arith.constant 0 : index
    %c0_137 = arith.constant 0 : index
    %108 = vector.load %arg5[%c1_134, %c1_135, %c0_136, %c0_137] : memref<3x3x32x64xf32, #tpu.memory_space<vmem>>, vector<1x1x32x64xf32>
    %109 = vector.shape_cast %108 : vector<1x1x32x64xf32> to vector<32x64xf32>
    %cst_138 = arith.constant dense<0.000000e+00> : vector<64x64xf32>
    %110 = tpu.matmul %107, %109, %cst_138 {dimension_numbers = #tpu.dot_dimension_numbers<[1], [0], [0], [1], [0, 0, 1, 1], [], []>} : vector<64x32xf32>, vector<32x64xf32>, vector<64x64xf32> -> vector<64x64xf32>
    %111 = arith.addf %105, %110 : vector<64x64xf32>
    %c1_139 = arith.constant 1 : index
    %c9_140 = arith.constant 9 : index
    %c0_141 = arith.constant 0 : index
    %112 = vector.load %arg16[%c1_139, %c9_140, %c0_141] : memref<10x17x32xf32, #tpu.memory_space<vmem>>, vector<8x8x32xf32>
    %113 = vector.shape_cast %112 : vector<8x8x32xf32> to vector<64x32xf32>
    %c1_142 = arith.constant 1 : index
    %c2_143 = arith.constant 2 : index
    %c0_144 = arith.constant 0 : index
    %c0_145 = arith.constant 0 : index
    %114 = vector.load %arg5[%c1_142, %c2_143, %c0_144, %c0_145] : memref<3x3x32x64xf32, #tpu.memory_space<vmem>>, vector<1x1x32x64xf32>
    %115 = vector.shape_cast %114 : vector<1x1x32x64xf32> to vector<32x64xf32>
    %cst_146 = arith.constant dense<0.000000e+00> : vector<64x64xf32>
    %116 = tpu.matmul %113, %115, %cst_146 {dimension_numbers = #tpu.dot_dimension_numbers<[1], [0], [0], [1], [0, 0, 1, 1], [], []>} : vector<64x32xf32>, vector<32x64xf32>, vector<64x64xf32> -> vector<64x64xf32>
    %117 = arith.addf %111, %116 : vector<64x64xf32>
    %c2_147 = arith.constant 2 : index
    %c7_148 = arith.constant 7 : index
    %c0_149 = arith.constant 0 : index
    %118 = vector.load %arg16[%c2_147, %c7_148, %c0_149] : memref<10x17x32xf32, #tpu.memory_space<vmem>>, vector<8x8x32xf32>
    %119 = vector.shape_cast %118 : vector<8x8x32xf32> to vector<64x32xf32>
    %c2_150 = arith.constant 2 : index
    %c0_151 = arith.constant 0 : index
    %c0_152 = arith.constant 0 : index
    %c0_153 = arith.constant 0 : index
    %120 = vector.load %arg5[%c2_150, %c0_151, %c0_152, %c0_153] : memref<3x3x32x64xf32, #tpu.memory_space<vmem>>, vector<1x1x32x64xf32>
    %121 = vector.shape_cast %120 : vector<1x1x32x64xf32> to vector<32x64xf32>
    %cst_154 = arith.constant dense<0.000000e+00> : vector<64x64xf32>
    %122 = tpu.matmul %119, %121, %cst_154 {dimension_numbers = #tpu.dot_dimension_numbers<[1], [0], [0], [1], [0, 0, 1, 1], [], []>} : vector<64x32xf32>, vector<32x64xf32>, vector<64x64xf32> -> vector<64x64xf32>
    %123 = arith.addf %117, %122 : vector<64x64xf32>
    %c2_155 = arith.constant 2 : index
    %c8_156 = arith.constant 8 : index
    %c0_157 = arith.constant 0 : index
    %124 = vector.load %arg16[%c2_155, %c8_156, %c0_157] : memref<10x17x32xf32, #tpu.memory_space<vmem>>, vector<8x8x32xf32>
    %125 = vector.shape_cast %124 : vector<8x8x32xf32> to vector<64x32xf32>
    %c2_158 = arith.constant 2 : index
    %c1_159 = arith.constant 1 : index
    %c0_160 = arith.constant 0 : index
    %c0_161 = arith.constant 0 : index
    %126 = vector.load %arg5[%c2_158, %c1_159, %c0_160, %c0_161] : memref<3x3x32x64xf32, #tpu.memory_space<vmem>>, vector<1x1x32x64xf32>
    %127 = vector.shape_cast %126 : vector<1x1x32x64xf32> to vector<32x64xf32>
    %cst_162 = arith.constant dense<0.000000e+00> : vector<64x64xf32>
    %128 = tpu.matmul %125, %127, %cst_162 {dimension_numbers = #tpu.dot_dimension_numbers<[1], [0], [0], [1], [0, 0, 1, 1], [], []>} : vector<64x32xf32>, vector<32x64xf32>, vector<64x64xf32> -> vector<64x64xf32>
    %129 = arith.addf %123, %128 : vector<64x64xf32>
    %c2_163 = arith.constant 2 : index
    %c9_164 = arith.constant 9 : index
    %c0_165 = arith.constant 0 : index
    %130 = vector.load %arg16[%c2_163, %c9_164, %c0_165] : memref<10x17x32xf32, #tpu.memory_space<vmem>>, vector<8x8x32xf32>
    %131 = vector.shape_cast %130 : vector<8x8x32xf32> to vector<64x32xf32>
    %c2_166 = arith.constant 2 : index
    %c2_167 = arith.constant 2 : index
    %c0_168 = arith.constant 0 : index
    %c0_169 = arith.constant 0 : index
    %132 = vector.load %arg5[%c2_166, %c2_167, %c0_168, %c0_169] : memref<3x3x32x64xf32, #tpu.memory_space<vmem>>, vector<1x1x32x64xf32>
    %133 = vector.shape_cast %132 : vector<1x1x32x64xf32> to vector<32x64xf32>
    %cst_170 = arith.constant dense<0.000000e+00> : vector<64x64xf32>
    %134 = tpu.matmul %131, %133, %cst_170 {dimension_numbers = #tpu.dot_dimension_numbers<[1], [0], [0], [1], [0, 0, 1, 1], [], []>} : vector<64x32xf32>, vector<32x64xf32>, vector<64x64xf32> -> vector<64x64xf32>
    %135 = arith.addf %129, %134 : vector<64x64xf32>
    %c0_171 = arith.constant 0 : index
    %c0_172 = arith.constant 0 : index
    %136 = vector.load %arg6[%c0_171, %c0_172] : memref<1x64xf32, #tpu.memory_space<vmem>>, vector<1x64xf32>
    %137 = vector.broadcast %136 : vector<1x64xf32> to vector<64x64xf32>
    %138 = arith.mulf %135, %137 : vector<64x64xf32>
    %c0_173 = arith.constant 0 : index
    %c0_174 = arith.constant 0 : index
    %139 = vector.load %arg7[%c0_173, %c0_174] : memref<1x64xf32, #tpu.memory_space<vmem>>, vector<1x64xf32>
    %140 = vector.broadcast %139 : vector<1x64xf32> to vector<64x64xf32>
    %141 = arith.addf %138, %140 : vector<64x64xf32>
    %cst_175 = arith.constant 0.000000e+00 : f32
    %142 = vector.broadcast %cst_175 : f32 to vector<64x64xf32>
    %143 = arith.maximumf %141, %142 : vector<64x64xf32>
    %144 = vector.shape_cast %143 : vector<64x64xf32> to vector<4x2x8x64xf32>
    %145 = vector.extract_strided_slice %144 {offsets = [0, 0, 0, 0], sizes = [4, 1, 8, 64], strides = [1, 1, 1, 1]} : vector<4x2x8x64xf32> to vector<4x1x8x64xf32>
    %146 = vector.shape_cast %145 : vector<4x1x8x64xf32> to vector<4x8x64xf32>
    %147 = vector.extract_strided_slice %144 {offsets = [0, 1, 0, 0], sizes = [4, 1, 8, 64], strides = [1, 1, 1, 1]} : vector<4x2x8x64xf32> to vector<4x1x8x64xf32>
    %148 = vector.shape_cast %147 : vector<4x1x8x64xf32> to vector<4x8x64xf32>
    %149 = arith.maximumf %146, %148 : vector<4x8x64xf32>
    %c0_176 = arith.constant 0 : index
    %c0_177 = arith.constant 0 : index
    %c0_178 = arith.constant 0 : index
    %150 = vector.load %arg20[%c0_176, %c0_177, %c0_178] : memref<4x8x64xf32, #tpu.memory_space<vmem>>, vector<4x8x64xf32>
    tpu.vector_store %arg20[%c0_176, %c0_177, %c0_178], %149 {strides = array<i32>} : memref<4x8x64xf32, #tpu.memory_space<vmem>>, vector<4x8x64xf32>,
    %c0_179 = arith.constant 0 : index
    %c0_180 = arith.constant 0 : index
    %c0_181 = arith.constant 0 : index
    %151 = tpu.strided_load %arg20[%c0_179, %c0_180, %c0_181] {strides = array<i32: 1, 2, 1>} : memref<4x8x64xf32, #tpu.memory_space<vmem>>, vector<4x4x64xf32>
    %c0_182 = arith.constant 0 : index
    %c1_183 = arith.constant 1 : index
    %c0_184 = arith.constant 0 : index
    %152 = tpu.strided_load %arg20[%c0_182, %c1_183, %c0_184] {strides = array<i32: 1, 2, 1>} : memref<4x8x64xf32, #tpu.memory_space<vmem>>, vector<4x4x64xf32>
    %153 = arith.maximumf %151, %152 : vector<4x4x64xf32>
    %cst_185 = arith.constant 0.000000e+00 : f32
    %154 = vector.broadcast %cst_185 : f32 to vector<6x13x64xf32>
    %c0_186 = arith.constant 0 : index
    %c0_187 = arith.constant 0 : index
    %c0_188 = arith.constant 0 : index
    %155 = vector.load %arg17[%c0_186, %c0_187, %c0_188] : memref<6x13x64xf32, #tpu.memory_space<vmem>>, vector<6x13x64xf32>
    tpu.vector_store %arg17[%c0_186, %c0_187, %c0_188], %154 {strides = array<i32>} : memref<6x13x64xf32, #tpu.memory_space<vmem>>, vector<6x13x64xf32>,
    %c1_189 = arith.constant 1 : index
    %c8_190 = arith.constant 8 : index
    %c0_191 = arith.constant 0 : index
    %156 = vector.load %arg17[%c1_189, %c8_190, %c0_191] : memref<6x13x64xf32, #tpu.memory_space<vmem>>, vector<4x4x64xf32>
    tpu.vector_store %arg17[%c1_189, %c8_190, %c0_191], %153 {strides = array<i32>} : memref<6x13x64xf32, #tpu.memory_space<vmem>>, vector<4x4x64xf32>,
    %cst_192 = arith.constant 0.000000e+00 : f32
    %157 = vector.broadcast %cst_192 : f32 to vector<4x128xf32>
    %c0_193 = arith.constant 0 : index
    %c7_194 = arith.constant 7 : index
    %c0_195 = arith.constant 0 : index
    %158 = vector.load %arg17[%c0_193, %c7_194, %c0_195] : memref<6x13x64xf32, #tpu.memory_space<vmem>>, vector<1x4x64xf32>
    %159 = vector.shape_cast %158 : vector<1x4x64xf32> to vector<4x64xf32>
    %c0_196 = arith.constant 0 : index
    %c0_197 = arith.constant 0 : index
    %c0_198 = arith.constant 0 : index
    %c0_199 = arith.constant 0 : index
    %160 = vector.load %arg8[%c0_196, %c0_197, %c0_198, %c0_199] : memref<3x3x64x128xf32, #tpu.memory_space<vmem>>, vector<1x1x64x128xf32>
    %161 = vector.shape_cast %160 : vector<1x1x64x128xf32> to vector<64x128xf32>
    %cst_200 = arith.constant dense<0.000000e+00> : vector<4x128xf32>
    %162 = tpu.matmul %159, %161, %cst_200 {dimension_numbers = #tpu.dot_dimension_numbers<[1], [0], [0], [1], [0, 0, 1, 1], [], []>} : vector<4x64xf32>, vector<64x128xf32>, vector<4x128xf32> -> vector<4x128xf32>
    %163 = arith.addf %157, %162 : vector<4x128xf32>
    %c0_201 = arith.constant 0 : index
    %c8_202 = arith.constant 8 : index
    %c0_203 = arith.constant 0 : index
    %164 = vector.load %arg17[%c0_201, %c8_202, %c0_203] : memref<6x13x64xf32, #tpu.memory_space<vmem>>, vector<1x4x64xf32>
    %165 = vector.shape_cast %164 : vector<1x4x64xf32> to vector<4x64xf32>
    %c0_204 = arith.constant 0 : index
    %c1_205 = arith.constant 1 : index
    %c0_206 = arith.constant 0 : index
    %c0_207 = arith.constant 0 : index
    %166 = vector.load %arg8[%c0_204, %c1_205, %c0_206, %c0_207] : memref<3x3x64x128xf32, #tpu.memory_space<vmem>>, vector<1x1x64x128xf32>
    %167 = vector.shape_cast %166 : vector<1x1x64x128xf32> to vector<64x128xf32>
    %cst_208 = arith.constant dense<0.000000e+00> : vector<4x128xf32>
    %168 = tpu.matmul %165, %167, %cst_208 {dimension_numbers = #tpu.dot_dimension_numbers<[1], [0], [0], [1], [0, 0, 1, 1], [], []>} : vector<4x64xf32>, vector<64x128xf32>, vector<4x128xf32> -> vector<4x128xf32>
    %169 = arith.addf %163, %168 : vector<4x128xf32>
    %c0_209 = arith.constant 0 : index
    %c9_210 = arith.constant 9 : index
    %c0_211 = arith.constant 0 : index
    %170 = vector.load %arg17[%c0_209, %c9_210, %c0_211] : memref<6x13x64xf32, #tpu.memory_space<vmem>>, vector<1x4x64xf32>
    %171 = vector.shape_cast %170 : vector<1x4x64xf32> to vector<4x64xf32>
    %c0_212 = arith.constant 0 : index
    %c2_213 = arith.constant 2 : index
    %c0_214 = arith.constant 0 : index
    %c0_215 = arith.constant 0 : index
    %172 = vector.load %arg8[%c0_212, %c2_213, %c0_214, %c0_215] : memref<3x3x64x128xf32, #tpu.memory_space<vmem>>, vector<1x1x64x128xf32>
    %173 = vector.shape_cast %172 : vector<1x1x64x128xf32> to vector<64x128xf32>
    %cst_216 = arith.constant dense<0.000000e+00> : vector<4x128xf32>
    %174 = tpu.matmul %171, %173, %cst_216 {dimension_numbers = #tpu.dot_dimension_numbers<[1], [0], [0], [1], [0, 0, 1, 1], [], []>} : vector<4x64xf32>, vector<64x128xf32>, vector<4x128xf32> -> vector<4x128xf32>
    %175 = arith.addf %169, %174 : vector<4x128xf32>
    %c1_217 = arith.constant 1 : index
    %c7_218 = arith.constant 7 : index
    %c0_219 = arith.constant 0 : index
    %176 = vector.load %arg17[%c1_217, %c7_218, %c0_219] : memref<6x13x64xf32, #tpu.memory_space<vmem>>, vector<1x4x64xf32>
    %177 = vector.shape_cast %176 : vector<1x4x64xf32> to vector<4x64xf32>
    %c1_220 = arith.constant 1 : index
    %c0_221 = arith.constant 0 : index
    %c0_222 = arith.constant 0 : index
    %c0_223 = arith.constant 0 : index
    %178 = vector.load %arg8[%c1_220, %c0_221, %c0_222, %c0_223] : memref<3x3x64x128xf32, #tpu.memory_space<vmem>>, vector<1x1x64x128xf32>
    %179 = vector.shape_cast %178 : vector<1x1x64x128xf32> to vector<64x128xf32>
    %cst_224 = arith.constant dense<0.000000e+00> : vector<4x128xf32>
    %180 = tpu.matmul %177, %179, %cst_224 {dimension_numbers = #tpu.dot_dimension_numbers<[1], [0], [0], [1], [0, 0, 1, 1], [], []>} : vector<4x64xf32>, vector<64x128xf32>, vector<4x128xf32> -> vector<4x128xf32>
    %181 = arith.addf %175, %180 : vector<4x128xf32>
    %c1_225 = arith.constant 1 : index
    %c8_226 = arith.constant 8 : index
    %c0_227 = arith.constant 0 : index
    %182 = vector.load %arg17[%c1_225, %c8_226, %c0_227] : memref<6x13x64xf32, #tpu.memory_space<vmem>>, vector<1x4x64xf32>
    %183 = vector.shape_cast %182 : vector<1x4x64xf32> to vector<4x64xf32>
    %c1_228 = arith.constant 1 : index
    %c1_229 = arith.constant 1 : index
    %c0_230 = arith.constant 0 : index
    %c0_231 = arith.constant 0 : index
    %184 = vector.load %arg8[%c1_228, %c1_229, %c0_230, %c0_231] : memref<3x3x64x128xf32, #tpu.memory_space<vmem>>, vector<1x1x64x128xf32>
    %185 = vector.shape_cast %184 : vector<1x1x64x128xf32> to vector<64x128xf32>
    %cst_232 = arith.constant dense<0.000000e+00> : vector<4x128xf32>
    %186 = tpu.matmul %183, %185, %cst_232 {dimension_numbers = #tpu.dot_dimension_numbers<[1], [0], [0], [1], [0, 0, 1, 1], [], []>} : vector<4x64xf32>, vector<64x128xf32>, vector<4x128xf32> -> vector<4x128xf32>
    %187 = arith.addf %181, %186 : vector<4x128xf32>
    %c1_233 = arith.constant 1 : index
    %c9_234 = arith.constant 9 : index
    %c0_235 = arith.constant 0 : index
    %188 = vector.load %arg17[%c1_233, %c9_234, %c0_235] : memref<6x13x64xf32, #tpu.memory_space<vmem>>, vector<1x4x64xf32>
    %189 = vector.shape_cast %188 : vector<1x4x64xf32> to vector<4x64xf32>
    %c1_236 = arith.constant 1 : index
    %c2_237 = arith.constant 2 : index
    %c0_238 = arith.constant 0 : index
    %c0_239 = arith.constant 0 : index
    %190 = vector.load %arg8[%c1_236, %c2_237, %c0_238, %c0_239] : memref<3x3x64x128xf32, #tpu.memory_space<vmem>>, vector<1x1x64x128xf32>
    %191 = vector.shape_cast %190 : vector<1x1x64x128xf32> to vector<64x128xf32>
    %cst_240 = arith.constant dense<0.000000e+00> : vector<4x128xf32>
    %192 = tpu.matmul %189, %191, %cst_240 {dimension_numbers = #tpu.dot_dimension_numbers<[1], [0], [0], [1], [0, 0, 1, 1], [], []>} : vector<4x64xf32>, vector<64x128xf32>, vector<4x128xf32> -> vector<4x128xf32>
    %193 = arith.addf %187, %192 : vector<4x128xf32>
    %c2_241 = arith.constant 2 : index
    %c7_242 = arith.constant 7 : index
    %c0_243 = arith.constant 0 : index
    %194 = vector.load %arg17[%c2_241, %c7_242, %c0_243] : memref<6x13x64xf32, #tpu.memory_space<vmem>>, vector<1x4x64xf32>
    %195 = vector.shape_cast %194 : vector<1x4x64xf32> to vector<4x64xf32>
    %c2_244 = arith.constant 2 : index
    %c0_245 = arith.constant 0 : index
    %c0_246 = arith.constant 0 : index
    %c0_247 = arith.constant 0 : index
    %196 = vector.load %arg8[%c2_244, %c0_245, %c0_246, %c0_247] : memref<3x3x64x128xf32, #tpu.memory_space<vmem>>, vector<1x1x64x128xf32>
    %197 = vector.shape_cast %196 : vector<1x1x64x128xf32> to vector<64x128xf32>
    %cst_248 = arith.constant dense<0.000000e+00> : vector<4x128xf32>
    %198 = tpu.matmul %195, %197, %cst_248 {dimension_numbers = #tpu.dot_dimension_numbers<[1], [0], [0], [1], [0, 0, 1, 1], [], []>} : vector<4x64xf32>, vector<64x128xf32>, vector<4x128xf32> -> vector<4x128xf32>
    %199 = arith.addf %193, %198 : vector<4x128xf32>
    %c2_249 = arith.constant 2 : index
    %c8_250 = arith.constant 8 : index
    %c0_251 = arith.constant 0 : index
    %200 = vector.load %arg17[%c2_249, %c8_250, %c0_251] : memref<6x13x64xf32, #tpu.memory_space<vmem>>, vector<1x4x64xf32>
    %201 = vector.shape_cast %200 : vector<1x4x64xf32> to vector<4x64xf32>
    %c2_252 = arith.constant 2 : index
    %c1_253 = arith.constant 1 : index
    %c0_254 = arith.constant 0 : index
    %c0_255 = arith.constant 0 : index
    %202 = vector.load %arg8[%c2_252, %c1_253, %c0_254, %c0_255] : memref<3x3x64x128xf32, #tpu.memory_space<vmem>>, vector<1x1x64x128xf32>
    %203 = vector.shape_cast %202 : vector<1x1x64x128xf32> to vector<64x128xf32>
    %cst_256 = arith.constant dense<0.000000e+00> : vector<4x128xf32>
    %204 = tpu.matmul %201, %203, %cst_256 {dimension_numbers = #tpu.dot_dimension_numbers<[1], [0], [0], [1], [0, 0, 1, 1], [], []>} : vector<4x64xf32>, vector<64x128xf32>, vector<4x128xf32> -> vector<4x128xf32>
    %205 = arith.addf %199, %204 : vector<4x128xf32>
    %c2_257 = arith.constant 2 : index
    %c9_258 = arith.constant 9 : index
    %c0_259 = arith.constant 0 : index
    %206 = vector.load %arg17[%c2_257, %c9_258, %c0_259] : memref<6x13x64xf32, #tpu.memory_space<vmem>>, vector<1x4x64xf32>
    %207 = vector.shape_cast %206 : vector<1x4x64xf32> to vector<4x64xf32>
    %c2_260 = arith.constant 2 : index
    %c2_261 = arith.constant 2 : index
    %c0_262 = arith.constant 0 : index
    %c0_263 = arith.constant 0 : index
    %208 = vector.load %arg8[%c2_260, %c2_261, %c0_262, %c0_263] : memref<3x3x64x128xf32, #tpu.memory_space<vmem>>, vector<1x1x64x128xf32>
    %209 = vector.shape_cast %208 : vector<1x1x64x128xf32> to vector<64x128xf32>
    %cst_264 = arith.constant dense<0.000000e+00> : vector<4x128xf32>
    %210 = tpu.matmul %207, %209, %cst_264 {dimension_numbers = #tpu.dot_dimension_numbers<[1], [0], [0], [1], [0, 0, 1, 1], [], []>} : vector<4x64xf32>, vector<64x128xf32>, vector<4x128xf32> -> vector<4x128xf32>
    %211 = arith.addf %205, %210 : vector<4x128xf32>
    %c0_265 = arith.constant 0 : index
    %c0_266 = arith.constant 0 : index
    %212 = vector.load %arg9[%c0_265, %c0_266] : memref<1x128xf32, #tpu.memory_space<vmem>>, vector<1x128xf32>
    %213 = vector.broadcast %212 : vector<1x128xf32> to vector<4x128xf32>
    %214 = arith.mulf %211, %213 : vector<4x128xf32>
    %c0_267 = arith.constant 0 : index
    %c0_268 = arith.constant 0 : index
    %215 = vector.load %arg10[%c0_267, %c0_268] : memref<1x128xf32, #tpu.memory_space<vmem>>, vector<1x128xf32>
    %216 = vector.broadcast %215 : vector<1x128xf32> to vector<4x128xf32>
    %217 = arith.addf %214, %216 : vector<4x128xf32>
    %cst_269 = arith.constant 0.000000e+00 : f32
    %218 = vector.broadcast %cst_269 : f32 to vector<4x128xf32>
    %219 = arith.maximumf %217, %218 : vector<4x128xf32>
    %c0_270 = arith.constant 0 : index
    %c0_271 = arith.constant 0 : index
    %c0_272 = arith.constant 0 : index
    %220 = vector.load %arg21[%c0_270, %c0_271, %c0_272] : memref<4x4x128xf32, #tpu.memory_space<vmem>>, vector<1x4x128xf32>
    %221 = vector.shape_cast %220 : vector<1x4x128xf32> to vector<4x128xf32>
    %222 = vector.shape_cast %219 : vector<4x128xf32> to vector<1x4x128xf32>
    tpu.vector_store %arg21[%c0_270, %c0_271, %c0_272], %222 {strides = array<i32>} : memref<4x4x128xf32, #tpu.memory_space<vmem>>, vector<1x4x128xf32>,
    %cst_273 = arith.constant 0.000000e+00 : f32
    %223 = vector.broadcast %cst_273 : f32 to vector<4x128xf32>
    %c1_274 = arith.constant 1 : index
    %c7_275 = arith.constant 7 : index
    %c0_276 = arith.constant 0 : index
    %224 = vector.load %arg17[%c1_274, %c7_275, %c0_276] : memref<6x13x64xf32, #tpu.memory_space<vmem>>, vector<1x4x64xf32>
    %225 = vector.shape_cast %224 : vector<1x4x64xf32> to vector<4x64xf32>
    %c0_277 = arith.constant 0 : index
    %c0_278 = arith.constant 0 : index
    %c0_279 = arith.constant 0 : index
    %c0_280 = arith.constant 0 : index
    %226 = vector.load %arg8[%c0_277, %c0_278, %c0_279, %c0_280] : memref<3x3x64x128xf32, #tpu.memory_space<vmem>>, vector<1x1x64x128xf32>
    %227 = vector.shape_cast %226 : vector<1x1x64x128xf32> to vector<64x128xf32>
    %cst_281 = arith.constant dense<0.000000e+00> : vector<4x128xf32>
    %228 = tpu.matmul %225, %227, %cst_281 {dimension_numbers = #tpu.dot_dimension_numbers<[1], [0], [0], [1], [0, 0, 1, 1], [], []>} : vector<4x64xf32>, vector<64x128xf32>, vector<4x128xf32> -> vector<4x128xf32>
    %229 = arith.addf %223, %228 : vector<4x128xf32>
    %c1_282 = arith.constant 1 : index
    %c8_283 = arith.constant 8 : index
    %c0_284 = arith.constant 0 : index
    %230 = vector.load %arg17[%c1_282, %c8_283, %c0_284] : memref<6x13x64xf32, #tpu.memory_space<vmem>>, vector<1x4x64xf32>
    %231 = vector.shape_cast %230 : vector<1x4x64xf32> to vector<4x64xf32>
    %c0_285 = arith.constant 0 : index
    %c1_286 = arith.constant 1 : index
    %c0_287 = arith.constant 0 : index
    %c0_288 = arith.constant 0 : index
    %232 = vector.load %arg8[%c0_285, %c1_286, %c0_287, %c0_288] : memref<3x3x64x128xf32, #tpu.memory_space<vmem>>, vector<1x1x64x128xf32>
    %233 = vector.shape_cast %232 : vector<1x1x64x128xf32> to vector<64x128xf32>
    %cst_289 = arith.constant dense<0.000000e+00> : vector<4x128xf32>
    %234 = tpu.matmul %231, %233, %cst_289 {dimension_numbers = #tpu.dot_dimension_numbers<[1], [0], [0], [1], [0, 0, 1, 1], [], []>} : vector<4x64xf32>, vector<64x128xf32>, vector<4x128xf32> -> vector<4x128xf32>
    %235 = arith.addf %229, %234 : vector<4x128xf32>
    %c1_290 = arith.constant 1 : index
    %c9_291 = arith.constant 9 : index
    %c0_292 = arith.constant 0 : index
    %236 = vector.load %arg17[%c1_290, %c9_291, %c0_292] : memref<6x13x64xf32, #tpu.memory_space<vmem>>, vector<1x4x64xf32>
    %237 = vector.shape_cast %236 : vector<1x4x64xf32> to vector<4x64xf32>
    %c0_293 = arith.constant 0 : index
    %c2_294 = arith.constant 2 : index
    %c0_295 = arith.constant 0 : index
    %c0_296 = arith.constant 0 : index
    %238 = vector.load %arg8[%c0_293, %c2_294, %c0_295, %c0_296] : memref<3x3x64x128xf32, #tpu.memory_space<vmem>>, vector<1x1x64x128xf32>
    %239 = vector.shape_cast %238 : vector<1x1x64x128xf32> to vector<64x128xf32>
    %cst_297 = arith.constant dense<0.000000e+00> : vector<4x128xf32>
    %240 = tpu.matmul %237, %239, %cst_297 {dimension_numbers = #tpu.dot_dimension_numbers<[1], [0], [0], [1], [0, 0, 1, 1], [], []>} : vector<4x64xf32>, vector<64x128xf32>, vector<4x128xf32> -> vector<4x128xf32>
    %241 = arith.addf %235, %240 : vector<4x128xf32>
    %c2_298 = arith.constant 2 : index
    %c7_299 = arith.constant 7 : index
    %c0_300 = arith.constant 0 : index
    %242 = vector.load %arg17[%c2_298, %c7_299, %c0_300] : memref<6x13x64xf32, #tpu.memory_space<vmem>>, vector<1x4x64xf32>
    %243 = vector.shape_cast %242 : vector<1x4x64xf32> to vector<4x64xf32>
    %c1_301 = arith.constant 1 : index
    %c0_302 = arith.constant 0 : index
    %c0_303 = arith.constant 0 : index
    %c0_304 = arith.constant 0 : index
    %244 = vector.load %arg8[%c1_301, %c0_302, %c0_303, %c0_304] : memref<3x3x64x128xf32, #tpu.memory_space<vmem>>, vector<1x1x64x128xf32>
    %245 = vector.shape_cast %244 : vector<1x1x64x128xf32> to vector<64x128xf32>
    %cst_305 = arith.constant dense<0.000000e+00> : vector<4x128xf32>
    %246 = tpu.matmul %243, %245, %cst_305 {dimension_numbers = #tpu.dot_dimension_numbers<[1], [0], [0], [1], [0, 0, 1, 1], [], []>} : vector<4x64xf32>, vector<64x128xf32>, vector<4x128xf32> -> vector<4x128xf32>
    %247 = arith.addf %241, %246 : vector<4x128xf32>
    %c2_306 = arith.constant 2 : index
    %c8_307 = arith.constant 8 : index
    %c0_308 = arith.constant 0 : index
    %248 = vector.load %arg17[%c2_306, %c8_307, %c0_308] : memref<6x13x64xf32, #tpu.memory_space<vmem>>, vector<1x4x64xf32>
    %249 = vector.shape_cast %248 : vector<1x4x64xf32> to vector<4x64xf32>
    %c1_309 = arith.constant 1 : index
    %c1_310 = arith.constant 1 : index
    %c0_311 = arith.constant 0 : index
    %c0_312 = arith.constant 0 : index
    %250 = vector.load %arg8[%c1_309, %c1_310, %c0_311, %c0_312] : memref<3x3x64x128xf32, #tpu.memory_space<vmem>>, vector<1x1x64x128xf32>
    %251 = vector.shape_cast %250 : vector<1x1x64x128xf32> to vector<64x128xf32>
    %cst_313 = arith.constant dense<0.000000e+00> : vector<4x128xf32>
    %252 = tpu.matmul %249, %251, %cst_313 {dimension_numbers = #tpu.dot_dimension_numbers<[1], [0], [0], [1], [0, 0, 1, 1], [], []>} : vector<4x64xf32>, vector<64x128xf32>, vector<4x128xf32> -> vector<4x128xf32>
    %253 = arith.addf %247, %252 : vector<4x128xf32>
    %c2_314 = arith.constant 2 : index
    %c9_315 = arith.constant 9 : index
    %c0_316 = arith.constant 0 : index
    %254 = vector.load %arg17[%c2_314, %c9_315, %c0_316] : memref<6x13x64xf32, #tpu.memory_space<vmem>>, vector<1x4x64xf32>
    %255 = vector.shape_cast %254 : vector<1x4x64xf32> to vector<4x64xf32>
    %c1_317 = arith.constant 1 : index
    %c2_318 = arith.constant 2 : index
    %c0_319 = arith.constant 0 : index
    %c0_320 = arith.constant 0 : index
    %256 = vector.load %arg8[%c1_317, %c2_318, %c0_319, %c0_320] : memref<3x3x64x128xf32, #tpu.memory_space<vmem>>, vector<1x1x64x128xf32>
    %257 = vector.shape_cast %256 : vector<1x1x64x128xf32> to vector<64x128xf32>
    %cst_321 = arith.constant dense<0.000000e+00> : vector<4x128xf32>
    %258 = tpu.matmul %255, %257, %cst_321 {dimension_numbers = #tpu.dot_dimension_numbers<[1], [0], [0], [1], [0, 0, 1, 1], [], []>} : vector<4x64xf32>, vector<64x128xf32>, vector<4x128xf32> -> vector<4x128xf32>
    %259 = arith.addf %253, %258 : vector<4x128xf32>
    %c3 = arith.constant 3 : index
    %c7_322 = arith.constant 7 : index
    %c0_323 = arith.constant 0 : index
    %260 = vector.load %arg17[%c3, %c7_322, %c0_323] : memref<6x13x64xf32, #tpu.memory_space<vmem>>, vector<1x4x64xf32>
    %261 = vector.shape_cast %260 : vector<1x4x64xf32> to vector<4x64xf32>
    %c2_324 = arith.constant 2 : index
    %c0_325 = arith.constant 0 : index
    %c0_326 = arith.constant 0 : index
    %c0_327 = arith.constant 0 : index
    %262 = vector.load %arg8[%c2_324, %c0_325, %c0_326, %c0_327] : memref<3x3x64x128xf32, #tpu.memory_space<vmem>>, vector<1x1x64x128xf32>
    %263 = vector.shape_cast %262 : vector<1x1x64x128xf32> to vector<64x128xf32>
    %cst_328 = arith.constant dense<0.000000e+00> : vector<4x128xf32>
    %264 = tpu.matmul %261, %263, %cst_328 {dimension_numbers = #tpu.dot_dimension_numbers<[1], [0], [0], [1], [0, 0, 1, 1], [], []>} : vector<4x64xf32>, vector<64x128xf32>, vector<4x128xf32> -> vector<4x128xf32>
    %265 = arith.addf %259, %264 : vector<4x128xf32>
    %c3_329 = arith.constant 3 : index
    %c8_330 = arith.constant 8 : index
    %c0_331 = arith.constant 0 : index
    %266 = vector.load %arg17[%c3_329, %c8_330, %c0_331] : memref<6x13x64xf32, #tpu.memory_space<vmem>>, vector<1x4x64xf32>
    %267 = vector.shape_cast %266 : vector<1x4x64xf32> to vector<4x64xf32>
    %c2_332 = arith.constant 2 : index
    %c1_333 = arith.constant 1 : index
    %c0_334 = arith.constant 0 : index
    %c0_335 = arith.constant 0 : index
    %268 = vector.load %arg8[%c2_332, %c1_333, %c0_334, %c0_335] : memref<3x3x64x128xf32, #tpu.memory_space<vmem>>, vector<1x1x64x128xf32>
    %269 = vector.shape_cast %268 : vector<1x1x64x128xf32> to vector<64x128xf32>
    %cst_336 = arith.constant dense<0.000000e+00> : vector<4x128xf32>
    %270 = tpu.matmul %267, %269, %cst_336 {dimension_numbers = #tpu.dot_dimension_numbers<[1], [0], [0], [1], [0, 0, 1, 1], [], []>} : vector<4x64xf32>, vector<64x128xf32>, vector<4x128xf32> -> vector<4x128xf32>
    %271 = arith.addf %265, %270 : vector<4x128xf32>
    %c3_337 = arith.constant 3 : index
    %c9_338 = arith.constant 9 : index
    %c0_339 = arith.constant 0 : index
    %272 = vector.load %arg17[%c3_337, %c9_338, %c0_339] : memref<6x13x64xf32, #tpu.memory_space<vmem>>, vector<1x4x64xf32>
    %273 = vector.shape_cast %272 : vector<1x4x64xf32> to vector<4x64xf32>
    %c2_340 = arith.constant 2 : index
    %c2_341 = arith.constant 2 : index
    %c0_342 = arith.constant 0 : index
    %c0_343 = arith.constant 0 : index
    %274 = vector.load %arg8[%c2_340, %c2_341, %c0_342, %c0_343] : memref<3x3x64x128xf32, #tpu.memory_space<vmem>>, vector<1x1x64x128xf32>
    %275 = vector.shape_cast %274 : vector<1x1x64x128xf32> to vector<64x128xf32>
    %cst_344 = arith.constant dense<0.000000e+00> : vector<4x128xf32>
    %276 = tpu.matmul %273, %275, %cst_344 {dimension_numbers = #tpu.dot_dimension_numbers<[1], [0], [0], [1], [0, 0, 1, 1], [], []>} : vector<4x64xf32>, vector<64x128xf32>, vector<4x128xf32> -> vector<4x128xf32>
    %277 = arith.addf %271, %276 : vector<4x128xf32>
    %c0_345 = arith.constant 0 : index
    %c0_346 = arith.constant 0 : index
    %278 = vector.load %arg9[%c0_345, %c0_346] : memref<1x128xf32, #tpu.memory_space<vmem>>, vector<1x128xf32>
    %279 = vector.broadcast %278 : vector<1x128xf32> to vector<4x128xf32>
    %280 = arith.mulf %277, %279 : vector<4x128xf32>
    %c0_347 = arith.constant 0 : index
    %c0_348 = arith.constant 0 : index
    %281 = vector.load %arg10[%c0_347, %c0_348] : memref<1x128xf32, #tpu.memory_space<vmem>>, vector<1x128xf32>
    %282 = vector.broadcast %281 : vector<1x128xf32> to vector<4x128xf32>
    %283 = arith.addf %280, %282 : vector<4x128xf32>
    %cst_349 = arith.constant 0.000000e+00 : f32
    %284 = vector.broadcast %cst_349 : f32 to vector<4x128xf32>
    %285 = arith.maximumf %283, %284 : vector<4x128xf32>
    %c1_350 = arith.constant 1 : index
    %c0_351 = arith.constant 0 : index
    %c0_352 = arith.constant 0 : index
    %286 = vector.load %arg21[%c1_350, %c0_351, %c0_352] : memref<4x4x128xf32, #tpu.memory_space<vmem>>, vector<1x4x128xf32>
    %287 = vector.shape_cast %286 : vector<1x4x128xf32> to vector<4x128xf32>
    %288 = vector.shape_cast %285 : vector<4x128xf32> to vector<1x4x128xf32>
    tpu.vector_store %arg21[%c1_350, %c0_351, %c0_352], %288 {strides = array<i32>} : memref<4x4x128xf32, #tpu.memory_space<vmem>>, vector<1x4x128xf32>,
    %cst_353 = arith.constant 0.000000e+00 : f32
    %289 = vector.broadcast %cst_353 : f32 to vector<4x128xf32>
    %c2_354 = arith.constant 2 : index
    %c7_355 = arith.constant 7 : index
    %c0_356 = arith.constant 0 : index
    %290 = vector.load %arg17[%c2_354, %c7_355, %c0_356] : memref<6x13x64xf32, #tpu.memory_space<vmem>>, vector<1x4x64xf32>
    %291 = vector.shape_cast %290 : vector<1x4x64xf32> to vector<4x64xf32>
    %c0_357 = arith.constant 0 : index
    %c0_358 = arith.constant 0 : index
    %c0_359 = arith.constant 0 : index
    %c0_360 = arith.constant 0 : index
    %292 = vector.load %arg8[%c0_357, %c0_358, %c0_359, %c0_360] : memref<3x3x64x128xf32, #tpu.memory_space<vmem>>, vector<1x1x64x128xf32>
    %293 = vector.shape_cast %292 : vector<1x1x64x128xf32> to vector<64x128xf32>
    %cst_361 = arith.constant dense<0.000000e+00> : vector<4x128xf32>
    %294 = tpu.matmul %291, %293, %cst_361 {dimension_numbers = #tpu.dot_dimension_numbers<[1], [0], [0], [1], [0, 0, 1, 1], [], []>} : vector<4x64xf32>, vector<64x128xf32>, vector<4x128xf32> -> vector<4x128xf32>
    %295 = arith.addf %289, %294 : vector<4x128xf32>
    %c2_362 = arith.constant 2 : index
    %c8_363 = arith.constant 8 : index
    %c0_364 = arith.constant 0 : index
    %296 = vector.load %arg17[%c2_362, %c8_363, %c0_364] : memref<6x13x64xf32, #tpu.memory_space<vmem>>, vector<1x4x64xf32>
    %297 = vector.shape_cast %296 : vector<1x4x64xf32> to vector<4x64xf32>
    %c0_365 = arith.constant 0 : index
    %c1_366 = arith.constant 1 : index
    %c0_367 = arith.constant 0 : index
    %c0_368 = arith.constant 0 : index
    %298 = vector.load %arg8[%c0_365, %c1_366, %c0_367, %c0_368] : memref<3x3x64x128xf32, #tpu.memory_space<vmem>>, vector<1x1x64x128xf32>
    %299 = vector.shape_cast %298 : vector<1x1x64x128xf32> to vector<64x128xf32>
    %cst_369 = arith.constant dense<0.000000e+00> : vector<4x128xf32>
    %300 = tpu.matmul %297, %299, %cst_369 {dimension_numbers = #tpu.dot_dimension_numbers<[1], [0], [0], [1], [0, 0, 1, 1], [], []>} : vector<4x64xf32>, vector<64x128xf32>, vector<4x128xf32> -> vector<4x128xf32>
    %301 = arith.addf %295, %300 : vector<4x128xf32>
    %c2_370 = arith.constant 2 : index
    %c9_371 = arith.constant 9 : index
    %c0_372 = arith.constant 0 : index
    %302 = vector.load %arg17[%c2_370, %c9_371, %c0_372] : memref<6x13x64xf32, #tpu.memory_space<vmem>>, vector<1x4x64xf32>
    %303 = vector.shape_cast %302 : vector<1x4x64xf32> to vector<4x64xf32>
    %c0_373 = arith.constant 0 : index
    %c2_374 = arith.constant 2 : index
    %c0_375 = arith.constant 0 : index
    %c0_376 = arith.constant 0 : index
    %304 = vector.load %arg8[%c0_373, %c2_374, %c0_375, %c0_376] : memref<3x3x64x128xf32, #tpu.memory_space<vmem>>, vector<1x1x64x128xf32>
    %305 = vector.shape_cast %304 : vector<1x1x64x128xf32> to vector<64x128xf32>
    %cst_377 = arith.constant dense<0.000000e+00> : vector<4x128xf32>
    %306 = tpu.matmul %303, %305, %cst_377 {dimension_numbers = #tpu.dot_dimension_numbers<[1], [0], [0], [1], [0, 0, 1, 1], [], []>} : vector<4x64xf32>, vector<64x128xf32>, vector<4x128xf32> -> vector<4x128xf32>
    %307 = arith.addf %301, %306 : vector<4x128xf32>
    %c3_378 = arith.constant 3 : index
    %c7_379 = arith.constant 7 : index
    %c0_380 = arith.constant 0 : index
    %308 = vector.load %arg17[%c3_378, %c7_379, %c0_380] : memref<6x13x64xf32, #tpu.memory_space<vmem>>, vector<1x4x64xf32>
    %309 = vector.shape_cast %308 : vector<1x4x64xf32> to vector<4x64xf32>
    %c1_381 = arith.constant 1 : index
    %c0_382 = arith.constant 0 : index
    %c0_383 = arith.constant 0 : index
    %c0_384 = arith.constant 0 : index
    %310 = vector.load %arg8[%c1_381, %c0_382, %c0_383, %c0_384] : memref<3x3x64x128xf32, #tpu.memory_space<vmem>>, vector<1x1x64x128xf32>
    %311 = vector.shape_cast %310 : vector<1x1x64x128xf32> to vector<64x128xf32>
    %cst_385 = arith.constant dense<0.000000e+00> : vector<4x128xf32>
    %312 = tpu.matmul %309, %311, %cst_385 {dimension_numbers = #tpu.dot_dimension_numbers<[1], [0], [0], [1], [0, 0, 1, 1], [], []>} : vector<4x64xf32>, vector<64x128xf32>, vector<4x128xf32> -> vector<4x128xf32>
    %313 = arith.addf %307, %312 : vector<4x128xf32>
    %c3_386 = arith.constant 3 : index
    %c8_387 = arith.constant 8 : index
    %c0_388 = arith.constant 0 : index
    %314 = vector.load %arg17[%c3_386, %c8_387, %c0_388] : memref<6x13x64xf32, #tpu.memory_space<vmem>>, vector<1x4x64xf32>
    %315 = vector.shape_cast %314 : vector<1x4x64xf32> to vector<4x64xf32>
    %c1_389 = arith.constant 1 : index
    %c1_390 = arith.constant 1 : index
    %c0_391 = arith.constant 0 : index
    %c0_392 = arith.constant 0 : index
    %316 = vector.load %arg8[%c1_389, %c1_390, %c0_391, %c0_392] : memref<3x3x64x128xf32, #tpu.memory_space<vmem>>, vector<1x1x64x128xf32>
    %317 = vector.shape_cast %316 : vector<1x1x64x128xf32> to vector<64x128xf32>
    %cst_393 = arith.constant dense<0.000000e+00> : vector<4x128xf32>
    %318 = tpu.matmul %315, %317, %cst_393 {dimension_numbers = #tpu.dot_dimension_numbers<[1], [0], [0], [1], [0, 0, 1, 1], [], []>} : vector<4x64xf32>, vector<64x128xf32>, vector<4x128xf32> -> vector<4x128xf32>
    %319 = arith.addf %313, %318 : vector<4x128xf32>
    %c3_394 = arith.constant 3 : index
    %c9_395 = arith.constant 9 : index
    %c0_396 = arith.constant 0 : index
    %320 = vector.load %arg17[%c3_394, %c9_395, %c0_396] : memref<6x13x64xf32, #tpu.memory_space<vmem>>, vector<1x4x64xf32>
    %321 = vector.shape_cast %320 : vector<1x4x64xf32> to vector<4x64xf32>
    %c1_397 = arith.constant 1 : index
    %c2_398 = arith.constant 2 : index
    %c0_399 = arith.constant 0 : index
    %c0_400 = arith.constant 0 : index
    %322 = vector.load %arg8[%c1_397, %c2_398, %c0_399, %c0_400] : memref<3x3x64x128xf32, #tpu.memory_space<vmem>>, vector<1x1x64x128xf32>
    %323 = vector.shape_cast %322 : vector<1x1x64x128xf32> to vector<64x128xf32>
    %cst_401 = arith.constant dense<0.000000e+00> : vector<4x128xf32>
    %324 = tpu.matmul %321, %323, %cst_401 {dimension_numbers = #tpu.dot_dimension_numbers<[1], [0], [0], [1], [0, 0, 1, 1], [], []>} : vector<4x64xf32>, vector<64x128xf32>, vector<4x128xf32> -> vector<4x128xf32>
    %325 = arith.addf %319, %324 : vector<4x128xf32>
    %c4 = arith.constant 4 : index
    %c7_402 = arith.constant 7 : index
    %c0_403 = arith.constant 0 : index
    %326 = vector.load %arg17[%c4, %c7_402, %c0_403] : memref<6x13x64xf32, #tpu.memory_space<vmem>>, vector<1x4x64xf32>
    %327 = vector.shape_cast %326 : vector<1x4x64xf32> to vector<4x64xf32>
    %c2_404 = arith.constant 2 : index
    %c0_405 = arith.constant 0 : index
    %c0_406 = arith.constant 0 : index
    %c0_407 = arith.constant 0 : index
    %328 = vector.load %arg8[%c2_404, %c0_405, %c0_406, %c0_407] : memref<3x3x64x128xf32, #tpu.memory_space<vmem>>, vector<1x1x64x128xf32>
    %329 = vector.shape_cast %328 : vector<1x1x64x128xf32> to vector<64x128xf32>
    %cst_408 = arith.constant dense<0.000000e+00> : vector<4x128xf32>
    %330 = tpu.matmul %327, %329, %cst_408 {dimension_numbers = #tpu.dot_dimension_numbers<[1], [0], [0], [1], [0, 0, 1, 1], [], []>} : vector<4x64xf32>, vector<64x128xf32>, vector<4x128xf32> -> vector<4x128xf32>
    %331 = arith.addf %325, %330 : vector<4x128xf32>
    %c4_409 = arith.constant 4 : index
    %c8_410 = arith.constant 8 : index
    %c0_411 = arith.constant 0 : index
    %332 = vector.load %arg17[%c4_409, %c8_410, %c0_411] : memref<6x13x64xf32, #tpu.memory_space<vmem>>, vector<1x4x64xf32>
    %333 = vector.shape_cast %332 : vector<1x4x64xf32> to vector<4x64xf32>
    %c2_412 = arith.constant 2 : index
    %c1_413 = arith.constant 1 : index
    %c0_414 = arith.constant 0 : index
    %c0_415 = arith.constant 0 : index
    %334 = vector.load %arg8[%c2_412, %c1_413, %c0_414, %c0_415] : memref<3x3x64x128xf32, #tpu.memory_space<vmem>>, vector<1x1x64x128xf32>
    %335 = vector.shape_cast %334 : vector<1x1x64x128xf32> to vector<64x128xf32>
    %cst_416 = arith.constant dense<0.000000e+00> : vector<4x128xf32>
    %336 = tpu.matmul %333, %335, %cst_416 {dimension_numbers = #tpu.dot_dimension_numbers<[1], [0], [0], [1], [0, 0, 1, 1], [], []>} : vector<4x64xf32>, vector<64x128xf32>, vector<4x128xf32> -> vector<4x128xf32>
    %337 = arith.addf %331, %336 : vector<4x128xf32>
    %c4_417 = arith.constant 4 : index
    %c9_418 = arith.constant 9 : index
    %c0_419 = arith.constant 0 : index
    %338 = vector.load %arg17[%c4_417, %c9_418, %c0_419] : memref<6x13x64xf32, #tpu.memory_space<vmem>>, vector<1x4x64xf32>
    %339 = vector.shape_cast %338 : vector<1x4x64xf32> to vector<4x64xf32>
    %c2_420 = arith.constant 2 : index
    %c2_421 = arith.constant 2 : index
    %c0_422 = arith.constant 0 : index
    %c0_423 = arith.constant 0 : index
    %340 = vector.load %arg8[%c2_420, %c2_421, %c0_422, %c0_423] : memref<3x3x64x128xf32, #tpu.memory_space<vmem>>, vector<1x1x64x128xf32>
    %341 = vector.shape_cast %340 : vector<1x1x64x128xf32> to vector<64x128xf32>
    %cst_424 = arith.constant dense<0.000000e+00> : vector<4x128xf32>
    %342 = tpu.matmul %339, %341, %cst_424 {dimension_numbers = #tpu.dot_dimension_numbers<[1], [0], [0], [1], [0, 0, 1, 1], [], []>} : vector<4x64xf32>, vector<64x128xf32>, vector<4x128xf32> -> vector<4x128xf32>
    %343 = arith.addf %337, %342 : vector<4x128xf32>
    %c0_425 = arith.constant 0 : index
    %c0_426 = arith.constant 0 : index
    %344 = vector.load %arg9[%c0_425, %c0_426] : memref<1x128xf32, #tpu.memory_space<vmem>>, vector<1x128xf32>
    %345 = vector.broadcast %344 : vector<1x128xf32> to vector<4x128xf32>
    %346 = arith.mulf %343, %345 : vector<4x128xf32>
    %c0_427 = arith.constant 0 : index
    %c0_428 = arith.constant 0 : index
    %347 = vector.load %arg10[%c0_427, %c0_428] : memref<1x128xf32, #tpu.memory_space<vmem>>, vector<1x128xf32>
    %348 = vector.broadcast %347 : vector<1x128xf32> to vector<4x128xf32>
    %349 = arith.addf %346, %348 : vector<4x128xf32>
    %cst_429 = arith.constant 0.000000e+00 : f32
    %350 = vector.broadcast %cst_429 : f32 to vector<4x128xf32>
    %351 = arith.maximumf %349, %350 : vector<4x128xf32>
    %c2_430 = arith.constant 2 : index
    %c0_431 = arith.constant 0 : index
    %c0_432 = arith.constant 0 : index
    %352 = vector.load %arg21[%c2_430, %c0_431, %c0_432] : memref<4x4x128xf32, #tpu.memory_space<vmem>>, vector<1x4x128xf32>
    %353 = vector.shape_cast %352 : vector<1x4x128xf32> to vector<4x128xf32>
    %354 = vector.shape_cast %351 : vector<4x128xf32> to vector<1x4x128xf32>
    tpu.vector_store %arg21[%c2_430, %c0_431, %c0_432], %354 {strides = array<i32>} : memref<4x4x128xf32, #tpu.memory_space<vmem>>, vector<1x4x128xf32>,
    %cst_433 = arith.constant 0.000000e+00 : f32
    %355 = vector.broadcast %cst_433 : f32 to vector<4x128xf32>
    %c3_434 = arith.constant 3 : index
    %c7_435 = arith.constant 7 : index
    %c0_436 = arith.constant 0 : index
    %356 = vector.load %arg17[%c3_434, %c7_435, %c0_436] : memref<6x13x64xf32, #tpu.memory_space<vmem>>, vector<1x4x64xf32>
    %357 = vector.shape_cast %356 : vector<1x4x64xf32> to vector<4x64xf32>
    %c0_437 = arith.constant 0 : index
    %c0_438 = arith.constant 0 : index
    %c0_439 = arith.constant 0 : index
    %c0_440 = arith.constant 0 : index
    %358 = vector.load %arg8[%c0_437, %c0_438, %c0_439, %c0_440] : memref<3x3x64x128xf32, #tpu.memory_space<vmem>>, vector<1x1x64x128xf32>
    %359 = vector.shape_cast %358 : vector<1x1x64x128xf32> to vector<64x128xf32>
    %cst_441 = arith.constant dense<0.000000e+00> : vector<4x128xf32>
    %360 = tpu.matmul %357, %359, %cst_441 {dimension_numbers = #tpu.dot_dimension_numbers<[1], [0], [0], [1], [0, 0, 1, 1], [], []>} : vector<4x64xf32>, vector<64x128xf32>, vector<4x128xf32> -> vector<4x128xf32>
    %361 = arith.addf %355, %360 : vector<4x128xf32>
    %c3_442 = arith.constant 3 : index
    %c8_443 = arith.constant 8 : index
    %c0_444 = arith.constant 0 : index
    %362 = vector.load %arg17[%c3_442, %c8_443, %c0_444] : memref<6x13x64xf32, #tpu.memory_space<vmem>>, vector<1x4x64xf32>
    %363 = vector.shape_cast %362 : vector<1x4x64xf32> to vector<4x64xf32>
    %c0_445 = arith.constant 0 : index
    %c1_446 = arith.constant 1 : index
    %c0_447 = arith.constant 0 : index
    %c0_448 = arith.constant 0 : index
    %364 = vector.load %arg8[%c0_445, %c1_446, %c0_447, %c0_448] : memref<3x3x64x128xf32, #tpu.memory_space<vmem>>, vector<1x1x64x128xf32>
    %365 = vector.shape_cast %364 : vector<1x1x64x128xf32> to vector<64x128xf32>
    %cst_449 = arith.constant dense<0.000000e+00> : vector<4x128xf32>
    %366 = tpu.matmul %363, %365, %cst_449 {dimension_numbers = #tpu.dot_dimension_numbers<[1], [0], [0], [1], [0, 0, 1, 1], [], []>} : vector<4x64xf32>, vector<64x128xf32>, vector<4x128xf32> -> vector<4x128xf32>
    %367 = arith.addf %361, %366 : vector<4x128xf32>
    %c3_450 = arith.constant 3 : index
    %c9_451 = arith.constant 9 : index
    %c0_452 = arith.constant 0 : index
    %368 = vector.load %arg17[%c3_450, %c9_451, %c0_452] : memref<6x13x64xf32, #tpu.memory_space<vmem>>, vector<1x4x64xf32>
    %369 = vector.shape_cast %368 : vector<1x4x64xf32> to vector<4x64xf32>
    %c0_453 = arith.constant 0 : index
    %c2_454 = arith.constant 2 : index
    %c0_455 = arith.constant 0 : index
    %c0_456 = arith.constant 0 : index
    %370 = vector.load %arg8[%c0_453, %c2_454, %c0_455, %c0_456] : memref<3x3x64x128xf32, #tpu.memory_space<vmem>>, vector<1x1x64x128xf32>
    %371 = vector.shape_cast %370 : vector<1x1x64x128xf32> to vector<64x128xf32>
    %cst_457 = arith.constant dense<0.000000e+00> : vector<4x128xf32>
    %372 = tpu.matmul %369, %371, %cst_457 {dimension_numbers = #tpu.dot_dimension_numbers<[1], [0], [0], [1], [0, 0, 1, 1], [], []>} : vector<4x64xf32>, vector<64x128xf32>, vector<4x128xf32> -> vector<4x128xf32>
    %373 = arith.addf %367, %372 : vector<4x128xf32>
    %c4_458 = arith.constant 4 : index
    %c7_459 = arith.constant 7 : index
    %c0_460 = arith.constant 0 : index
    %374 = vector.load %arg17[%c4_458, %c7_459, %c0_460] : memref<6x13x64xf32, #tpu.memory_space<vmem>>, vector<1x4x64xf32>
    %375 = vector.shape_cast %374 : vector<1x4x64xf32> to vector<4x64xf32>
    %c1_461 = arith.constant 1 : index
    %c0_462 = arith.constant 0 : index
    %c0_463 = arith.constant 0 : index
    %c0_464 = arith.constant 0 : index
    %376 = vector.load %arg8[%c1_461, %c0_462, %c0_463, %c0_464] : memref<3x3x64x128xf32, #tpu.memory_space<vmem>>, vector<1x1x64x128xf32>
    %377 = vector.shape_cast %376 : vector<1x1x64x128xf32> to vector<64x128xf32>
    %cst_465 = arith.constant dense<0.000000e+00> : vector<4x128xf32>
    %378 = tpu.matmul %375, %377, %cst_465 {dimension_numbers = #tpu.dot_dimension_numbers<[1], [0], [0], [1], [0, 0, 1, 1], [], []>} : vector<4x64xf32>, vector<64x128xf32>, vector<4x128xf32> -> vector<4x128xf32>
    %379 = arith.addf %373, %378 : vector<4x128xf32>
    %c4_466 = arith.constant 4 : index
    %c8_467 = arith.constant 8 : index
    %c0_468 = arith.constant 0 : index
    %380 = vector.load %arg17[%c4_466, %c8_467, %c0_468] : memref<6x13x64xf32, #tpu.memory_space<vmem>>, vector<1x4x64xf32>
    %381 = vector.shape_cast %380 : vector<1x4x64xf32> to vector<4x64xf32>
    %c1_469 = arith.constant 1 : index
    %c1_470 = arith.constant 1 : index
    %c0_471 = arith.constant 0 : index
    %c0_472 = arith.constant 0 : index
    %382 = vector.load %arg8[%c1_469, %c1_470, %c0_471, %c0_472] : memref<3x3x64x128xf32, #tpu.memory_space<vmem>>, vector<1x1x64x128xf32>
    %383 = vector.shape_cast %382 : vector<1x1x64x128xf32> to vector<64x128xf32>
    %cst_473 = arith.constant dense<0.000000e+00> : vector<4x128xf32>
    %384 = tpu.matmul %381, %383, %cst_473 {dimension_numbers = #tpu.dot_dimension_numbers<[1], [0], [0], [1], [0, 0, 1, 1], [], []>} : vector<4x64xf32>, vector<64x128xf32>, vector<4x128xf32> -> vector<4x128xf32>
    %385 = arith.addf %379, %384 : vector<4x128xf32>
    %c4_474 = arith.constant 4 : index
    %c9_475 = arith.constant 9 : index
    %c0_476 = arith.constant 0 : index
    %386 = vector.load %arg17[%c4_474, %c9_475, %c0_476] : memref<6x13x64xf32, #tpu.memory_space<vmem>>, vector<1x4x64xf32>
    %387 = vector.shape_cast %386 : vector<1x4x64xf32> to vector<4x64xf32>
    %c1_477 = arith.constant 1 : index
    %c2_478 = arith.constant 2 : index
    %c0_479 = arith.constant 0 : index
    %c0_480 = arith.constant 0 : index
    %388 = vector.load %arg8[%c1_477, %c2_478, %c0_479, %c0_480] : memref<3x3x64x128xf32, #tpu.memory_space<vmem>>, vector<1x1x64x128xf32>
    %389 = vector.shape_cast %388 : vector<1x1x64x128xf32> to vector<64x128xf32>
    %cst_481 = arith.constant dense<0.000000e+00> : vector<4x128xf32>
    %390 = tpu.matmul %387, %389, %cst_481 {dimension_numbers = #tpu.dot_dimension_numbers<[1], [0], [0], [1], [0, 0, 1, 1], [], []>} : vector<4x64xf32>, vector<64x128xf32>, vector<4x128xf32> -> vector<4x128xf32>
    %391 = arith.addf %385, %390 : vector<4x128xf32>
    %c5 = arith.constant 5 : index
    %c7_482 = arith.constant 7 : index
    %c0_483 = arith.constant 0 : index
    %392 = vector.load %arg17[%c5, %c7_482, %c0_483] : memref<6x13x64xf32, #tpu.memory_space<vmem>>, vector<1x4x64xf32>
    %393 = vector.shape_cast %392 : vector<1x4x64xf32> to vector<4x64xf32>
    %c2_484 = arith.constant 2 : index
    %c0_485 = arith.constant 0 : index
    %c0_486 = arith.constant 0 : index
    %c0_487 = arith.constant 0 : index
    %394 = vector.load %arg8[%c2_484, %c0_485, %c0_486, %c0_487] : memref<3x3x64x128xf32, #tpu.memory_space<vmem>>, vector<1x1x64x128xf32>
    %395 = vector.shape_cast %394 : vector<1x1x64x128xf32> to vector<64x128xf32>
    %cst_488 = arith.constant dense<0.000000e+00> : vector<4x128xf32>
    %396 = tpu.matmul %393, %395, %cst_488 {dimension_numbers = #tpu.dot_dimension_numbers<[1], [0], [0], [1], [0, 0, 1, 1], [], []>} : vector<4x64xf32>, vector<64x128xf32>, vector<4x128xf32> -> vector<4x128xf32>
    %397 = arith.addf %391, %396 : vector<4x128xf32>
    %c5_489 = arith.constant 5 : index
    %c8_490 = arith.constant 8 : index
    %c0_491 = arith.constant 0 : index
    %398 = vector.load %arg17[%c5_489, %c8_490, %c0_491] : memref<6x13x64xf32, #tpu.memory_space<vmem>>, vector<1x4x64xf32>
    %399 = vector.shape_cast %398 : vector<1x4x64xf32> to vector<4x64xf32>
    %c2_492 = arith.constant 2 : index
    %c1_493 = arith.constant 1 : index
    %c0_494 = arith.constant 0 : index
    %c0_495 = arith.constant 0 : index
    %400 = vector.load %arg8[%c2_492, %c1_493, %c0_494, %c0_495] : memref<3x3x64x128xf32, #tpu.memory_space<vmem>>, vector<1x1x64x128xf32>
    %401 = vector.shape_cast %400 : vector<1x1x64x128xf32> to vector<64x128xf32>
    %cst_496 = arith.constant dense<0.000000e+00> : vector<4x128xf32>
    %402 = tpu.matmul %399, %401, %cst_496 {dimension_numbers = #tpu.dot_dimension_numbers<[1], [0], [0], [1], [0, 0, 1, 1], [], []>} : vector<4x64xf32>, vector<64x128xf32>, vector<4x128xf32> -> vector<4x128xf32>
    %403 = arith.addf %397, %402 : vector<4x128xf32>
    %c5_497 = arith.constant 5 : index
    %c9_498 = arith.constant 9 : index
    %c0_499 = arith.constant 0 : index
    %404 = vector.load %arg17[%c5_497, %c9_498, %c0_499] : memref<6x13x64xf32, #tpu.memory_space<vmem>>, vector<1x4x64xf32>
    %405 = vector.shape_cast %404 : vector<1x4x64xf32> to vector<4x64xf32>
    %c2_500 = arith.constant 2 : index
    %c2_501 = arith.constant 2 : index
    %c0_502 = arith.constant 0 : index
    %c0_503 = arith.constant 0 : index
    %406 = vector.load %arg8[%c2_500, %c2_501, %c0_502, %c0_503] : memref<3x3x64x128xf32, #tpu.memory_space<vmem>>, vector<1x1x64x128xf32>
    %407 = vector.shape_cast %406 : vector<1x1x64x128xf32> to vector<64x128xf32>
    %cst_504 = arith.constant dense<0.000000e+00> : vector<4x128xf32>
    %408 = tpu.matmul %405, %407, %cst_504 {dimension_numbers = #tpu.dot_dimension_numbers<[1], [0], [0], [1], [0, 0, 1, 1], [], []>} : vector<4x64xf32>, vector<64x128xf32>, vector<4x128xf32> -> vector<4x128xf32>
    %409 = arith.addf %403, %408 : vector<4x128xf32>
    %c0_505 = arith.constant 0 : index
    %c0_506 = arith.constant 0 : index
    %410 = vector.load %arg9[%c0_505, %c0_506] : memref<1x128xf32, #tpu.memory_space<vmem>>, vector<1x128xf32>
    %411 = vector.broadcast %410 : vector<1x128xf32> to vector<4x128xf32>
    %412 = arith.mulf %409, %411 : vector<4x128xf32>
    %c0_507 = arith.constant 0 : index
    %c0_508 = arith.constant 0 : index
    %413 = vector.load %arg10[%c0_507, %c0_508] : memref<1x128xf32, #tpu.memory_space<vmem>>, vector<1x128xf32>
    %414 = vector.broadcast %413 : vector<1x128xf32> to vector<4x128xf32>
    %415 = arith.addf %412, %414 : vector<4x128xf32>
    %cst_509 = arith.constant 0.000000e+00 : f32
    %416 = vector.broadcast %cst_509 : f32 to vector<4x128xf32>
    %417 = arith.maximumf %415, %416 : vector<4x128xf32>
    %c3_510 = arith.constant 3 : index
    %c0_511 = arith.constant 0 : index
    %c0_512 = arith.constant 0 : index
    %418 = vector.load %arg21[%c3_510, %c0_511, %c0_512] : memref<4x4x128xf32, #tpu.memory_space<vmem>>, vector<1x4x128xf32>
    %419 = vector.shape_cast %418 : vector<1x4x128xf32> to vector<4x128xf32>
    %420 = vector.shape_cast %417 : vector<4x128xf32> to vector<1x4x128xf32>
    tpu.vector_store %arg21[%c3_510, %c0_511, %c0_512], %420 {strides = array<i32>} : memref<4x4x128xf32, #tpu.memory_space<vmem>>, vector<1x4x128xf32>,
    %c0_513 = arith.constant 0 : index
    %c0_514 = arith.constant 0 : index
    %c0_515 = arith.constant 0 : index
    %421 = tpu.strided_load %arg21[%c0_513, %c0_514, %c0_515] {strides = array<i32: 2, 1, 1>} : memref<4x4x128xf32, #tpu.memory_space<vmem>>, vector<2x4x128xf32>
    %c1_516 = arith.constant 1 : index
    %c0_517 = arith.constant 0 : index
    %c0_518 = arith.constant 0 : index
    %422 = tpu.strided_load %arg21[%c1_516, %c0_517, %c0_518] {strides = array<i32: 2, 1, 1>} : memref<4x4x128xf32, #tpu.memory_space<vmem>>, vector<2x4x128xf32>
    %423 = arith.maximumf %421, %422 : vector<2x4x128xf32>
    %c0_519 = arith.constant 0 : index
    %c0_520 = arith.constant 0 : index
    %c0_521 = arith.constant 0 : index
    %424 = vector.load %arg22[%c0_519, %c0_520, %c0_521] : memref<2x4x128xf32, #tpu.memory_space<vmem>>, vector<2x4x128xf32>
    tpu.vector_store %arg22[%c0_519, %c0_520, %c0_521], %423 {strides = array<i32>} : memref<2x4x128xf32, #tpu.memory_space<vmem>>, vector<2x4x128xf32>,
    %c0_522 = arith.constant 0 : index
    %c0_523 = arith.constant 0 : index
    %c0_524 = arith.constant 0 : index
    %425 = tpu.strided_load %arg22[%c0_522, %c0_523, %c0_524] {strides = array<i32: 1, 2, 1>} : memref<2x4x128xf32, #tpu.memory_space<vmem>>, vector<2x2x128xf32>
    %c0_525 = arith.constant 0 : index
    %c1_526 = arith.constant 1 : index
    %c0_527 = arith.constant 0 : index
    %426 = tpu.strided_load %arg22[%c0_525, %c1_526, %c0_527] {strides = array<i32: 1, 2, 1>} : memref<2x4x128xf32, #tpu.memory_space<vmem>>, vector<2x2x128xf32>
    %427 = arith.maximumf %425, %426 : vector<2x2x128xf32>
    %cst_528 = arith.constant 0.000000e+00 : f32
    %428 = vector.broadcast %cst_528 : f32 to vector<4x11x128xf32>
    %c0_529 = arith.constant 0 : index
    %c0_530 = arith.constant 0 : index
    %c0_531 = arith.constant 0 : index
    %429 = vector.load %arg18[%c0_529, %c0_530, %c0_531] : memref<4x11x128xf32, #tpu.memory_space<vmem>>, vector<4x11x128xf32>
    tpu.vector_store %arg18[%c0_529, %c0_530, %c0_531], %428 {strides = array<i32>} : memref<4x11x128xf32, #tpu.memory_space<vmem>>, vector<4x11x128xf32>,
    %c1_532 = arith.constant 1 : index
    %c8_533 = arith.constant 8 : index
    %c0_534 = arith.constant 0 : index
    %430 = vector.load %arg18[%c1_532, %c8_533, %c0_534] : memref<4x11x128xf32, #tpu.memory_space<vmem>>, vector<2x2x128xf32>
    tpu.vector_store %arg18[%c1_532, %c8_533, %c0_534], %427 {strides = array<i32>} : memref<4x11x128xf32, #tpu.memory_space<vmem>>, vector<2x2x128xf32>,
    %cst_535 = arith.constant 0.000000e+00 : f32
    %431 = vector.broadcast %cst_535 : f32 to vector<21x256xf32>
    %cst_536 = arith.constant 0.000000e+00 : f32
    %432 = vector.broadcast %cst_536 : f32 to vector<21x2xf32>
    %c0_537 = arith.constant 0 : index
    %c7_538 = arith.constant 7 : index
    %c0_539 = arith.constant 0 : index
    %433 = vector.load %arg18[%c0_537, %c7_538, %c0_539] : memref<4x11x128xf32, #tpu.memory_space<vmem>>, vector<1x2x128xf32>
    %434 = vector.shape_cast %433 : vector<1x2x128xf32> to vector<2x128xf32>
    %c0_540 = arith.constant 0 : index
    %c0_541 = arith.constant 0 : index
    %c0_542 = arith.constant 0 : index
    %c0_543 = arith.constant 0 : index
    %435 = vector.load %arg11[%c0_540, %c0_541, %c0_542, %c0_543] : memref<3x3x21x128xf32, #tpu.memory_space<vmem>>, vector<1x1x21x128xf32>
    %436 = vector.shape_cast %435 : vector<1x1x21x128xf32> to vector<21x128xf32>
    %cst_544 = arith.constant dense<0.000000e+00> : vector<21x2xf32>
    %437 = tpu.matmul %436, %434, %cst_544 {dimension_numbers = #tpu.dot_dimension_numbers<[1], [1], [0], [0], [0, 0, 1, 0], [], []>} : vector<21x128xf32>, vector<2x128xf32>, vector<21x2xf32> -> vector<21x2xf32>
    %438 = arith.addf %432, %437 : vector<21x2xf32>
    %c0_545 = arith.constant 0 : index
    %c8_546 = arith.constant 8 : index
    %c0_547 = arith.constant 0 : index
    %439 = vector.load %arg18[%c0_545, %c8_546, %c0_547] : memref<4x11x128xf32, #tpu.memory_space<vmem>>, vector<1x2x128xf32>
    %440 = vector.shape_cast %439 : vector<1x2x128xf32> to vector<2x128xf32>
    %c0_548 = arith.constant 0 : index
    %c1_549 = arith.constant 1 : index
    %c0_550 = arith.constant 0 : index
    %c0_551 = arith.constant 0 : index
    %441 = vector.load %arg11[%c0_548, %c1_549, %c0_550, %c0_551] : memref<3x3x21x128xf32, #tpu.memory_space<vmem>>, vector<1x1x21x128xf32>
    %442 = vector.shape_cast %441 : vector<1x1x21x128xf32> to vector<21x128xf32>
    %cst_552 = arith.constant dense<0.000000e+00> : vector<21x2xf32>
    %443 = tpu.matmul %442, %440, %cst_552 {dimension_numbers = #tpu.dot_dimension_numbers<[1], [1], [0], [0], [0, 0, 1, 0], [], []>} : vector<21x128xf32>, vector<2x128xf32>, vector<21x2xf32> -> vector<21x2xf32>
    %444 = arith.addf %438, %443 : vector<21x2xf32>
    %c0_553 = arith.constant 0 : index
    %c9_554 = arith.constant 9 : index
    %c0_555 = arith.constant 0 : index
    %445 = vector.load %arg18[%c0_553, %c9_554, %c0_555] : memref<4x11x128xf32, #tpu.memory_space<vmem>>, vector<1x2x128xf32>
    %446 = vector.shape_cast %445 : vector<1x2x128xf32> to vector<2x128xf32>
    %c0_556 = arith.constant 0 : index
    %c2_557 = arith.constant 2 : index
    %c0_558 = arith.constant 0 : index
    %c0_559 = arith.constant 0 : index
    %447 = vector.load %arg11[%c0_556, %c2_557, %c0_558, %c0_559] : memref<3x3x21x128xf32, #tpu.memory_space<vmem>>, vector<1x1x21x128xf32>
    %448 = vector.shape_cast %447 : vector<1x1x21x128xf32> to vector<21x128xf32>
    %cst_560 = arith.constant dense<0.000000e+00> : vector<21x2xf32>
    %449 = tpu.matmul %448, %446, %cst_560 {dimension_numbers = #tpu.dot_dimension_numbers<[1], [1], [0], [0], [0, 0, 1, 0], [], []>} : vector<21x128xf32>, vector<2x128xf32>, vector<21x2xf32> -> vector<21x2xf32>
    %450 = arith.addf %444, %449 : vector<21x2xf32>
    %c1_561 = arith.constant 1 : index
    %c7_562 = arith.constant 7 : index
    %c0_563 = arith.constant 0 : index
    %451 = vector.load %arg18[%c1_561, %c7_562, %c0_563] : memref<4x11x128xf32, #tpu.memory_space<vmem>>, vector<1x2x128xf32>
    %452 = vector.shape_cast %451 : vector<1x2x128xf32> to vector<2x128xf32>
    %c1_564 = arith.constant 1 : index
    %c0_565 = arith.constant 0 : index
    %c0_566 = arith.constant 0 : index
    %c0_567 = arith.constant 0 : index
    %453 = vector.load %arg11[%c1_564, %c0_565, %c0_566, %c0_567] : memref<3x3x21x128xf32, #tpu.memory_space<vmem>>, vector<1x1x21x128xf32>
    %454 = vector.shape_cast %453 : vector<1x1x21x128xf32> to vector<21x128xf32>
    %cst_568 = arith.constant dense<0.000000e+00> : vector<21x2xf32>
    %455 = tpu.matmul %454, %452, %cst_568 {dimension_numbers = #tpu.dot_dimension_numbers<[1], [1], [0], [0], [0, 0, 1, 0], [], []>} : vector<21x128xf32>, vector<2x128xf32>, vector<21x2xf32> -> vector<21x2xf32>
    %456 = arith.addf %450, %455 : vector<21x2xf32>
    %c1_569 = arith.constant 1 : index
    %c8_570 = arith.constant 8 : index
    %c0_571 = arith.constant 0 : index
    %457 = vector.load %arg18[%c1_569, %c8_570, %c0_571] : memref<4x11x128xf32, #tpu.memory_space<vmem>>, vector<1x2x128xf32>
    %458 = vector.shape_cast %457 : vector<1x2x128xf32> to vector<2x128xf32>
    %c1_572 = arith.constant 1 : index
    %c1_573 = arith.constant 1 : index
    %c0_574 = arith.constant 0 : index
    %c0_575 = arith.constant 0 : index
    %459 = vector.load %arg11[%c1_572, %c1_573, %c0_574, %c0_575] : memref<3x3x21x128xf32, #tpu.memory_space<vmem>>, vector<1x1x21x128xf32>
    %460 = vector.shape_cast %459 : vector<1x1x21x128xf32> to vector<21x128xf32>
    %cst_576 = arith.constant dense<0.000000e+00> : vector<21x2xf32>
    %461 = tpu.matmul %460, %458, %cst_576 {dimension_numbers = #tpu.dot_dimension_numbers<[1], [1], [0], [0], [0, 0, 1, 0], [], []>} : vector<21x128xf32>, vector<2x128xf32>, vector<21x2xf32> -> vector<21x2xf32>
    %462 = arith.addf %456, %461 : vector<21x2xf32>
    %c1_577 = arith.constant 1 : index
    %c9_578 = arith.constant 9 : index
    %c0_579 = arith.constant 0 : index
    %463 = vector.load %arg18[%c1_577, %c9_578, %c0_579] : memref<4x11x128xf32, #tpu.memory_space<vmem>>, vector<1x2x128xf32>
    %464 = vector.shape_cast %463 : vector<1x2x128xf32> to vector<2x128xf32>
    %c1_580 = arith.constant 1 : index
    %c2_581 = arith.constant 2 : index
    %c0_582 = arith.constant 0 : index
    %c0_583 = arith.constant 0 : index
    %465 = vector.load %arg11[%c1_580, %c2_581, %c0_582, %c0_583] : memref<3x3x21x128xf32, #tpu.memory_space<vmem>>, vector<1x1x21x128xf32>
    %466 = vector.shape_cast %465 : vector<1x1x21x128xf32> to vector<21x128xf32>
    %cst_584 = arith.constant dense<0.000000e+00> : vector<21x2xf32>
    %467 = tpu.matmul %466, %464, %cst_584 {dimension_numbers = #tpu.dot_dimension_numbers<[1], [1], [0], [0], [0, 0, 1, 0], [], []>} : vector<21x128xf32>, vector<2x128xf32>, vector<21x2xf32> -> vector<21x2xf32>
    %468 = arith.addf %462, %467 : vector<21x2xf32>
    %c2_585 = arith.constant 2 : index
    %c7_586 = arith.constant 7 : index
    %c0_587 = arith.constant 0 : index
    %469 = vector.load %arg18[%c2_585, %c7_586, %c0_587] : memref<4x11x128xf32, #tpu.memory_space<vmem>>, vector<1x2x128xf32>
    %470 = vector.shape_cast %469 : vector<1x2x128xf32> to vector<2x128xf32>
    %c2_588 = arith.constant 2 : index
    %c0_589 = arith.constant 0 : index
    %c0_590 = arith.constant 0 : index
    %c0_591 = arith.constant 0 : index
    %471 = vector.load %arg11[%c2_588, %c0_589, %c0_590, %c0_591] : memref<3x3x21x128xf32, #tpu.memory_space<vmem>>, vector<1x1x21x128xf32>
    %472 = vector.shape_cast %471 : vector<1x1x21x128xf32> to vector<21x128xf32>
    %cst_592 = arith.constant dense<0.000000e+00> : vector<21x2xf32>
    %473 = tpu.matmul %472, %470, %cst_592 {dimension_numbers = #tpu.dot_dimension_numbers<[1], [1], [0], [0], [0, 0, 1, 0], [], []>} : vector<21x128xf32>, vector<2x128xf32>, vector<21x2xf32> -> vector<21x2xf32>
    %474 = arith.addf %468, %473 : vector<21x2xf32>
    %c2_593 = arith.constant 2 : index
    %c8_594 = arith.constant 8 : index
    %c0_595 = arith.constant 0 : index
    %475 = vector.load %arg18[%c2_593, %c8_594, %c0_595] : memref<4x11x128xf32, #tpu.memory_space<vmem>>, vector<1x2x128xf32>
    %476 = vector.shape_cast %475 : vector<1x2x128xf32> to vector<2x128xf32>
    %c2_596 = arith.constant 2 : index
    %c1_597 = arith.constant 1 : index
    %c0_598 = arith.constant 0 : index
    %c0_599 = arith.constant 0 : index
    %477 = vector.load %arg11[%c2_596, %c1_597, %c0_598, %c0_599] : memref<3x3x21x128xf32, #tpu.memory_space<vmem>>, vector<1x1x21x128xf32>
    %478 = vector.shape_cast %477 : vector<1x1x21x128xf32> to vector<21x128xf32>
    %cst_600 = arith.constant dense<0.000000e+00> : vector<21x2xf32>
    %479 = tpu.matmul %478, %476, %cst_600 {dimension_numbers = #tpu.dot_dimension_numbers<[1], [1], [0], [0], [0, 0, 1, 0], [], []>} : vector<21x128xf32>, vector<2x128xf32>, vector<21x2xf32> -> vector<21x2xf32>
    %480 = arith.addf %474, %479 : vector<21x2xf32>
    %c2_601 = arith.constant 2 : index
    %c9_602 = arith.constant 9 : index
    %c0_603 = arith.constant 0 : index
    %481 = vector.load %arg18[%c2_601, %c9_602, %c0_603] : memref<4x11x128xf32, #tpu.memory_space<vmem>>, vector<1x2x128xf32>
    %482 = vector.shape_cast %481 : vector<1x2x128xf32> to vector<2x128xf32>
    %c2_604 = arith.constant 2 : index
    %c2_605 = arith.constant 2 : index
    %c0_606 = arith.constant 0 : index
    %c0_607 = arith.constant 0 : index
    %483 = vector.load %arg11[%c2_604, %c2_605, %c0_606, %c0_607] : memref<3x3x21x128xf32, #tpu.memory_space<vmem>>, vector<1x1x21x128xf32>
    %484 = vector.shape_cast %483 : vector<1x1x21x128xf32> to vector<21x128xf32>
    %cst_608 = arith.constant dense<0.000000e+00> : vector<21x2xf32>
    %485 = tpu.matmul %484, %482, %cst_608 {dimension_numbers = #tpu.dot_dimension_numbers<[1], [1], [0], [0], [0, 0, 1, 0], [], []>} : vector<21x128xf32>, vector<2x128xf32>, vector<21x2xf32> -> vector<21x2xf32>
    %486 = arith.addf %480, %485 : vector<21x2xf32>
    %c0_609 = arith.constant 0 : index
    %c0_610 = arith.constant 0 : index
    %487 = vector.load %arg12[%c0_609, %c0_610] : memref<21x1xf32, #tpu.memory_space<vmem>>, vector<21x1xf32>
    %488 = vector.broadcast %487 : vector<21x1xf32> to vector<21x2xf32>
    %489 = arith.addf %486, %488 : vector<21x2xf32>
    %c0_611 = arith.constant 0 : index
    %c0_612 = arith.constant 0 : index
    %c0_613 = arith.constant 0 : index
    %490 = vector.load %arg13[%c0_611, %c0_612, %c0_613] : memref<2x2x256xf32, #tpu.memory_space<vmem>>, vector<1x2x256xf32>
    %491 = vector.shape_cast %490 : vector<1x2x256xf32> to vector<2x256xf32>
    %cst_614 = arith.constant dense<0.000000e+00> : vector<21x256xf32>
    %492 = tpu.matmul %489, %491, %cst_614 {dimension_numbers = #tpu.dot_dimension_numbers<[1], [0], [0], [1], [0, 0, 1, 1], [], []>} : vector<21x2xf32>, vector<2x256xf32>, vector<21x256xf32> -> vector<21x256xf32>
    %493 = arith.addf %431, %492 : vector<21x256xf32>
    %cst_615 = arith.constant 0.000000e+00 : f32
    %494 = vector.broadcast %cst_615 : f32 to vector<21x2xf32>
    %c1_616 = arith.constant 1 : index
    %c7_617 = arith.constant 7 : index
    %c0_618 = arith.constant 0 : index
    %495 = vector.load %arg18[%c1_616, %c7_617, %c0_618] : memref<4x11x128xf32, #tpu.memory_space<vmem>>, vector<1x2x128xf32>
    %496 = vector.shape_cast %495 : vector<1x2x128xf32> to vector<2x128xf32>
    %c0_619 = arith.constant 0 : index
    %c0_620 = arith.constant 0 : index
    %c0_621 = arith.constant 0 : index
    %c0_622 = arith.constant 0 : index
    %497 = vector.load %arg11[%c0_619, %c0_620, %c0_621, %c0_622] : memref<3x3x21x128xf32, #tpu.memory_space<vmem>>, vector<1x1x21x128xf32>
    %498 = vector.shape_cast %497 : vector<1x1x21x128xf32> to vector<21x128xf32>
    %cst_623 = arith.constant dense<0.000000e+00> : vector<21x2xf32>
    %499 = tpu.matmul %498, %496, %cst_623 {dimension_numbers = #tpu.dot_dimension_numbers<[1], [1], [0], [0], [0, 0, 1, 0], [], []>} : vector<21x128xf32>, vector<2x128xf32>, vector<21x2xf32> -> vector<21x2xf32>
    %500 = arith.addf %494, %499 : vector<21x2xf32>
    %c1_624 = arith.constant 1 : index
    %c8_625 = arith.constant 8 : index
    %c0_626 = arith.constant 0 : index
    %501 = vector.load %arg18[%c1_624, %c8_625, %c0_626] : memref<4x11x128xf32, #tpu.memory_space<vmem>>, vector<1x2x128xf32>
    %502 = vector.shape_cast %501 : vector<1x2x128xf32> to vector<2x128xf32>
    %c0_627 = arith.constant 0 : index
    %c1_628 = arith.constant 1 : index
    %c0_629 = arith.constant 0 : index
    %c0_630 = arith.constant 0 : index
    %503 = vector.load %arg11[%c0_627, %c1_628, %c0_629, %c0_630] : memref<3x3x21x128xf32, #tpu.memory_space<vmem>>, vector<1x1x21x128xf32>
    %504 = vector.shape_cast %503 : vector<1x1x21x128xf32> to vector<21x128xf32>
    %cst_631 = arith.constant dense<0.000000e+00> : vector<21x2xf32>
    %505 = tpu.matmul %504, %502, %cst_631 {dimension_numbers = #tpu.dot_dimension_numbers<[1], [1], [0], [0], [0, 0, 1, 0], [], []>} : vector<21x128xf32>, vector<2x128xf32>, vector<21x2xf32> -> vector<21x2xf32>
    %506 = arith.addf %500, %505 : vector<21x2xf32>
    %c1_632 = arith.constant 1 : index
    %c9_633 = arith.constant 9 : index
    %c0_634 = arith.constant 0 : index
    %507 = vector.load %arg18[%c1_632, %c9_633, %c0_634] : memref<4x11x128xf32, #tpu.memory_space<vmem>>, vector<1x2x128xf32>
    %508 = vector.shape_cast %507 : vector<1x2x128xf32> to vector<2x128xf32>
    %c0_635 = arith.constant 0 : index
    %c2_636 = arith.constant 2 : index
    %c0_637 = arith.constant 0 : index
    %c0_638 = arith.constant 0 : index
    %509 = vector.load %arg11[%c0_635, %c2_636, %c0_637, %c0_638] : memref<3x3x21x128xf32, #tpu.memory_space<vmem>>, vector<1x1x21x128xf32>
    %510 = vector.shape_cast %509 : vector<1x1x21x128xf32> to vector<21x128xf32>
    %cst_639 = arith.constant dense<0.000000e+00> : vector<21x2xf32>
    %511 = tpu.matmul %510, %508, %cst_639 {dimension_numbers = #tpu.dot_dimension_numbers<[1], [1], [0], [0], [0, 0, 1, 0], [], []>} : vector<21x128xf32>, vector<2x128xf32>, vector<21x2xf32> -> vector<21x2xf32>
    %512 = arith.addf %506, %511 : vector<21x2xf32>
    %c2_640 = arith.constant 2 : index
    %c7_641 = arith.constant 7 : index
    %c0_642 = arith.constant 0 : index
    %513 = vector.load %arg18[%c2_640, %c7_641, %c0_642] : memref<4x11x128xf32, #tpu.memory_space<vmem>>, vector<1x2x128xf32>
    %514 = vector.shape_cast %513 : vector<1x2x128xf32> to vector<2x128xf32>
    %c1_643 = arith.constant 1 : index
    %c0_644 = arith.constant 0 : index
    %c0_645 = arith.constant 0 : index
    %c0_646 = arith.constant 0 : index
    %515 = vector.load %arg11[%c1_643, %c0_644, %c0_645, %c0_646] : memref<3x3x21x128xf32, #tpu.memory_space<vmem>>, vector<1x1x21x128xf32>
    %516 = vector.shape_cast %515 : vector<1x1x21x128xf32> to vector<21x128xf32>
    %cst_647 = arith.constant dense<0.000000e+00> : vector<21x2xf32>
    %517 = tpu.matmul %516, %514, %cst_647 {dimension_numbers = #tpu.dot_dimension_numbers<[1], [1], [0], [0], [0, 0, 1, 0], [], []>} : vector<21x128xf32>, vector<2x128xf32>, vector<21x2xf32> -> vector<21x2xf32>
    %518 = arith.addf %512, %517 : vector<21x2xf32>
    %c2_648 = arith.constant 2 : index
    %c8_649 = arith.constant 8 : index
    %c0_650 = arith.constant 0 : index
    %519 = vector.load %arg18[%c2_648, %c8_649, %c0_650] : memref<4x11x128xf32, #tpu.memory_space<vmem>>, vector<1x2x128xf32>
    %520 = vector.shape_cast %519 : vector<1x2x128xf32> to vector<2x128xf32>
    %c1_651 = arith.constant 1 : index
    %c1_652 = arith.constant 1 : index
    %c0_653 = arith.constant 0 : index
    %c0_654 = arith.constant 0 : index
    %521 = vector.load %arg11[%c1_651, %c1_652, %c0_653, %c0_654] : memref<3x3x21x128xf32, #tpu.memory_space<vmem>>, vector<1x1x21x128xf32>
    %522 = vector.shape_cast %521 : vector<1x1x21x128xf32> to vector<21x128xf32>
    %cst_655 = arith.constant dense<0.000000e+00> : vector<21x2xf32>
    %523 = tpu.matmul %522, %520, %cst_655 {dimension_numbers = #tpu.dot_dimension_numbers<[1], [1], [0], [0], [0, 0, 1, 0], [], []>} : vector<21x128xf32>, vector<2x128xf32>, vector<21x2xf32> -> vector<21x2xf32>
    %524 = arith.addf %518, %523 : vector<21x2xf32>
    %c2_656 = arith.constant 2 : index
    %c9_657 = arith.constant 9 : index
    %c0_658 = arith.constant 0 : index
    %525 = vector.load %arg18[%c2_656, %c9_657, %c0_658] : memref<4x11x128xf32, #tpu.memory_space<vmem>>, vector<1x2x128xf32>
    %526 = vector.shape_cast %525 : vector<1x2x128xf32> to vector<2x128xf32>
    %c1_659 = arith.constant 1 : index
    %c2_660 = arith.constant 2 : index
    %c0_661 = arith.constant 0 : index
    %c0_662 = arith.constant 0 : index
    %527 = vector.load %arg11[%c1_659, %c2_660, %c0_661, %c0_662] : memref<3x3x21x128xf32, #tpu.memory_space<vmem>>, vector<1x1x21x128xf32>
    %528 = vector.shape_cast %527 : vector<1x1x21x128xf32> to vector<21x128xf32>
    %cst_663 = arith.constant dense<0.000000e+00> : vector<21x2xf32>
    %529 = tpu.matmul %528, %526, %cst_663 {dimension_numbers = #tpu.dot_dimension_numbers<[1], [1], [0], [0], [0, 0, 1, 0], [], []>} : vector<21x128xf32>, vector<2x128xf32>, vector<21x2xf32> -> vector<21x2xf32>
    %530 = arith.addf %524, %529 : vector<21x2xf32>
    %c3_664 = arith.constant 3 : index
    %c7_665 = arith.constant 7 : index
    %c0_666 = arith.constant 0 : index
    %531 = vector.load %arg18[%c3_664, %c7_665, %c0_666] : memref<4x11x128xf32, #tpu.memory_space<vmem>>, vector<1x2x128xf32>
    %532 = vector.shape_cast %531 : vector<1x2x128xf32> to vector<2x128xf32>
    %c2_667 = arith.constant 2 : index
    %c0_668 = arith.constant 0 : index
    %c0_669 = arith.constant 0 : index
    %c0_670 = arith.constant 0 : index
    %533 = vector.load %arg11[%c2_667, %c0_668, %c0_669, %c0_670] : memref<3x3x21x128xf32, #tpu.memory_space<vmem>>, vector<1x1x21x128xf32>
    %534 = vector.shape_cast %533 : vector<1x1x21x128xf32> to vector<21x128xf32>
    %cst_671 = arith.constant dense<0.000000e+00> : vector<21x2xf32>
    %535 = tpu.matmul %534, %532, %cst_671 {dimension_numbers = #tpu.dot_dimension_numbers<[1], [1], [0], [0], [0, 0, 1, 0], [], []>} : vector<21x128xf32>, vector<2x128xf32>, vector<21x2xf32> -> vector<21x2xf32>
    %536 = arith.addf %530, %535 : vector<21x2xf32>
    %c3_672 = arith.constant 3 : index
    %c8_673 = arith.constant 8 : index
    %c0_674 = arith.constant 0 : index
    %537 = vector.load %arg18[%c3_672, %c8_673, %c0_674] : memref<4x11x128xf32, #tpu.memory_space<vmem>>, vector<1x2x128xf32>
    %538 = vector.shape_cast %537 : vector<1x2x128xf32> to vector<2x128xf32>
    %c2_675 = arith.constant 2 : index
    %c1_676 = arith.constant 1 : index
    %c0_677 = arith.constant 0 : index
    %c0_678 = arith.constant 0 : index
    %539 = vector.load %arg11[%c2_675, %c1_676, %c0_677, %c0_678] : memref<3x3x21x128xf32, #tpu.memory_space<vmem>>, vector<1x1x21x128xf32>
    %540 = vector.shape_cast %539 : vector<1x1x21x128xf32> to vector<21x128xf32>
    %cst_679 = arith.constant dense<0.000000e+00> : vector<21x2xf32>
    %541 = tpu.matmul %540, %538, %cst_679 {dimension_numbers = #tpu.dot_dimension_numbers<[1], [1], [0], [0], [0, 0, 1, 0], [], []>} : vector<21x128xf32>, vector<2x128xf32>, vector<21x2xf32> -> vector<21x2xf32>
    %542 = arith.addf %536, %541 : vector<21x2xf32>
    %c3_680 = arith.constant 3 : index
    %c9_681 = arith.constant 9 : index
    %c0_682 = arith.constant 0 : index
    %543 = vector.load %arg18[%c3_680, %c9_681, %c0_682] : memref<4x11x128xf32, #tpu.memory_space<vmem>>, vector<1x2x128xf32>
    %544 = vector.shape_cast %543 : vector<1x2x128xf32> to vector<2x128xf32>
    %c2_683 = arith.constant 2 : index
    %c2_684 = arith.constant 2 : index
    %c0_685 = arith.constant 0 : index
    %c0_686 = arith.constant 0 : index
    %545 = vector.load %arg11[%c2_683, %c2_684, %c0_685, %c0_686] : memref<3x3x21x128xf32, #tpu.memory_space<vmem>>, vector<1x1x21x128xf32>
    %546 = vector.shape_cast %545 : vector<1x1x21x128xf32> to vector<21x128xf32>
    %cst_687 = arith.constant dense<0.000000e+00> : vector<21x2xf32>
    %547 = tpu.matmul %546, %544, %cst_687 {dimension_numbers = #tpu.dot_dimension_numbers<[1], [1], [0], [0], [0, 0, 1, 0], [], []>} : vector<21x128xf32>, vector<2x128xf32>, vector<21x2xf32> -> vector<21x2xf32>
    %548 = arith.addf %542, %547 : vector<21x2xf32>
    %c0_688 = arith.constant 0 : index
    %c0_689 = arith.constant 0 : index
    %549 = vector.load %arg12[%c0_688, %c0_689] : memref<21x1xf32, #tpu.memory_space<vmem>>, vector<21x1xf32>
    %550 = vector.broadcast %549 : vector<21x1xf32> to vector<21x2xf32>
    %551 = arith.addf %548, %550 : vector<21x2xf32>
    %c1_690 = arith.constant 1 : index
    %c0_691 = arith.constant 0 : index
    %c0_692 = arith.constant 0 : index
    %552 = vector.load %arg13[%c1_690, %c0_691, %c0_692] : memref<2x2x256xf32, #tpu.memory_space<vmem>>, vector<1x2x256xf32>
    %553 = vector.shape_cast %552 : vector<1x2x256xf32> to vector<2x256xf32>
    %cst_693 = arith.constant dense<0.000000e+00> : vector<21x256xf32>
    %554 = tpu.matmul %551, %553, %cst_693 {dimension_numbers = #tpu.dot_dimension_numbers<[1], [0], [0], [1], [0, 0, 1, 1], [], []>} : vector<21x2xf32>, vector<2x256xf32>, vector<21x256xf32> -> vector<21x256xf32>
    %555 = arith.addf %493, %554 : vector<21x256xf32>
    %c0_694 = arith.constant 0 : index
    %c0_695 = arith.constant 0 : index
    %c0_696 = arith.constant 0 : index
    %556 = vector.load %arg14[%c0_694, %c0_695, %c0_696] : memref<1x21x256xf32, #tpu.memory_space<vmem>>, vector<1x21x256xf32>
    %557 = vector.shape_cast %556 : vector<1x21x256xf32> to vector<21x256xf32>
    %558 = vector.shape_cast %555 : vector<21x256xf32> to vector<1x21x256xf32>
    tpu.vector_store %arg14[%c0_694, %c0_695, %c0_696], %558 {strides = array<i32>} : memref<1x21x256xf32, #tpu.memory_space<vmem>>, vector<1x21x256xf32>,
    return
  }
  func.func @transform_0(%arg0: i32) -> (i32, i32, i32, i32) {
    %c0_i32 = arith.constant 0 : i32
    %c0_i32_0 = arith.constant 0 : i32
    %c0_i32_1 = arith.constant 0 : i32
    %c0_i32_2 = arith.constant 0 : i32
    return %arg0, %c0_i32, %c0_i32_0, %c0_i32_1 : i32, i32, i32, i32
  }
  func.func @transform_1(%arg0: i32) -> (i32, i32, i32, i32) {
    %c0_i32 = arith.constant 0 : i32
    %c0_i32_0 = arith.constant 0 : i32
    %c0_i32_1 = arith.constant 0 : i32
    %c0_i32_2 = arith.constant 0 : i32
    %c0_i32_3 = arith.constant 0 : i32
    return %c0_i32, %c0_i32_0, %c0_i32_1, %c0_i32_2 : i32, i32, i32, i32
  }
  func.func @transform_2(%arg0: i32) -> (i32, i32) {
    %c0_i32 = arith.constant 0 : i32
    %c0_i32_0 = arith.constant 0 : i32
    %c0_i32_1 = arith.constant 0 : i32
    return %c0_i32, %c0_i32_0 : i32, i32
  }
  func.func @transform_3(%arg0: i32) -> (i32, i32) {
    %c0_i32 = arith.constant 0 : i32
    %c0_i32_0 = arith.constant 0 : i32
    %c0_i32_1 = arith.constant 0 : i32
    return %c0_i32, %c0_i32_0 : i32, i32
  }
  func.func @transform_4(%arg0: i32) -> (i32, i32, i32, i32) {
    %c0_i32 = arith.constant 0 : i32
    %c0_i32_0 = arith.constant 0 : i32
    %c0_i32_1 = arith.constant 0 : i32
    %c0_i32_2 = arith.constant 0 : i32
    %c0_i32_3 = arith.constant 0 : i32
    return %c0_i32, %c0_i32_0, %c0_i32_1, %c0_i32_2 : i32, i32, i32, i32
  }
  func.func @transform_5(%arg0: i32) -> (i32, i32) {
    %c0_i32 = arith.constant 0 : i32
    %c0_i32_0 = arith.constant 0 : i32
    %c0_i32_1 = arith.constant 0 : i32
    return %c0_i32, %c0_i32_0 : i32, i32
  }
  func.func @transform_6(%arg0: i32) -> (i32, i32) {
    %c0_i32 = arith.constant 0 : i32
    %c0_i32_0 = arith.constant 0 : i32
    %c0_i32_1 = arith.constant 0 : i32
    return %c0_i32, %c0_i32_0 : i32, i32
  }
  func.func @transform_7(%arg0: i32) -> (i32, i32, i32, i32) {
    %c0_i32 = arith.constant 0 : i32
    %c0_i32_0 = arith.constant 0 : i32
    %c0_i32_1 = arith.constant 0 : i32
    %c0_i32_2 = arith.constant 0 : i32
    %c0_i32_3 = arith.constant 0 : i32
    return %c0_i32, %c0_i32_0, %c0_i32_1, %c0_i32_2 : i32, i32, i32, i32
  }
  func.func @transform_8(%arg0: i32) -> (i32, i32) {
    %c0_i32 = arith.constant 0 : i32
    %c0_i32_0 = arith.constant 0 : i32
    %c0_i32_1 = arith.constant 0 : i32
    return %c0_i32, %c0_i32_0 : i32, i32
  }
  func.func @transform_9(%arg0: i32) -> (i32, i32) {
    %c0_i32 = arith.constant 0 : i32
    %c0_i32_0 = arith.constant 0 : i32
    %c0_i32_1 = arith.constant 0 : i32
    return %c0_i32, %c0_i32_0 : i32, i32
  }
  func.func @transform_10(%arg0: i32) -> (i32, i32, i32, i32) {
    %c0_i32 = arith.constant 0 : i32
    %c0_i32_0 = arith.constant 0 : i32
    %c0_i32_1 = arith.constant 0 : i32
    %c0_i32_2 = arith.constant 0 : i32
    %c0_i32_3 = arith.constant 0 : i32
    return %c0_i32, %c0_i32_0, %c0_i32_1, %c0_i32_2 : i32, i32, i32, i32
  }
  func.func @transform_11(%arg0: i32) -> (i32, i32) {
    %c0_i32 = arith.constant 0 : i32
    %c0_i32_0 = arith.constant 0 : i32
    %c0_i32_1 = arith.constant 0 : i32
    return %c0_i32, %c0_i32_0 : i32, i32
  }
  func.func @transform_12(%arg0: i32) -> (i32, i32, i32) {
    %c0_i32 = arith.constant 0 : i32
    %c0_i32_0 = arith.constant 0 : i32
    %c0_i32_1 = arith.constant 0 : i32
    %c0_i32_2 = arith.constant 0 : i32
    return %c0_i32, %c0_i32_0, %c0_i32_1 : i32, i32, i32
  }
  func.func @transform_13(%arg0: i32) -> (i32, i32, i32) {
    %c0_i32 = arith.constant 0 : i32
    %c0_i32_0 = arith.constant 0 : i32
    %c0_i32_1 = arith.constant 0 : i32
    return %arg0, %c0_i32, %c0_i32_0 : i32, i32, i32
  }
}

</mosaic_0001>

<bundles_post_ra>
// kernel: small_scale_model.1
= control target key start
LH: loop header
LB: loop body
LE: loop exit
PB: predicated region body
PF: predicated region fallthrough
CT: control target
= control target key end

     0   :  { %18 = vsyncpa [#allocation11], 0  ;;  %s17438_s0 = inlined_call_operand.vmem [shape: f32[2,16,16,3], index: 0, kind: input, shape index: {}]   ;;  %s17439_s1 = inlined_call_operand.vmem [shape: f32[3,3,3,32], index: 1, kind: input, shape index: {}]   ;;  %s17440_s2 = inlined_call_operand.vmem [shape: f32[1,32], index: 2, kind: input, shape index: {}]   ;;  %s17441_s3 = inlined_call_operand.vmem [shape: f32[1,32], index: 3, kind: input, shape index: {}]   ;;  %s17442_s4 = inlined_call_operand.hbm [shape: f32[3,3,32,64], index: 4, kind: input, shape index: {}]   ;;  %s17443_s5 = inlined_call_operand.vmem [shape: f32[1,64], index: 5, kind: input, shape index: {}]   ;;  %s17444_s6 = inlined_call_operand.vmem [shape: f32[1,64], index: 6, kind: input, shape index: {}]   ;;  %s17445_s7 = inlined_call_operand.vmem [shape: f32[3,3,64,128], index: 7, kind: input, shape index: {}]   ;;  %s17446_s8 = inlined_call_operand.vmem [shape: f32[1,128], index: 8, kind: input, shape index: {}]   ;;  %s17447_s9 = inlined_call_operand.vmem [shape: f32[1,128], index: 9, kind: input, shape index: {}]   ;;  %s17448_s10 = inlined_call_operand.hbm [shape: f32[3,3,21,128], index: 10, kind: input, shape index: {}]   ;;  %s17449_s11 = inlined_call_operand.vmem [shape: f32[21,1], index: 11, kind: input, shape index: {}]   ;;  %s17450_s12 = inlined_call_operand.vmem [shape: f32[2,2,256], index: 12, kind: input, shape index: {}]   ;;  %s17451_s13 = inlined_call_operand.vmem [shape: f32[2,21,256], index: 13, kind: output, shape index: {}]  }
   0x1   :  { %19 = vsyncpa [#allocation13], 0  ;;  %s14755_s25 = smov 0  }
   0x2 LB: > { %s14761_s26 = sadd.s32 4294967295, %s14675_s25   ;;  %p10648_p0 = scmp.ge.s32.totalorder %s14675_s25, 1  ;;  %s14675_s25 = sphi %s14755_s25, %s25_s25  }
   0x3   : > { %p334_p1 = scmp.lt.s32.totalorder %s14675_s25, 3  ;;  %s14677_s27 = smov [#allocation10]  }
   0x4   : > { %s355_s28 = sshll.u32 %s14677_s27, 4  ;;  %p17452_p3 = scmp.eq.s32.totalorder %s14761_s26, 0  ;;  %s356_s28 = int_to_ptr.vmem [resolvable:$true] %s355_s28 }
   0x5   : > { %p14765_p2 = pnand %p10648_p0, %p334_p1  ;;  %s14678_s30 = smov [#allocation12]  }
   0x6   : > { %s383_s14 = sshll.u32 %s14678_s30, 4  ;;  %s14605_s18 = scalar_lea.hbm %s17442_s4, 4608  ;;  %s14778_s14 = int_to_ptr.vmem [resolvable:$true] %s383_s14 }
   0x7   : > { %s17510_s29 = scalar_select %p14765_p2, 1, 0 }
   0x8   : > { %p14573_p4 = pneg %p14765_p2  ;;  %p14606_p6 = scmp.ne.s32.totalorder %s17442_s4, %s14605_s18 }
   0x9   : > { %p14612_p10 = scmp.lt.u32.totalorder %s14605_s18, %s17442_s4 }
   0xa   : > { %p14774_p5 = pnand %p17452_p3, %p14573_p4 }
   0xc   : > { %p14607_p7 = pneg %p14774_p5 }
   0xe   : > { %p14608_p8 = pnand %p14607_p7, %p14606_p6 }
  0x10   : > { %p14609_p9 = pneg %p14608_p8 }
  0x12   : > { %p14614_p11 = pnand %p14612_p10, %p14609_p9 }
  0x14   : > { %14617 = shalt.err (!%p14614_p11)
}
  0x15   : > { %s14618_s23 = scalar_lea.vmem %s356_s28, 4608  ;;  %p14626_p1 = scmp.lt.s32.totalorder %s356_s28, %s356_s28 }
  0x16   : > { %p14619_p12 = scmp.ne.s32.totalorder %s356_s28, %s14618_s23  ;;  %p14627_p4 = scmp.lt.s32.totalorder %s14618_s23, %s14618_s23 }
  0x18   : > { %p14621_p13 = pnand %p14619_p12, %p14607_p7  ;;  %p14628_p3 = por %p14627_p4, %p14626_p1 }
  0x1a   : > { %p14622_p0 = pneg %p14621_p13 }
  0x1c   : > { %p14629_p2 = pnand %p14628_p3, %p14622_p0 }
  0x1e   : > { %14632 = shalt.err (!%p14629_p2)
}
  0x1f   : > { %s14679_s24 = smov 128   ;;  %s14680_s27 = smov 8  }
  0x20   : > { %14576 = dma.hbm_to_vmem [thread:$0]  (!%p14774_p5), %s17442_s4, 4608, %s356_s28, [#allocation11], %s14679_s24, %s14679_s24, %s14680_s27  }
  0x21   : > { %s14633_s19 = scalar_lea.hbm %s17448_s10, 3456 }
  0x22   : > { %p14634_p6 = scmp.ne.s32.totalorder %s17448_s10, %s14633_s19  ;;  %p14640_p8 = scmp.lt.u32.totalorder %s14633_s19, %s17448_s10 }
  0x24   : > { %p14636_p2 = pnand %p14634_p6, %p14607_p7 }
  0x26   : > { %p14637_p3 = pneg %p14636_p2 }
  0x28   : > { %p14642_p9 = pnand %p14640_p8, %p14637_p3 }
  0x2a   : > { %14645 = shalt.err (!%p14642_p9)
}
  0x2b   : > { %s14646_s28 = scalar_lea.vmem %s14778_s14, 3456  ;;  %p14654_p13 = scmp.lt.s32.totalorder %s14778_s14, %s14778_s14 }
  0x2c   : > { %p14647_p10 = scmp.ne.s32.totalorder %s14778_s14, %s14646_s28  ;;  %p14655_p0 = scmp.lt.s32.totalorder %s14646_s28, %s14646_s28 }
  0x2e   : > { %p14649_p11 = pnand %p14647_p10, %p14607_p7  ;;  %p14656_p1 = por %p14655_p0, %p14654_p13 }
  0x30   : > { %p14650_p12 = pneg %p14649_p11 }
  0x32   : > { %p14657_p4 = pnand %p14656_p1, %p14650_p12 }
  0x34   : > { %14660 = shalt.err (!%p14657_p4)
}
  0x35   : > { %14579 = dma.hbm_to_vmem [thread:$0]  (!%p14774_p5), %s17448_s10, 3456, %s14778_s14, [#allocation13], %s14679_s24, %s14679_s24, %s14680_s27  }
  0x36   : > { %p17512_p6 = scmp.ne.s32.totalorder %s17510_s29, 0 }
  0x38   : > { %413 = sbr.rel (%p17512_p6) target bundleno = 2427 (0x97b), region = 72 }
  0x3f   : > { %p17513_p2 = scmp.eq.s32.totalorder %s14761_s26, 0 }
  0x41   : > { %14666 = dma.done.wait (%p17513_p2), [#allocation11], 4608   ;;  %p17514_p7 = pmov %p17513_p2 }
  0x42   : > { %p17515_p3 = pmov %p17513_p2 }
  0x43   : > { %14668 = vsyncadd (%p17514_p7), [#allocation11], 4294962688 }
  0x44   : > { %14670 = dma.done.wait (%p17515_p3), [#allocation13], 3456   ;;  %p17516_p8 = pmov %p17513_p2 }
  0x45   : > { %vm471_vm0 = vcmask 23552   ;;  %p461_p9 = scmp.lt.s32.totalorder %s14761_s26, 1  ;;  %v14681_v0 = vmov 0.0   ;;  %vm475_vm1 = vcmask 16384   ;;  %vm773_vm2 = vcmask 1042432  }
  0x46   : > { %14672 = vsyncadd (%p17516_p8), [#allocation13], 4294963840  ;;  %473 = vst.msk [vmem:[#allocation2 + $0x8] sm:$0xff] %vm471_vm0, %v14681_v0  ;;  %v10658_v1 = vld [vmem:[%s17439_s1 + $0x4] sm:$0x7]  ;;  %vm4183_vm3 = vcmask 261120  }
  0x47   : > { %472 = vst.msk [vmem:[#allocation2] sm:$0xff] %vm471_vm0, %v14681_v0  ;;  %474 = vst.msk [vmem:[#allocation2 + $0x10] sm:$0xff] %vm471_vm0, %v14681_v0  ;;  %s17597_s26 = smov (!%p461_p9, %s14761_s26), 1  ;;  %12156 = vmatprep.subr.msk.mxu0 %vm773_vm2, %v10658_v1  ;;  %14172 = vmatprep.subr.msk.mxu1 %vm773_vm2, %v10658_v1  ;;  %v642_v8 = vld [vmem:[%s17439_s1] sm:$0x7]  ;;  %vm4241_vm4 = vcmask 253952  }
  0x48   : > { %477 = vst.msk [vmem:[#allocation2 + $0x20] sm:$0xff] %vm471_vm0, %v14681_v0  ;;  %478 = vst.msk [vmem:[#allocation2 + $0x28] sm:$0xff] %vm471_vm0, %v14681_v0  ;;  %s11354_s29 = sshll.u32 %s17597_s26, 8  ;;  %12157 = vmatpush3.msk.msra.mxu0 %vm773_vm2, %v10658_v1  ;;  %14173 = vmatpush3.msk.msra.mxu1 %vm773_vm2, %v10658_v1  ;;  %v10725_v37 = vld [vmem:[%s17439_s1 + $0x8] sm:$0x7]  ;;  %vm5655_vm5 = vcmask 523264  }
  0x49   : > { %479 = vst.msk [vmem:[#allocation2 + $0x30] sm:$0xff] %vm471_vm0, %v14681_v0  ;;  %481 = vst.msk [vmem:[#allocation2 + $0x40] sm:$0xff] %vm471_vm0, %v14681_v0  ;;  %s14999_s24 = scalar_lea.vmem %s17438_s0, %s11354_s29  ;;  %12206 = vmatprep.subr.msk.mxu0 %vm773_vm2, %v642_v8  ;;  %v15181_v63 = vld [vmem:[%s17439_s1 + $0xc] sm:$0x7]  ;;  %vm5680_vm6 = vcmask 520192   ;;  %vm14683_vm7 = vmmov 0  }
  0x4a   : > { %482 = vst.msk [vmem:[#allocation2 + $0x48] sm:$0xff] %vm471_vm0, %v14681_v0  ;;  %483 = vst.msk [vmem:[#allocation2 + $0x50] sm:$0xff] %vm471_vm0, %v14681_v0  ;;  %v545_v2 = vld [vmem:[%s14999_s24] sm:$0xff]  ;;  %v546_v3 = vld [vmem:[%s14999_s24 + $0x8] sm:$0xff]  ;;  %vm5693_vm8 = vcmask 519168   ;;  %vm10370_vm9 = vcmask 1041408  }
  0x4b   : > { %485 = vst.msk [vmem:[#allocation2 + $0x60] sm:$0xff] %vm471_vm0, %v14681_v0  ;;  %486 = vst.msk [vmem:[#allocation2 + $0x68] sm:$0xff] %vm471_vm0, %v14681_v0  ;;  %v547_v6 = vld [vmem:[%s14999_s24 + $0x10] sm:$0xff]  ;;  %v548_v7 = vld [vmem:[%s14999_s24 + $0x18] sm:$0xff]  ;;  %vm10360_vm10 = vcmask 15360   ;;  %s14564_s15 = smul.u32 48, %s17597_s26 }
  0x4c   : > { %487 = vst.msk [vmem:[#allocation2 + $0x70] sm:$0xff] %vm471_vm0, %v14681_v0  ;;  %489 = vst.msk [vmem:[#allocation2 + $0x80] sm:$0xff] %vm471_vm0, %v14681_v0  ;;  %v549_v9 = vld [vmem:[%s14999_s24 + $0x20] sm:$0xff]  ;;  %v550_v10 = vld [vmem:[%s14999_s24 + $0x28] sm:$0xff] }
  0x4d   : > { %490 = vst.msk [vmem:[#allocation2 + $0x88] sm:$0xff] %vm471_vm0, %v14681_v0  ;;  %491 = vst.msk [vmem:[#allocation2 + $0x90] sm:$0xff] %vm471_vm0, %v14681_v0  ;;  %v643_v4 = vld [vmem:[#allocation2 + $0x8] sm:$0xff]  ;;  %v551_v11 = vld [vmem:[%s14999_s24 + $0x30] sm:$0xff]  ;;  %s470_s17 = scalar_lea.vmem %s17451_s13, %s14564_s15 }
  0x4e   : > { %493 = vst.msk [vmem:[#allocation2 + $0xa0] sm:$0xff] %vm471_vm0, %v14681_v0  ;;  %494 = vst.msk [vmem:[#allocation2 + $0xa8] sm:$0xff] %vm471_vm0, %v14681_v0  ;;  %v644_v5 = vld [vmem:[#allocation2 + $0x10] sm:$0xff]  ;;  %12158 = vmatprep.mubr.msk.f32.mxu0 %vm471_vm0, %v643_v4  ;;  %v552_v12 = vld [vmem:[%s14999_s24 + $0x38] sm:$0xff] }
  0x4f   : > { %495 = vst.msk [vmem:[#allocation2 + $0xb0] sm:$0xff] %vm471_vm0, %v14681_v0  ;;  %497 = vst.msk [vmem:[#allocation2 + $0xc0] sm:$0xff] %vm471_vm0, %v14681_v0  ;;  %12159 = vmatmul.mubr.msk.f32.vlgmr.msra.gmra.mrb[0].mxu0 %vm471_vm0, %v644_v5  ;;  %v553_v13 = vld [vmem:[%s14999_s24 + $0x40] sm:$0xff]  ;;  %v554_v14 = vld [vmem:[%s14999_s24 + $0x48] sm:$0xff] }
  0x50   : > { %498 = vst.msk [vmem:[#allocation2 + $0xc8] sm:$0xff] %vm471_vm0, %v14681_v0  ;;  %499 = vst.msk [vmem:[#allocation2 + $0xd0] sm:$0xff] %vm471_vm0, %v14681_v0  ;;  %12207 = vmatpush3.msk.msra.mxu0 %vm773_vm2, %v642_v8  ;;  %v555_v15 = vld [vmem:[%s14999_s24 + $0x50] sm:$0xff]  ;;  %v556_v16 = vld [vmem:[%s14999_s24 + $0x58] sm:$0xff] }
  0x51   : > { %501 = vst.msk [vmem:[#allocation2 + $0xe0] sm:$0xff] %vm471_vm0, %v14681_v0  ;;  %502 = vst.msk [vmem:[#allocation2 + $0xe8] sm:$0xff] %vm471_vm0, %v14681_v0  ;;  %v557_v17 = vld [vmem:[%s14999_s24 + $0x60] sm:$0xff]  ;;  %v558_v18 = vld [vmem:[%s14999_s24 + $0x68] sm:$0xff]  ;;  %12256 = vmatprep.subr.msk.mxu0 %vm773_vm2, %v10725_v37 }
  0x52   : > { %503 = vst.msk [vmem:[#allocation2 + $0xf0] sm:$0xff] %vm471_vm0, %v14681_v0  ;;  %505 = vst.msk [vmem:[#allocation2 + $0x100] sm:$0xff] %vm471_vm0, %v14681_v0  ;;  %v559_v19 = vld [vmem:[%s14999_s24 + $0x70] sm:$0xff]  ;;  %v560_v20 = vld [vmem:[%s14999_s24 + $0x78] sm:$0xff] }
  0x53   : > { %506 = vst.msk [vmem:[#allocation2 + $0x108] sm:$0xff] %vm471_vm0, %v14681_v0  ;;  %507 = vst.msk [vmem:[#allocation2 + $0x110] sm:$0xff] %vm471_vm0, %v14681_v0  ;;  %v561_v21 = vld [vmem:[%s14999_s24 + $0x80] sm:$0xff]  ;;  %v562_v22 = vld [vmem:[%s14999_s24 + $0x88] sm:$0xff] }
  0x54   : > { %509 = vst.msk [vmem:[#allocation2 + $0x120] sm:$0xff] %vm471_vm0, %v14681_v0  ;;  %510 = vst.msk [vmem:[#allocation2 + $0x128] sm:$0xff] %vm471_vm0, %v14681_v0  ;;  %v563_v23 = vld [vmem:[%s14999_s24 + $0x90] sm:$0xff]  ;;  %v564_v24 = vld [vmem:[%s14999_s24 + $0x98] sm:$0xff] }
  0x55   : > { %511 = vst.msk [vmem:[#allocation2 + $0x130] sm:$0xff] %vm471_vm0, %v14681_v0  ;;  %513 = vst.msk [vmem:[#allocation2 + $0x140] sm:$0xff] %vm471_vm0, %v14681_v0  ;;  %v565_v27 = vld [vmem:[%s14999_s24 + $0xa0] sm:$0xff]  ;;  %v566_v29 = vld [vmem:[%s14999_s24 + $0xa8] sm:$0xff] }
  0x56   : > { %514 = vst.msk [vmem:[#allocation2 + $0x148] sm:$0xff] %vm471_vm0, %v14681_v0  ;;  %515 = vst.msk [vmem:[#allocation2 + $0x150] sm:$0xff] %vm471_vm0, %v14681_v0  ;;  %v567_v30 = vld [vmem:[%s14999_s24 + $0xb0] sm:$0xff]  ;;  %v568_v31 = vld [vmem:[%s14999_s24 + $0xb8] sm:$0xff] }
  0x57   : > { %517 = vst.msk [vmem:[#allocation2 + $0x160] sm:$0xff] %vm471_vm0, %v14681_v0  ;;  %518 = vst.msk [vmem:[#allocation2 + $0x168] sm:$0xff] %vm471_vm0, %v14681_v0  ;;  %v569_v42 = vld [vmem:[%s14999_s24 + $0xc0] sm:$0xff]  ;;  %v570_v43 = vld [vmem:[%s14999_s24 + $0xc8] sm:$0xff] }
  0x58   : > { %519 = vst.msk [vmem:[#allocation2 + $0x170] sm:$0xff] %vm471_vm0, %v14681_v0  ;;  %521 = vst.msk [vmem:[#allocation2 + $0x180] sm:$0xff] %vm471_vm0, %v14681_v0  ;;  %v571_v44 = vld [vmem:[%s14999_s24 + $0xd0] sm:$0xff]  ;;  %v572_v45 = vld [vmem:[%s14999_s24 + $0xd8] sm:$0xff] }
  0x59   : > { %522 = vst.msk [vmem:[#allocation2 + $0x188] sm:$0xff] %vm471_vm0, %v14681_v0  ;;  %523 = vst.msk [vmem:[#allocation2 + $0x190] sm:$0xff] %vm471_vm0, %v14681_v0  ;;  %v573_v46 = vld [vmem:[%s14999_s24 + $0xe0] sm:$0xff]  ;;  %v574_v48 = vld [vmem:[%s14999_s24 + $0xe8] sm:$0xff] }
  0x5a   : > { %525 = vst.msk [vmem:[#allocation2 + $0x1a0] sm:$0xff] %vm471_vm0, %v14681_v0  ;;  %526 = vst.msk [vmem:[#allocation2 + $0x1a8] sm:$0xff] %vm471_vm0, %v14681_v0  ;;  %v610_v60 = vld [vmem:[#allocation2 + $0x7] sm:$0xff]  ;;  %v611_v61 = vld [vmem:[#allocation2 + $0xf] sm:$0xff] }
  0x5b   : > { %527 = vst.msk [vmem:[#allocation2 + $0x1b0] sm:$0xff] %vm471_vm0, %v14681_v0  ;;  %529 = vst.msk [vmem:[#allocation2 + $0x1c0] sm:$0xff] %vm471_vm0, %v14681_v0 }
  0x5c   : > { %530 = vst.msk [vmem:[#allocation2 + $0x1c8] sm:$0xff] %vm471_vm0, %v14681_v0  ;;  %531 = vst.msk [vmem:[#allocation2 + $0x1d0] sm:$0xff] %vm471_vm0, %v14681_v0 }
  0x5d   : > { %533 = vst.msk [vmem:[#allocation2 + $0x1e0] sm:$0xff] %vm471_vm0, %v14681_v0  ;;  %534 = vst.msk [vmem:[#allocation2 + $0x1e8] sm:$0xff] %vm471_vm0, %v14681_v0 }
  0x5e   : > { %535 = vst.msk [vmem:[#allocation2 + $0x1f0] sm:$0xff] %vm471_vm0, %v14681_v0  ;;  %537 = vst.msk [vmem:[#allocation2 + $0x200] sm:$0xff] %vm471_vm0, %v14681_v0 }
  0x5f   : > { %538 = vst.msk [vmem:[#allocation2 + $0x208] sm:$0xff] %vm471_vm0, %v14681_v0  ;;  %539 = vst.msk [vmem:[#allocation2 + $0x210] sm:$0xff] %vm471_vm0, %v14681_v0 }
  0x60   : > { %541 = vst.msk [vmem:[#allocation2 + $0x220] sm:$0xff] %vm471_vm0, %v14681_v0  ;;  %542 = vst.msk [vmem:[#allocation2 + $0x228] sm:$0xff] %vm471_vm0, %v14681_v0 }
  0x61   : > { %543 = vst.msk [vmem:[#allocation2 + $0x230] sm:$0xff] %vm471_vm0, %v14681_v0  ;;  %8782 = vst [vmem:[#allocation5] sm:$0xff] %v14681_v0 }
  0x62   : > { %8783 = vst [vmem:[#allocation5 + $0x8] sm:$0x7] %v14681_v0  ;;  %8784 = vst [vmem:[#allocation5 + $0x10] sm:$0xff] %v14681_v0 }
  0x63   : > { %8785 = vst [vmem:[#allocation5 + $0x18] sm:$0x7] %v14681_v0  ;;  %8786 = vst [vmem:[#allocation5 + $0x20] sm:$0xff] %v14681_v0 }
  0x64   : > { %8787 = vst [vmem:[#allocation5 + $0x28] sm:$0x7] %v14681_v0  ;;  %8788 = vst [vmem:[#allocation5 + $0x30] sm:$0xff] %v14681_v0 }
  0x65   : > { %8789 = vst [vmem:[#allocation5 + $0x38] sm:$0x7] %v14681_v0  ;;  %476 = vst.msk [vmem:[#allocation2 + $0x18] sm:$0x1] %vm475_vm1, %v14681_v0 }
  0x66   : > { %480 = vst.msk [vmem:[#allocation2 + $0x38] sm:$0x1] %vm475_vm1, %v14681_v0  ;;  %484 = vst.msk [vmem:[#allocation2 + $0x58] sm:$0x1] %vm475_vm1, %v14681_v0 }
  0x67   : > { %488 = vst.msk [vmem:[#allocation2 + $0x78] sm:$0x1] %vm475_vm1, %v14681_v0  ;;  %492 = vst.msk [vmem:[#allocation2 + $0x98] sm:$0x1] %vm475_vm1, %v14681_v0 }
  0x68   : > { %496 = vst.msk [vmem:[#allocation2 + $0xb8] sm:$0x1] %vm475_vm1, %v14681_v0  ;;  %500 = vst.msk [vmem:[#allocation2 + $0xd8] sm:$0x1] %vm475_vm1, %v14681_v0 }
  0x69   : > { %504 = vst.msk [vmem:[#allocation2 + $0xf8] sm:$0x1] %vm475_vm1, %v14681_v0  ;;  %508 = vst.msk [vmem:[#allocation2 + $0x118] sm:$0x1] %vm475_vm1, %v14681_v0 }
  0x6a   : > { %512 = vst.msk [vmem:[#allocation2 + $0x138] sm:$0x1] %vm475_vm1, %v14681_v0  ;;  %516 = vst.msk [vmem:[#allocation2 + $0x158] sm:$0x1] %vm475_vm1, %v14681_v0 }
  0x6b   : > { %520 = vst.msk [vmem:[#allocation2 + $0x178] sm:$0x1] %vm475_vm1, %v14681_v0  ;;  %524 = vst.msk [vmem:[#allocation2 + $0x198] sm:$0x1] %vm475_vm1, %v14681_v0 }
  0x6c   : > { %528 = vst.msk [vmem:[#allocation2 + $0x1b8] sm:$0x1] %vm475_vm1, %v14681_v0  ;;  %532 = vst.msk [vmem:[#allocation2 + $0x1d8] sm:$0x1] %vm475_vm1, %v14681_v0 }
  0x6d   : > { %536 = vst.msk [vmem:[#allocation2 + $0x1f8] sm:$0x1] %vm475_vm1, %v14681_v0  ;;  %540 = vst.msk [vmem:[#allocation2 + $0x218] sm:$0x1] %vm475_vm1, %v14681_v0 }
  0x6e   : > { %544 = vst.msk [vmem:[#allocation2 + $0x238] sm:$0x1] %vm475_vm1, %v14681_v0 }
  0x6f   : > { %578 = vst.msk [vmem:[#allocation2 + $0x28] sm:$0xff] %vm471_vm0, %v545_v2  ;;  %579 = vst.msk [vmem:[#allocation2 + $0x30] sm:$0xff] %vm471_vm0, %v546_v3 }
  0x70   : > { %580 = vst.msk [vmem:[#allocation2 + $0x48] sm:$0xff] %vm471_vm0, %v547_v6  ;;  %581 = vst.msk [vmem:[#allocation2 + $0x50] sm:$0xff] %vm471_vm0, %v548_v7 }
  0x71   : > { %582 = vst.msk [vmem:[#allocation2 + $0x68] sm:$0xff] %vm471_vm0, %v549_v9  ;;  %583 = vst.msk [vmem:[#allocation2 + $0x70] sm:$0xff] %vm471_vm0, %v550_v10 }
  0x72   : > { %584 = vst.msk [vmem:[#allocation2 + $0x88] sm:$0xff] %vm471_vm0, %v551_v11  ;;  %585 = vst.msk [vmem:[#allocation2 + $0x90] sm:$0xff] %vm471_vm0, %v552_v12 }
  0x73   : > { %586 = vst.msk [vmem:[#allocation2 + $0xa8] sm:$0xff] %vm471_vm0, %v553_v13  ;;  %587 = vst.msk [vmem:[#allocation2 + $0xb0] sm:$0xff] %vm471_vm0, %v554_v14 }
  0x74   : > { %588 = vst.msk [vmem:[#allocation2 + $0xc8] sm:$0xff] %vm471_vm0, %v555_v15  ;;  %589 = vst.msk [vmem:[#allocation2 + $0xd0] sm:$0xff] %vm471_vm0, %v556_v16 }
  0x75   : > { %590 = vst.msk [vmem:[#allocation2 + $0xe8] sm:$0xff] %vm471_vm0, %v557_v17  ;;  %591 = vst.msk [vmem:[#allocation2 + $0xf0] sm:$0xff] %vm471_vm0, %v558_v18 }
  0x76   : > { %592 = vst.msk [vmem:[#allocation2 + $0x108] sm:$0xff] %vm471_vm0, %v559_v19  ;;  %593 = vst.msk [vmem:[#allocation2 + $0x110] sm:$0xff] %vm471_vm0, %v560_v20  ;;  %v15052_v25 = vld [vmem:[#allocation2 + $0x28] sm:$0xff]  ;;  %v15054_v26 = vld [vmem:[#allocation2 + $0x30] sm:$0xff] }
  0x77   : > { %594 = vst.msk [vmem:[#allocation2 + $0x128] sm:$0xff] %vm471_vm0, %v561_v21  ;;  %595 = vst.msk [vmem:[#allocation2 + $0x130] sm:$0xff] %vm471_vm0, %v562_v22  ;;  %12161 = vmatprep.mubr.msk.f32.mxu0 %vm471_vm0, %v15052_v25  ;;  %v15062_v28 = vld [vmem:[#allocation2 + $0x48] sm:$0xff]  ;;  %v15074_v32 = vld [vmem:[#allocation2 + $0x50] sm:$0xff] }
  0x78   : > { %596 = vst.msk [vmem:[#allocation2 + $0x148] sm:$0xff] %vm471_vm0, %v563_v23  ;;  %597 = vst.msk [vmem:[#allocation2 + $0x150] sm:$0xff] %vm471_vm0, %v564_v24  ;;  %12162 = vmatmul.mubr.msk.f32.gmra.mrb[2].mxu0 %vm471_vm0, %v15054_v26  ;;  %v15077_v33 = vld [vmem:[#allocation2 + $0x68] sm:$0xff]  ;;  %v15083_v34 = vld [vmem:[#allocation2 + $0x70] sm:$0xff] }
  0x79   : > { %598 = vst.msk [vmem:[#allocation2 + $0x168] sm:$0xff] %vm471_vm0, %v565_v27  ;;  %599 = vst.msk [vmem:[#allocation2 + $0x170] sm:$0xff] %vm471_vm0, %v566_v29  ;;  %12164 = vmatprep.mubr.msk.f32.mxu0 %vm471_vm0, %v15062_v28  ;;  %v15085_v35 = vld [vmem:[#allocation2 + $0x88] sm:$0xff]  ;;  %v15091_v36 = vld [vmem:[#allocation2 + $0x90] sm:$0xff] }
  0x7a   : > { %600 = vst.msk [vmem:[#allocation2 + $0x188] sm:$0xff] %vm471_vm0, %v567_v30  ;;  %601 = vst.msk [vmem:[#allocation2 + $0x190] sm:$0xff] %vm471_vm0, %v568_v31  ;;  %v15096_v38 = vld [vmem:[#allocation2 + $0xa8] sm:$0xff]  ;;  %v15103_v39 = vld [vmem:[#allocation2 + $0xb0] sm:$0xff] }
  0x7b   : > { %v15105_v40 = vld [vmem:[#allocation2 + $0xc8] sm:$0xff]  ;;  %v15109_v41 = vld [vmem:[#allocation2 + $0xd0] sm:$0xff]  ;;  %602 = vst.msk [vmem:[#allocation2 + $0x1a8] sm:$0xff] %vm471_vm0, %v569_v42  ;;  %603 = vst.msk [vmem:[#allocation2 + $0x1b0] sm:$0xff] %vm471_vm0, %v570_v43 }
  0x7c   : > { %12165 = vmatmul.mubr.msk.f32.gmra.mrb[4].mxu0 %vm471_vm0, %v15074_v32  ;;  %v15120_v47 = vld [vmem:[#allocation2 + $0xe8] sm:$0xff]  ;;  %604 = vst.msk [vmem:[#allocation2 + $0x1c8] sm:$0xff] %vm471_vm0, %v571_v44  ;;  %605 = vst.msk [vmem:[#allocation2 + $0x1d0] sm:$0xff] %vm471_vm0, %v572_v45  ;;  %v15131_v49 = vld [vmem:[#allocation2 + $0xf0] sm:$0xff] }
  0x7d   : > { %12167 = vmatprep.mubr.msk.f32.mxu0 %vm471_vm0, %v15077_v33  ;;  %606 = vst.msk [vmem:[#allocation2 + $0x1e8] sm:$0xff] %vm471_vm0, %v573_v46  ;;  %607 = vst.msk [vmem:[#allocation2 + $0x1f0] sm:$0xff] %vm471_vm0, %v574_v48  ;;  %v15133_v50 = vld [vmem:[#allocation2 + $0x108] sm:$0xff]  ;;  %v15139_v51 = vld [vmem:[#allocation2 + $0x110] sm:$0xff] }
  0x7e   : > { %v15141_v52 = vld [vmem:[#allocation2 + $0x128] sm:$0xff]  ;;  %v15147_v53 = vld [vmem:[#allocation2 + $0x130] sm:$0xff]  ;;  %v576_v30 = vld [vmem:[%s14999_s24 + $0xf8] sm:$0xff] }
  0x7f   : > { %v15149_v54 = vld [vmem:[#allocation2 + $0x148] sm:$0xff]  ;;  %v15155_v55 = vld [vmem:[#allocation2 + $0x150] sm:$0xff]  ;;  %609 = vst.msk [vmem:[#allocation2 + $0x210] sm:$0xff] %vm471_vm0, %v576_v30 }
  0x80   : > { %12168 = vmatmul.mubr.msk.f32.gmra.mrb[6].mxu0 %vm471_vm0, %v15083_v34  ;;  %v15157_v56 = vld [vmem:[#allocation2 + $0x168] sm:$0xff]  ;;  %v15163_v57 = vld [vmem:[#allocation2 + $0x170] sm:$0xff] }
  0x81   : > { %12170 = vmatprep.mubr.msk.f32.mxu0 %vm471_vm0, %v15085_v35  ;;  %v15165_v58 = vld [vmem:[#allocation2 + $0x188] sm:$0xff]  ;;  %v15171_v59 = vld [vmem:[#allocation2 + $0x190] sm:$0xff] }
  0x82   : > { %v15176_v62 = vld [vmem:[#allocation2 + $0x27] sm:$0xff]  ;;  %v15186_v0 = vld [vmem:[#allocation2 + $0x2f] sm:$0xff] }
  0x83   : > { %v15189_v1 = vld [vmem:[#allocation2 + $0x47] sm:$0xff]  ;;  %v15197_v2 = vld [vmem:[#allocation2 + $0x4f] sm:$0xff] }
  0x84   : > { %12171 = vmatmul.mubr.msk.f32.gmra.mrb[8].mxu0 %vm471_vm0, %v15091_v36  ;;  %v15199_v3 = vld [vmem:[#allocation2 + $0x67] sm:$0xff]  ;;  %v15205_v4 = vld [vmem:[#allocation2 + $0x6f] sm:$0xff] }
  0x85   : > { %12173 = vmatprep.mubr.msk.f32.mxu0 %vm471_vm0, %v15096_v38  ;;  %v15207_v5 = vld [vmem:[#allocation2 + $0x87] sm:$0xff]  ;;  %v15213_v6 = vld [vmem:[#allocation2 + $0x8f] sm:$0xff] }
  0x86   : > { %v15215_v7 = vld [vmem:[#allocation2 + $0xa7] sm:$0xff]  ;;  %v15221_v8 = vld [vmem:[#allocation2 + $0xaf] sm:$0xff] }
  0x87   : > { %v15223_v9 = vld [vmem:[#allocation2 + $0xc7] sm:$0xff]  ;;  %v15229_v10 = vld [vmem:[#allocation2 + $0xcf] sm:$0xff] }
  0x88   : > { %12174 = vmatmul.mubr.msk.f32.gmra.mrb[10].mxu0 %vm471_vm0, %v15103_v39  ;;  %v15231_v11 = vld [vmem:[#allocation2 + $0xe7] sm:$0xff]  ;;  %v15237_v12 = vld [vmem:[#allocation2 + $0xef] sm:$0xff] }
  0x89   : > { %12176 = vmatprep.mubr.msk.f32.mxu0 %vm471_vm0, %v15105_v40  ;;  %v15239_v13 = vld [vmem:[#allocation2 + $0x107] sm:$0xff]  ;;  %v15245_v14 = vld [vmem:[#allocation2 + $0x10f] sm:$0xff] }
  0x8a   : > { %v15247_v15 = vld [vmem:[#allocation2 + $0x127] sm:$0xff]  ;;  %v15253_v16 = vld [vmem:[#allocation2 + $0x12f] sm:$0xff] }
  0x8b   : > { %v15255_v17 = vld [vmem:[#allocation2 + $0x147] sm:$0xff]  ;;  %v15261_v18 = vld [vmem:[#allocation2 + $0x14f] sm:$0xff] }
  0x8c   : > { %12177 = vmatmul.mubr.msk.f32.gmra.mrb[12].mxu0 %vm471_vm0, %v15109_v41  ;;  %v15263_v19 = vld [vmem:[#allocation2 + $0x167] sm:$0xff]  ;;  %v15269_v20 = vld [vmem:[#allocation2 + $0x16f] sm:$0xff] }
  0x8d   : > { %12179 = vmatprep.mubr.msk.f32.mxu0 %vm471_vm0, %v15120_v47  ;;  %v15271_v21 = vld [vmem:[#allocation2 + $0x187] sm:$0xff]  ;;  %v15277_v22 = vld [vmem:[#allocation2 + $0x18f] sm:$0xff] }
  0x8e   : > { %v15279_v23 = vld [vmem:[#allocation2 + $0x1a7] sm:$0xff]  ;;  %v15285_v24 = vld [vmem:[#allocation2 + $0x1af] sm:$0xff] }
  0x8f   : > { %v15287_v27 = vld [vmem:[#allocation2 + $0x1c7] sm:$0xff]  ;;  %v575_v29 = vld [vmem:[%s14999_s24 + $0xf0] sm:$0xff] }
  0x90   : > { %12180 = vmatmul.mubr.msk.f32.gmra.mrb[14].mxu0 %vm471_vm0, %v15131_v49  ;;  %608 = vst.msk [vmem:[#allocation2 + $0x208] sm:$0xff] %vm471_vm0, %v575_v29  ;;  %v15297_v31 = vld [vmem:[#allocation2 + $0x1cf] sm:$0xff] }
  0x91   : > { %12182 = vmatprep.mubr.msk.f32.mxu0 %vm471_vm0, %v15133_v50  ;;  %v15305_v42 = vld [vmem:[#allocation2 + $0x1ef] sm:$0xff] }
  0x92   : > { %v1326_v43 = vld [vmem:[#allocation2 + $0x9] sm:$0xff]  ;;  %v1327_v44 = vld [vmem:[#allocation2 + $0x11] sm:$0xff] }
  0x93   : > { %v15310_v45 = vld [vmem:[#allocation2 + $0x29] sm:$0xff]  ;;  %v15320_v48 = vld [vmem:[#allocation2 + $0x31] sm:$0xff] }
  0x94   : > { %12183 = vmatmul.mubr.msk.f32.gmra.mrb[16].mxu0 %vm471_vm0, %v15139_v51  ;;  %17517 = vst [vmem:[#allocation16_spill] sm:$0xff] %v15310_v45  ;;  %v15315_v46 = vld [vmem:[%s17439_s1 + $0x10] sm:$0x7]  ;;  %17518 = vst [vmem:[#allocation17_spill] sm:$0xff] %v15320_v48 }
  0x95   : > { %12185 = vmatprep.mubr.msk.f32.mxu0 %vm471_vm0, %v15141_v52  ;;  %v15334_v29 = vld [vmem:[#allocation2 + $0x69] sm:$0xff] }
  0x96   : > { %17521 = vst [vmem:[#allocation20_spill] sm:$0xff] %v15334_v29  ;;  %v15342_v30 = vld [vmem:[#allocation2 + $0x89] sm:$0xff] }
  0x97   : > { %17523 = vst [vmem:[#allocation22_spill] sm:$0xff] %v15342_v30 }
  0x98   : > { %12186 = vmatmul.mubr.msk.f32.gmra.mrb[18].mxu0 %vm471_vm0, %v15147_v53 }
  0x99   : > { %12188 = vmatprep.mubr.msk.f32.mxu0 %vm471_vm0, %v15149_v54 }
  0x9c   : > { %12189 = vmatmul.mubr.msk.f32.gmra.mrb[20].mxu0 %vm471_vm0, %v15155_v55 }
  0x9d   : > { %12191 = vmatprep.mubr.msk.f32.mxu0 %vm471_vm0, %v15157_v56 }
  0xa0   : > { %12192 = vmatmul.mubr.msk.f32.gmra.mrb[22].mxu0 %vm471_vm0, %v15163_v57 }
  0xa1   : > { %12194 = vmatprep.mubr.msk.f32.mxu0 %vm471_vm0, %v15165_v58 }
  0xa4   : > { %12195 = vmatmul.mubr.msk.f32.gmra.mrb[24].mxu0 %vm471_vm0, %v15171_v59 }
  0xa5   : > { %12208 = vmatprep.mubr.msk.f32.mxu0 %vm471_vm0, %v610_v60  ;;  %v15324_v60 = vld [vmem:[#allocation2 + $0x49] sm:$0xff] }
  0xa6   : > { %17519 = vst [vmem:[#allocation18_spill] sm:$0xff] %v15324_v60 }
  0xa8   : > { %12209 = vmatmul.mubr.msk.f32.vlgmr.msra.gmra.mrb[0].mxu0 %vm471_vm0, %v611_v61  ;;  %v15332_v61 = vld [vmem:[#allocation2 + $0x51] sm:$0xff] }
  0xa9   : > { %12211 = vmatprep.mubr.msk.f32.mxu0 %vm471_vm0, %v15176_v62  ;;  %12257 = vmatpush3.msk.msra.mxu0 %vm773_vm2, %v10725_v37  ;;  %v15299_v37 = vld [vmem:[#allocation2 + $0x1e7] sm:$0xff]  ;;  %17520 = vst [vmem:[#allocation19_spill] sm:$0xff] %v15332_v61 }
  0xaa   : > { %12306 = vmatprep.subr.msk.mxu0 %vm773_vm2, %v15181_v63 }
  0xac   : > { %12212 = vmatmul.mubr.msk.f32.gmra.mrb[2].mxu0 %vm471_vm0, %v15186_v0 }
  0xad   : > { %12214 = vmatprep.mubr.msk.f32.mxu0 %vm471_vm0, %v15189_v1 }
  0xb0   : > { %12215 = vmatmul.mubr.msk.f32.gmra.mrb[4].mxu0 %vm471_vm0, %v15197_v2 }
  0xb1   : > { %12217 = vmatprep.mubr.msk.f32.mxu0 %vm471_vm0, %v15199_v3 }
  0xb4   : > { %12218 = vmatmul.mubr.msk.f32.gmra.mrb[6].mxu0 %vm471_vm0, %v15205_v4 }
  0xb5   : > { %12220 = vmatprep.mubr.msk.f32.mxu0 %vm471_vm0, %v15207_v5 }
  0xb8   : > { %12221 = vmatmul.mubr.msk.f32.gmra.mrb[8].mxu0 %vm471_vm0, %v15213_v6 }
  0xb9   : > { %12223 = vmatprep.mubr.msk.f32.mxu0 %vm471_vm0, %v15215_v7 }
  0xbc   : > { %12224 = vmatmul.mubr.msk.f32.gmra.mrb[10].mxu0 %vm471_vm0, %v15221_v8 }
  0xbd   : > { %12226 = vmatprep.mubr.msk.f32.mxu0 %vm471_vm0, %v15223_v9 }
  0xc0   : > { %12227 = vmatmul.mubr.msk.f32.gmra.mrb[12].mxu0 %vm471_vm0, %v15229_v10 }
  0xc1   : > { %12229 = vmatprep.mubr.msk.f32.mxu0 %vm471_vm0, %v15231_v11 }
  0xc4   : > { %12230 = vmatmul.mubr.msk.f32.gmra.mrb[14].mxu0 %vm471_vm0, %v15237_v12 }
  0xc5   : > { %12232 = vmatprep.mubr.msk.f32.mxu0 %vm471_vm0, %v15239_v13 }
  0xc8   : > { %12233 = vmatmul.mubr.msk.f32.gmra.mrb[16].mxu0 %vm471_vm0, %v15245_v14 }
  0xc9   : > { %12235 = vmatprep.mubr.msk.f32.mxu0 %vm471_vm0, %v15247_v15 }
  0xcc   : > { %12236 = vmatmul.mubr.msk.f32.gmra.mrb[18].mxu0 %vm471_vm0, %v15253_v16 }
  0xcd   : > { %12238 = vmatprep.mubr.msk.f32.mxu0 %vm471_vm0, %v15255_v17 }
  0xd0   : > { %12239 = vmatmul.mubr.msk.f32.gmra.mrb[20].mxu0 %vm471_vm0, %v15261_v18 }
  0xd1   : > { %12241 = vmatprep.mubr.msk.f32.mxu0 %vm471_vm0, %v15263_v19 }
  0xd4   : > { %12242 = vmatmul.mubr.msk.f32.gmra.mrb[22].mxu0 %vm471_vm0, %v15269_v20 }
  0xd5   : > { %12244 = vmatprep.mubr.msk.f32.mxu0 %vm471_vm0, %v15271_v21 }
  0xd8   : > { %12245 = vmatmul.mubr.msk.f32.gmra.mrb[24].mxu0 %vm471_vm0, %v15277_v22 }
  0xd9   : > { %12247 = vmatprep.mubr.msk.f32.mxu0 %vm471_vm0, %v15279_v23 }
  0xdc   : > { %12248 = vmatmul.mubr.msk.f32.gmra.mrb[26].mxu0 %vm471_vm0, %v15285_v24 }
  0xdd   : > { %12250 = vmatprep.mubr.msk.f32.mxu0 %vm471_vm0, %v15287_v27 }
  0xe0   : > { %12251 = vmatmul.mubr.msk.f32.gmra.mrb[28].mxu0 %vm471_vm0, %v15297_v31 }
  0xe1   : > { %12253 = vmatprep.mubr.msk.f32.mxu0 %vm471_vm0, %v15299_v37 }
  0xe4   : > { %12254 = vmatmul.mubr.msk.f32.gmra.mrb[30].mxu0 %vm471_vm0, %v15305_v42 }
  0xe5   : > { %12258 = vmatprep.mubr.msk.f32.mxu0 %vm471_vm0, %v1326_v43  ;;  %v15348_v43 = vld [vmem:[#allocation2 + $0x91] sm:$0xff] }
  0xe6   : > { %17524 = vst [vmem:[#allocation23_spill] sm:$0xff] %v15348_v43 }
  0xe8   : > { %12259 = vmatmul.mubr.msk.f32.vlgmr.msra.gmra.mrb[0].mxu0 %vm471_vm0, %v1327_v44  ;;  %v15350_v44 = vld [vmem:[#allocation2 + $0xa9] sm:$0xff] }
  0xe9   : > { %12261 = vmatprep.mubr.msk.f32.mxu0 %vm471_vm0, %v15310_v45  ;;  %12307 = vmatpush3.msk.msra.mxu0 %vm773_vm2, %v15181_v63  ;;  %v15340_v63 = vld [vmem:[#allocation2 + $0x71] sm:$0xff]  ;;  %17525 = vst [vmem:[#allocation24_spill] sm:$0xff] %v15350_v44 }
  0xea   : > { %12356 = vmatprep.subr.msk.mxu0 %vm773_vm2, %v15315_v46  ;;  %17522 = vst [vmem:[#allocation21_spill] sm:$0xff] %v15340_v63  ;;  %v15448_v45 = vld [vmem:[#allocation2 + $0x1f0] sm:$0xff] }
  0xec   : > { %12262 = vmatmul.mubr.msk.f32.gmra.mrb[2].mxu0 %vm471_vm0, %v15320_v48  ;;  %v15436_v48 = vld [vmem:[#allocation2 + $0x1c9] sm:$0xff] }
  0xed   : > { %12264 = vmatprep.mubr.msk.f32.mxu0 %vm471_vm0, %v15324_v60  ;;  %v15416_v60 = vld [vmem:[#allocation2 + $0x1b0] sm:$0xff]  ;;  %17544 = vst [vmem:[#allocation43_spill] sm:$0xff] %v15436_v48 }
  0xf0   : > { %12265 = vmatmul.mubr.msk.f32.gmra.mrb[4].mxu0 %vm471_vm0, %v15332_v61  ;;  %v15358_v61 = vld [vmem:[#allocation2 + $0xc9] sm:$0xff] }
  0xf1   : > { %12267 = vmatprep.mubr.msk.f32.mxu0 %vm471_vm0, %v15334_v29  ;;  %v15356_v29 = vld [vmem:[#allocation2 + $0xb1] sm:$0xff]  ;;  %17527 = vst [vmem:[#allocation26_spill] sm:$0xff] %v15358_v61 }
  0xf2   : > { %17526 = vst [vmem:[#allocation25_spill] sm:$0xff] %v15356_v29 }
  0xf4   : > { %12268 = vmatmul.mubr.msk.f32.gmra.mrb[6].mxu0 %vm471_vm0, %v15340_v63  ;;  %v15366_v63 = vld [vmem:[#allocation2 + $0xe9] sm:$0xff] }
  0xf5   : > { %12270 = vmatprep.mubr.msk.f32.mxu0 %vm471_vm0, %v15342_v30  ;;  %v15364_v30 = vld [vmem:[#allocation2 + $0xd1] sm:$0xff]  ;;  %17529 = vst [vmem:[#allocation28_spill] sm:$0xff] %v15366_v63 }
  0xf6   : > { %17528 = vst [vmem:[#allocation27_spill] sm:$0xff] %v15364_v30 }
  0xf8   : > { %12271 = vmatmul.mubr.msk.f32.gmra.mrb[8].mxu0 %vm471_vm0, %v15348_v43  ;;  %v15374_v43 = vld [vmem:[#allocation2 + $0x109] sm:$0xff] }
  0xf9   : > { %12273 = vmatprep.mubr.msk.f32.mxu0 %vm471_vm0, %v15350_v44  ;;  %v15372_v44 = vld [vmem:[#allocation2 + $0xf1] sm:$0xff]  ;;  %17531 = vst [vmem:[#allocation30_spill] sm:$0xff] %v15374_v43 }
  0xfa   : > { %17530 = vst [vmem:[#allocation29_spill] sm:$0xff] %v15372_v44 }
  0xfc   : > { %12274 = vmatmul.mubr.msk.f32.gmra.mrb[10].mxu0 %vm471_vm0, %v15356_v29  ;;  %v15382_v29 = vld [vmem:[#allocation2 + $0x129] sm:$0xff] }
  0xfd   : > { %12276 = vmatprep.mubr.msk.f32.mxu0 %vm471_vm0, %v15358_v61  ;;  %v15380_v61 = vld [vmem:[#allocation2 + $0x111] sm:$0xff]  ;;  %17533 = vst [vmem:[#allocation32_spill] sm:$0xff] %v15382_v29 }
  0xfe   : > { %17532 = vst [vmem:[#allocation31_spill] sm:$0xff] %v15380_v61 }
 0x100   : > { %12277 = vmatmul.mubr.msk.f32.gmra.mrb[12].mxu0 %vm471_vm0, %v15364_v30  ;;  %v15390_v30 = vld [vmem:[#allocation2 + $0x149] sm:$0xff] }
 0x101   : > { %12279 = vmatprep.mubr.msk.f32.mxu0 %vm471_vm0, %v15366_v63  ;;  %v15388_v63 = vld [vmem:[#allocation2 + $0x131] sm:$0xff]  ;;  %17535 = vst [vmem:[#allocation34_spill] sm:$0xff] %v15390_v30 }
 0x102   : > { %17534 = vst [vmem:[#allocation33_spill] sm:$0xff] %v15388_v63 }
 0x104   : > { %12280 = vmatmul.mubr.msk.f32.gmra.mrb[14].mxu0 %vm471_vm0, %v15372_v44  ;;  %v15398_v44 = vld [vmem:[#allocation2 + $0x169] sm:$0xff] }
 0x105   : > { %12282 = vmatprep.mubr.msk.f32.mxu0 %vm471_vm0, %v15374_v43  ;;  %v15396_v43 = vld [vmem:[#allocation2 + $0x151] sm:$0xff]  ;;  %17537 = vst [vmem:[#allocation36_spill] sm:$0xff] %v15398_v44 }
 0x106   : > { %17536 = vst [vmem:[#allocation35_spill] sm:$0xff] %v15396_v43 }
 0x108   : > { %12283 = vmatmul.mubr.msk.f32.gmra.mrb[16].mxu0 %vm471_vm0, %v15380_v61  ;;  %v15406_v61 = vld [vmem:[#allocation2 + $0x189] sm:$0xff] }
 0x109   : > { %12285 = vmatprep.mubr.msk.f32.mxu0 %vm471_vm0, %v15382_v29  ;;  %v15404_v29 = vld [vmem:[#allocation2 + $0x171] sm:$0xff]  ;;  %17539 = vst [vmem:[#allocation38_spill] sm:$0xff] %v15406_v61 }
 0x10a   : > { %17538 = vst [vmem:[#allocation37_spill] sm:$0xff] %v15404_v29 }
 0x10c   : > { %12286 = vmatmul.mubr.msk.f32.gmra.mrb[18].mxu0 %vm471_vm0, %v15388_v63  ;;  %v15410_v63 = vld [vmem:[#allocation2 + $0x1a8] sm:$0xff] }
 0x10d   : > { %12288 = vmatprep.mubr.msk.f32.mxu0 %vm471_vm0, %v15390_v30  ;;  %v15414_v30 = vld [vmem:[#allocation2 + $0x191] sm:$0xff]  ;;  %12197 = vmatprep.mubr.msk.f32.mxu1 %vm471_vm0, %v15410_v63 }
 0x10e   : > { %17540 = vst [vmem:[#allocation39_spill] sm:$0xff] %v15414_v30  ;;  %12198 = vmatmul.mubr.msk.f32.vlgmr.msra.gmra.mrb[0].mxu1 %vm471_vm0, %v15416_v60 }
 0x110   : > { %12289 = vmatmul.mubr.msk.f32.gmra.mrb[20].mxu0 %vm471_vm0, %v15396_v43  ;;  %v15432_v43 = vld [vmem:[#allocation2 + $0x1d0] sm:$0xff] }
 0x111   : > { %12291 = vmatprep.mubr.msk.f32.mxu0 %vm471_vm0, %v15398_v44  ;;  %v15420_v44 = vld [vmem:[#allocation2 + $0x1a9] sm:$0xff] }
 0x112   : > { %17541 = vst [vmem:[#allocation40_spill] sm:$0xff] %v15420_v44 }
 0x114   : > { %12292 = vmatmul.mubr.msk.f32.gmra.mrb[22].mxu0 %vm471_vm0, %v15404_v29  ;;  %v15426_v29 = vld [vmem:[#allocation2 + $0x1c8] sm:$0xff] }
 0x115   : > { %12294 = vmatprep.mubr.msk.f32.mxu0 %vm471_vm0, %v15406_v61  ;;  %17542 = vst [vmem:[#allocation41_spill] sm:$0xff] %v15426_v29  ;;  %v15430_v61 = vld [vmem:[#allocation2 + $0x1b1] sm:$0xff]  ;;  %12200 = vmatprep.mubr.msk.f32.mxu1 %vm471_vm0, %v15426_v29  ;;  %v15452_v29 = vld [vmem:[#allocation2 + $0x1e9] sm:$0xff] }
 0x116   : > { %17543 = vst [vmem:[#allocation42_spill] sm:$0xff] %v15430_v61  ;;  %12201 = vmatmul.mubr.msk.f32.gmra.mrb[2].mxu1 %vm471_vm0, %v15432_v43  ;;  %17545 = vst [vmem:[#allocation44_spill] sm:$0xff] %v15452_v29 }
 0x118   : > { %12295 = vmatmul.mubr.msk.f32.gmra.mrb[24].mxu0 %vm471_vm0, %v15414_v30  ;;  %v15442_v30 = vld [vmem:[#allocation2 + $0x1e8] sm:$0xff] }
 0x119   : > { %12297 = vmatprep.mubr.msk.f32.mxu0 %vm471_vm0, %v15420_v44  ;;  %v15446_v44 = vld [vmem:[#allocation2 + $0x1d1] sm:$0xff]  ;;  %12203 = vmatprep.mubr.msk.f32.mxu1 %vm471_vm0, %v15442_v30 }
 0x11a   : > { %12204 = vmatmul.mubr.msk.f32.gmra.mrb[4].mxu1 %vm471_vm0, %v15448_v45 }
 0x11c   : > { %12298 = vmatmul.mubr.msk.f32.gmra.mrb[26].mxu0 %vm471_vm0, %v15430_v61  ;;  %v15460_v61 = vld [vmem:[#allocation2 + $0x1f1] sm:$0xff] }
 0x11d   : > { %12300 = vmatprep.mubr.msk.f32.mxu0 %vm471_vm0, %v15436_v48  ;;  %v10827_v48 = vld [vmem:[%s17439_s1 + $0x14] sm:$0x7] }
 0x120   : > { %12301 = vmatmul.mubr.msk.f32.gmra.mrb[28].mxu0 %vm471_vm0, %v15446_v44 }
 0x121   : > { %12303 = vmatprep.mubr.msk.f32.mxu0 %vm471_vm0, %v15452_v29 }
 0x124   : > { %12304 = vmatmul.mubr.msk.f32.gmra.mrb[30].mxu0 %vm471_vm0, %v15460_v61 }
 0x125   : > { %12308 = vmatprep.mubr.msk.f32.mxu0 %vm471_vm0, %v15176_v62  ;;  %v15528_v62 = vld [vmem:[#allocation2 + $0x207] sm:$0xff] }
 0x128   : > { %12309 = vmatmul.mubr.msk.f32.vlgmr.msra.gmra.mrb[0].mxu0 %vm471_vm0, %v15186_v0  ;;  %v15534_v0 = vld [vmem:[#allocation2 + $0x20f] sm:$0xff] }
 0x129   : > { %12311 = vmatprep.mubr.msk.f32.mxu0 %vm471_vm0, %v15189_v1  ;;  %12357 = vmatpush3.msk.msra.mxu0 %vm773_vm2, %v15315_v46  ;;  %v10861_v46 = vld [vmem:[%s17439_s1 + $0x18] sm:$0x7] }
 0x12a   : > { %12406 = vmatprep.subr.msk.mxu0 %vm773_vm2, %v10827_v48 }
 0x12c   : > { %12312 = vmatmul.mubr.msk.f32.gmra.mrb[2].mxu0 %vm471_vm0, %v15197_v2 }
 0x12d   : > { %12314 = vmatprep.mubr.msk.f32.mxu0 %vm471_vm0, %v15199_v3 }
 0x130   : > { %12315 = vmatmul.mubr.msk.f32.gmra.mrb[4].mxu0 %vm471_vm0, %v15205_v4 }
 0x131   : > { %12317 = vmatprep.mubr.msk.f32.mxu0 %vm471_vm0, %v15207_v5 }
 0x134   : > { %12318 = vmatmul.mubr.msk.f32.gmra.mrb[6].mxu0 %vm471_vm0, %v15213_v6 }
 0x135   : > { %12320 = vmatprep.mubr.msk.f32.mxu0 %vm471_vm0, %v15215_v7 }
 0x138   : > { %12321 = vmatmul.mubr.msk.f32.gmra.mrb[8].mxu0 %vm471_vm0, %v15221_v8 }
 0x139   : > { %12323 = vmatprep.mubr.msk.f32.mxu0 %vm471_vm0, %v15223_v9 }
 0x13c   : > { %12324 = vmatmul.mubr.msk.f32.gmra.mrb[10].mxu0 %vm471_vm0, %v15229_v10 }
 0x13d   : > { %12326 = vmatprep.mubr.msk.f32.mxu0 %vm471_vm0, %v15231_v11 }
 0x140   : > { %12327 = vmatmul.mubr.msk.f32.gmra.mrb[12].mxu0 %vm471_vm0, %v15237_v12 }
 0x141   : > { %12329 = vmatprep.mubr.msk.f32.mxu0 %vm471_vm0, %v15239_v13 }
 0x144   : > { %12330 = vmatmul.mubr.msk.f32.gmra.mrb[14].mxu0 %vm471_vm0, %v15245_v14 }
 0x145   : > { %12332 = vmatprep.mubr.msk.f32.mxu0 %vm471_vm0, %v15247_v15 }
 0x148   : > { %12333 = vmatmul.mubr.msk.f32.gmra.mrb[16].mxu0 %vm471_vm0, %v15253_v16 }
 0x149   : > { %12335 = vmatprep.mubr.msk.f32.mxu0 %vm471_vm0, %v15255_v17 }
 0x14c   : > { %12336 = vmatmul.mubr.msk.f32.gmra.mrb[18].mxu0 %vm471_vm0, %v15261_v18 }
 0x14d   : > { %12338 = vmatprep.mubr.msk.f32.mxu0 %vm471_vm0, %v15263_v19 }
 0x150   : > { %12339 = vmatmul.mubr.msk.f32.gmra.mrb[20].mxu0 %vm471_vm0, %v15269_v20 }
 0x151   : > { %12341 = vmatprep.mubr.msk.f32.mxu0 %vm471_vm0, %v15271_v21 }
 0x154   : > { %12342 = vmatmul.mubr.msk.f32.gmra.mrb[22].mxu0 %vm471_vm0, %v15277_v22 }
 0x155   : > { %12344 = vmatprep.mubr.msk.f32.mxu0 %vm471_vm0, %v15279_v23 }
 0x158   : > { %12345 = vmatmul.mubr.msk.f32.gmra.mrb[24].mxu0 %vm471_vm0, %v15285_v24 }
 0x159   : > { %12347 = vmatprep.mubr.msk.f32.mxu0 %vm471_vm0, %v15287_v27 }
 0x15c   : > { %12348 = vmatmul.mubr.msk.f32.gmra.mrb[26].mxu0 %vm471_vm0, %v15297_v31 }
 0x15d   : > { %12350 = vmatprep.mubr.msk.f32.mxu0 %vm471_vm0, %v15299_v37 }
 0x160   : > { %12351 = vmatmul.mubr.msk.f32.gmra.mrb[28].mxu0 %vm471_vm0, %v15305_v42 }
 0x161   : > { %12353 = vmatprep.mubr.msk.f32.mxu0 %vm471_vm0, %v15528_v62 }
 0x164   : > { %12354 = vmatmul.mubr.msk.f32.gmra.mrb[30].mxu0 %vm471_vm0, %v15534_v0 }
 0x165   : > { %12358 = vmatprep.mubr.msk.f32.mxu0 %vm471_vm0, %v15052_v25  ;;  %v17546_v25 = vld [vmem:[#allocation41_spill] sm:$0xff] }
 0x168   : > { %12359 = vmatmul.mubr.msk.f32.vlgmr.msra.gmra.mrb[0].mxu0 %vm471_vm0, %v15054_v26  ;;  %v15601_v26 = vld [vmem:[#allocation2 + $0x208] sm:$0xff] }
 0x169   : > { %12361 = vmatprep.mubr.msk.f32.mxu0 %vm471_vm0, %v15062_v28  ;;  %12407 = vmatpush3.msk.msra.mxu0 %vm773_vm2, %v10827_v48  ;;  %v15607_v28 = vld [vmem:[#allocation2 + $0x210] sm:$0xff]  ;;  %v17553_v48 = vld [vmem:[#allocation21_spill] sm:$0xff] }
 0x16a   : > { %12456 = vmatprep.subr.msk.mxu0 %vm773_vm2, %v10861_v46  ;;  %17547 = vst [vmem:[#allocation41_spill] sm:$0xff] %v15607_v28 }
 0x16c   : > { %12362 = vmatmul.mubr.msk.f32.gmra.mrb[2].mxu0 %vm471_vm0, %v15074_v32  ;;  %v17548_v32 = vld [vmem:[#allocation16_spill] sm:$0xff] }
 0x16d   : > { %12364 = vmatprep.mubr.msk.f32.mxu0 %vm471_vm0, %v15077_v33  ;;  %v10895_v33 = vld [vmem:[%s17439_s1 + $0x1c] sm:$0x7] }
 0x170   : > { %12365 = vmatmul.mubr.msk.f32.gmra.mrb[4].mxu0 %vm471_vm0, %v15083_v34  ;;  %v17549_v34 = vld [vmem:[#allocation17_spill] sm:$0xff] }
 0x171   : > { %12367 = vmatprep.mubr.msk.f32.mxu0 %vm471_vm0, %v15085_v35  ;;  %v17550_v35 = vld [vmem:[#allocation18_spill] sm:$0xff] }
 0x174   : > { %12368 = vmatmul.mubr.msk.f32.gmra.mrb[6].mxu0 %vm471_vm0, %v15091_v36  ;;  %v17551_v36 = vld [vmem:[#allocation19_spill] sm:$0xff] }
 0x175   : > { %12370 = vmatprep.mubr.msk.f32.mxu0 %vm471_vm0, %v15096_v38  ;;  %v17552_v38 = vld [vmem:[#allocation20_spill] sm:$0xff] }
 0x178   : > { %12371 = vmatmul.mubr.msk.f32.gmra.mrb[8].mxu0 %vm471_vm0, %v15103_v39 }
 0x179   : > { %12373 = vmatprep.mubr.msk.f32.mxu0 %vm471_vm0, %v15105_v40 }
 0x17c   : > { %12374 = vmatmul.mubr.msk.f32.gmra.mrb[10].mxu0 %vm471_vm0, %v15109_v41 }
 0x17d   : > { %12376 = vmatprep.mubr.msk.f32.mxu0 %vm471_vm0, %v15120_v47 }
 0x180   : > { %12377 = vmatmul.mubr.msk.f32.gmra.mrb[12].mxu0 %vm471_vm0, %v15131_v49 }
 0x181   : > { %12379 = vmatprep.mubr.msk.f32.mxu0 %vm471_vm0, %v15133_v50 }
 0x184   : > { %12380 = vmatmul.mubr.msk.f32.gmra.mrb[14].mxu0 %vm471_vm0, %v15139_v51 }
 0x185   : > { %12382 = vmatprep.mubr.msk.f32.mxu0 %vm471_vm0, %v15141_v52 }
 0x188   : > { %12383 = vmatmul.mubr.msk.f32.gmra.mrb[16].mxu0 %vm471_vm0, %v15147_v53 }
 0x189   : > { %12385 = vmatprep.mubr.msk.f32.mxu0 %vm471_vm0, %v15149_v54 }
 0x18c   : > { %12386 = vmatmul.mubr.msk.f32.gmra.mrb[18].mxu0 %vm471_vm0, %v15155_v55 }
 0x18d   : > { %12388 = vmatprep.mubr.msk.f32.mxu0 %vm471_vm0, %v15157_v56 }
 0x190   : > { %12389 = vmatmul.mubr.msk.f32.gmra.mrb[20].mxu0 %vm471_vm0, %v15163_v57 }
 0x191   : > { %12391 = vmatprep.mubr.msk.f32.mxu0 %vm471_vm0, %v15165_v58 }
 0x194   : > { %12392 = vmatmul.mubr.msk.f32.gmra.mrb[22].mxu0 %vm471_vm0, %v15171_v59 }
 0x195   : > { %12394 = vmatprep.mubr.msk.f32.mxu0 %vm471_vm0, %v15410_v63 }
 0x198   : > { %12395 = vmatmul.mubr.msk.f32.gmra.mrb[24].mxu0 %vm471_vm0, %v15416_v60 }
 0x199   : > { %12397 = vmatprep.mubr.msk.f32.mxu0 %vm471_vm0, %v17546_v25 }
 0x19c   : > { %12398 = vmatmul.mubr.msk.f32.gmra.mrb[26].mxu0 %vm471_vm0, %v15432_v43 }
 0x19d   : > { %12400 = vmatprep.mubr.msk.f32.mxu0 %vm471_vm0, %v15442_v30 }
 0x1a0   : > { %12401 = vmatmul.mubr.msk.f32.gmra.mrb[28].mxu0 %vm471_vm0, %v15448_v45 }
 0x1a1   : > { %12403 = vmatprep.mubr.msk.f32.mxu0 %vm471_vm0, %v15601_v26 }
 0x1a4   : > { %12404 = vmatmul.mubr.msk.f32.gmra.mrb[30].mxu0 %vm471_vm0, %v15607_v28  ;;  %v17558_v28 = vld [vmem:[#allocation26_spill] sm:$0xff] }
 0x1a5   : > { %12408 = vmatprep.mubr.msk.f32.mxu0 %vm471_vm0, %v17548_v32  ;;  %v17554_v32 = vld [vmem:[#allocation22_spill] sm:$0xff] }
 0x1a8   : > { %12409 = vmatmul.mubr.msk.f32.vlgmr.msra.gmra.mrb[0].mxu0 %vm471_vm0, %v17549_v34  ;;  %v17555_v34 = vld [vmem:[#allocation23_spill] sm:$0xff] }
 0x1a9   : > { %12411 = vmatprep.mubr.msk.f32.mxu0 %vm471_vm0, %v17550_v35  ;;  %12457 = vmatpush3.msk.msra.mxu0 %vm773_vm2, %v10861_v46  ;;  %v17556_v35 = vld [vmem:[#allocation24_spill] sm:$0xff]  ;;  %v17557_v46 = vld [vmem:[#allocation25_spill] sm:$0xff] }
 0x1aa   : > { %12506 = vmatprep.subr.msk.mxu0 %vm773_vm2, %v10895_v33 }
 0x1ac   : > { %12412 = vmatmul.mubr.msk.f32.gmra.mrb[2].mxu0 %vm471_vm0, %v17551_v36  ;;  %v17559_v36 = vld [vmem:[#allocation27_spill] sm:$0xff] }
 0x1ad   : > { %12414 = vmatprep.mubr.msk.f32.mxu0 %vm471_vm0, %v17552_v38  ;;  %v17560_v38 = vld [vmem:[#allocation28_spill] sm:$0xff] }
 0x1b0   : > { %12415 = vmatmul.mubr.msk.f32.gmra.mrb[4].mxu0 %vm471_vm0, %v17553_v48  ;;  %v17561_v48 = vld [vmem:[#allocation29_spill] sm:$0xff] }
 0x1b1   : > { %12417 = vmatprep.mubr.msk.f32.mxu0 %vm471_vm0, %v17554_v32  ;;  %v17562_v32 = vld [vmem:[#allocation30_spill] sm:$0xff] }
 0x1b4   : > { %12418 = vmatmul.mubr.msk.f32.gmra.mrb[6].mxu0 %vm471_vm0, %v17555_v34  ;;  %v17563_v34 = vld [vmem:[#allocation31_spill] sm:$0xff] }
 0x1b5   : > { %12420 = vmatprep.mubr.msk.f32.mxu0 %vm471_vm0, %v17556_v35  ;;  %v17564_v35 = vld [vmem:[#allocation32_spill] sm:$0xff] }
 0x1b8   : > { %12421 = vmatmul.mubr.msk.f32.gmra.mrb[8].mxu0 %vm471_vm0, %v17557_v46  ;;  %v17565_v46 = vld [vmem:[#allocation33_spill] sm:$0xff] }
 0x1b9   : > { %12423 = vmatprep.mubr.msk.f32.mxu0 %vm471_vm0, %v17558_v28  ;;  %v17566_v28 = vld [vmem:[#allocation34_spill] sm:$0xff] }
 0x1bc   : > { %12424 = vmatmul.mubr.msk.f32.gmra.mrb[10].mxu0 %vm471_vm0, %v17559_v36  ;;  %v17567_v36 = vld [vmem:[#allocation35_spill] sm:$0xff] }
 0x1bd   : > { %12426 = vmatprep.mubr.msk.f32.mxu0 %vm471_vm0, %v17560_v38  ;;  %v17568_v38 = vld [vmem:[#allocation36_spill] sm:$0xff] }
 0x1c0   : > { %12427 = vmatmul.mubr.msk.f32.gmra.mrb[12].mxu0 %vm471_vm0, %v17561_v48  ;;  %v17569_v48 = vld [vmem:[#allocation37_spill] sm:$0xff] }
 0x1c1   : > { %12429 = vmatprep.mubr.msk.f32.mxu0 %vm471_vm0, %v17562_v32  ;;  %v17570_v32 = vld [vmem:[#allocation38_spill] sm:$0xff] }
 0x1c4   : > { %12430 = vmatmul.mubr.msk.f32.gmra.mrb[14].mxu0 %vm471_vm0, %v17563_v34  ;;  %v17571_v34 = vld [vmem:[#allocation39_spill] sm:$0xff] }
 0x1c5   : > { %12432 = vmatprep.mubr.msk.f32.mxu0 %vm471_vm0, %v17564_v35  ;;  %v17572_v35 = vld [vmem:[#allocation40_spill] sm:$0xff] }
 0x1c8   : > { %12433 = vmatmul.mubr.msk.f32.gmra.mrb[16].mxu0 %vm471_vm0, %v17565_v46  ;;  %v17573_v46 = vld [vmem:[#allocation42_spill] sm:$0xff] }
 0x1c9   : > { %12435 = vmatprep.mubr.msk.f32.mxu0 %vm471_vm0, %v17566_v28  ;;  %v17574_v28 = vld [vmem:[#allocation43_spill] sm:$0xff] }
 0x1cc   : > { %12436 = vmatmul.mubr.msk.f32.gmra.mrb[18].mxu0 %vm471_vm0, %v17567_v36 }
 0x1cd   : > { %12438 = vmatprep.mubr.msk.f32.mxu0 %vm471_vm0, %v17568_v38 }
 0x1d0   : > { %12439 = vmatmul.mubr.msk.f32.gmra.mrb[20].mxu0 %vm471_vm0, %v17569_v48  ;;  %v15674_v48 = vld [vmem:[#allocation2 + $0x209] sm:$0xff] }
 0x1d1   : > { %12441 = vmatprep.mubr.msk.f32.mxu0 %vm471_vm0, %v17570_v32 }
 0x1d4   : > { %12442 = vmatmul.mubr.msk.f32.gmra.mrb[22].mxu0 %vm471_vm0, %v17571_v34 }
 0x1d5   : > { %12444 = vmatprep.mubr.msk.f32.mxu0 %vm471_vm0, %v17572_v35  ;;  %v15680_v35 = vld [vmem:[#allocation2 + $0x211] sm:$0xff] }
 0x1d8   : > { %12445 = vmatmul.mubr.msk.f32.gmra.mrb[24].mxu0 %vm471_vm0, %v17573_v46 }
 0x1d9   : > { %12447 = vmatprep.mubr.msk.f32.mxu0 %vm471_vm0, %v17574_v28 }
 0x1dc   : > { %12448 = vmatmul.mubr.msk.f32.gmra.mrb[26].mxu0 %vm471_vm0, %v15446_v44 }
 0x1dd   : > { %12450 = vmatprep.mubr.msk.f32.mxu0 %vm471_vm0, %v15452_v29  ;;  %v10929_v29 = vld [vmem:[%s17439_s1 + $0x20] sm:$0x7] }
 0x1e0   : > { %12451 = vmatmul.mubr.msk.f32.gmra.mrb[28].mxu0 %vm471_vm0, %v15460_v61 }
 0x1e1   : > { %12453 = vmatprep.mubr.msk.f32.mxu0 %vm471_vm0, %v15674_v48 }
 0x1e4   : > { %12454 = vmatmul.mubr.msk.f32.gmra.mrb[30].mxu0 %vm471_vm0, %v15680_v35 }
 0x1e5   : > { %12458 = vmatprep.mubr.msk.f32.mxu0 %vm471_vm0, %v15189_v1  ;;  %v2917_v1 = vld [vmem:[#allocation2 + $0x227] sm:$0xff] }
 0x1e8   : > { %12459 = vmatmul.mubr.msk.f32.vlgmr.msra.gmra.mrb[0].mxu0 %vm471_vm0, %v15197_v2  ;;  %v2918_v2 = vld [vmem:[#allocation2 + $0x22f] sm:$0xff] }
 0x1e9   : > { %12461 = vmatprep.mubr.msk.f32.mxu0 %vm471_vm0, %v15199_v3  ;;  %12507 = vmatpush3.msk.msra.mxu0 %vm773_vm2, %v10895_v33  ;;  %v3277_v3 = vld [vmem:[#allocation2 + $0x48] sm:$0xff] }
 0x1ea   : > { %12556 = vmatprep.subr.msk.mxu0 %vm773_vm2, %v10929_v29 }
 0x1ec   : > { %12462 = vmatmul.mubr.msk.f32.gmra.mrb[2].mxu0 %vm471_vm0, %v15205_v4  ;;  %v3278_v4 = vld [vmem:[#allocation2 + $0x50] sm:$0xff] }
 0x1ed   : > { %12464 = vmatprep.mubr.msk.f32.mxu0 %vm471_vm0, %v15207_v5  ;;  %v3279_v5 = vld [vmem:[#allocation2 + $0x68] sm:$0xff] }
 0x1f0   : > { %12465 = vmatmul.mubr.msk.f32.gmra.mrb[4].mxu0 %vm471_vm0, %v15213_v6  ;;  %v3280_v6 = vld [vmem:[#allocation2 + $0x70] sm:$0xff] }
 0x1f1   : > { %12467 = vmatprep.mubr.msk.f32.mxu0 %vm471_vm0, %v15215_v7  ;;  %v3281_v7 = vld [vmem:[#allocation2 + $0x88] sm:$0xff] }
 0x1f4   : > { %12468 = vmatmul.mubr.msk.f32.gmra.mrb[6].mxu0 %vm471_vm0, %v15221_v8  ;;  %v3282_v8 = vld [vmem:[#allocation2 + $0x90] sm:$0xff] }
 0x1f5   : > { %12470 = vmatprep.mubr.msk.f32.mxu0 %vm471_vm0, %v15223_v9  ;;  %v3283_v9 = vld [vmem:[#allocation2 + $0xa8] sm:$0xff] }
 0x1f8   : > { %12471 = vmatmul.mubr.msk.f32.gmra.mrb[8].mxu0 %vm471_vm0, %v15229_v10  ;;  %v17588_v10 = vld [vmem:[#allocation30_spill] sm:$0xff] }
 0x1f9   : > { %12473 = vmatprep.mubr.msk.f32.mxu0 %vm471_vm0, %v15231_v11  ;;  %v17589_v11 = vld [vmem:[#allocation31_spill] sm:$0xff] }
 0x1fc   : > { %12474 = vmatmul.mubr.msk.f32.gmra.mrb[10].mxu0 %vm471_vm0, %v15237_v12  ;;  %v17590_v12 = vld [vmem:[#allocation32_spill] sm:$0xff] }
 0x1fd   : > { %12476 = vmatprep.mubr.msk.f32.mxu0 %vm471_vm0, %v15239_v13  ;;  %v17591_v13 = vld [vmem:[#allocation33_spill] sm:$0xff] }
 0x200   : > { %12477 = vmatmul.mubr.msk.f32.gmra.mrb[12].mxu0 %vm471_vm0, %v15245_v14  ;;  %v17592_v14 = vld [vmem:[#allocation34_spill] sm:$0xff] }
 0x201   : > { %12479 = vmatprep.mubr.msk.f32.mxu0 %vm471_vm0, %v15247_v15  ;;  %v17593_v15 = vld [vmem:[#allocation37_spill] sm:$0xff] }
 0x204   : > { %12480 = vmatmul.mubr.msk.f32.gmra.mrb[14].mxu0 %vm471_vm0, %v15253_v16  ;;  %v17594_v16 = vld [vmem:[#allocation40_spill] sm:$0xff] }
 0x205   : > { %12482 = vmatprep.mubr.msk.f32.mxu0 %vm471_vm0, %v15255_v17  ;;  %v17595_v17 = vld [vmem:[#allocation44_spill] sm:$0xff] }
 0x208   : > { %12483 = vmatmul.mubr.msk.f32.gmra.mrb[16].mxu0 %vm471_vm0, %v15261_v18  ;;  %v3697_v18 = vld [vmem:[#allocation2 + $0x229] sm:$0xff] }
 0x209   : > { %12485 = vmatprep.mubr.msk.f32.mxu0 %vm471_vm0, %v15263_v19  ;;  %v3698_v19 = vld [vmem:[#allocation2 + $0x231] sm:$0xff] }
 0x20c   : > { %12486 = vmatmul.mubr.msk.f32.gmra.mrb[18].mxu0 %vm471_vm0, %v15269_v20  ;;  %v15869_v20 = vld [vmem:[#allocation5] sm:$0xff] }
 0x20d   : > { %12488 = vmatprep.mubr.msk.f32.mxu0 %vm471_vm0, %v15271_v21  ;;  %4239 = vst.msk [vmem:[#allocation3] sm:$0xff] %vm4183_vm3, %v15869_v20  ;;  %4240 = vst.msk [vmem:[#allocation3 + $0x8] sm:$0xff] %vm4183_vm3, %v15869_v20  ;;  %v4300_v21 = vld [vmem:[#allocation10 + $0x20] sm:$0xff] }
 0x20e   : > { %4243 = vst.msk [vmem:[#allocation3 + $0x18] sm:$0xff] %vm4183_vm3, %v15869_v20  ;;  %4244 = vst.msk [vmem:[#allocation3 + $0x20] sm:$0xff] %vm4183_vm3, %v15869_v20 }
 0x20f   : > { %4246 = vst.msk [vmem:[#allocation3 + $0x30] sm:$0xff] %vm4183_vm3, %v15869_v20  ;;  %4247 = vst.msk [vmem:[#allocation3 + $0x38] sm:$0xff] %vm4183_vm3, %v15869_v20 }
 0x210   : > { %12489 = vmatmul.mubr.msk.f32.gmra.mrb[20].mxu0 %vm471_vm0, %v15277_v22  ;;  %4249 = vst.msk [vmem:[#allocation3 + $0x48] sm:$0xff] %vm4183_vm3, %v15869_v20  ;;  %4250 = vst.msk [vmem:[#allocation3 + $0x50] sm:$0xff] %vm4183_vm3, %v15869_v20  ;;  %v4301_v22 = vld [vmem:[#allocation10 + $0x28] sm:$0xff] }
 0x211   : > { %12491 = vmatprep.mubr.msk.f32.mxu0 %vm471_vm0, %v15279_v23  ;;  %4252 = vst.msk [vmem:[#allocation3 + $0x60] sm:$0xff] %vm4183_vm3, %v15869_v20  ;;  %4253 = vst.msk [vmem:[#allocation3 + $0x68] sm:$0xff] %vm4183_vm3, %v15869_v20  ;;  %v13668_v23 = vpack.c.bf16 %v4301_v22, %v4300_v21 }
 0x212   : > { %4255 = vst.msk [vmem:[#allocation3 + $0x78] sm:$0xff] %vm4183_vm3, %v15869_v20  ;;  %4256 = vst.msk [vmem:[#allocation3 + $0x80] sm:$0xff] %vm4183_vm3, %v15869_v20 }
 0x213   : > { %4258 = vst.msk [vmem:[#allocation3 + $0x90] sm:$0xff] %vm4183_vm3, %v15869_v20  ;;  %4259 = vst.msk [vmem:[#allocation3 + $0x98] sm:$0xff] %vm4183_vm3, %v15869_v20  ;;  %13669 = vmatprep.subr.bf16.mxu1 %v13668_v23 }
 0x214   : > { %12492 = vmatmul.mubr.msk.f32.gmra.mrb[22].mxu0 %vm471_vm0, %v15285_v24  ;;  %4261 = vst.msk [vmem:[#allocation3 + $0xa8] sm:$0xff] %vm4183_vm3, %v15869_v20  ;;  %4262 = vst.msk [vmem:[#allocation3 + $0xb0] sm:$0xff] %vm4183_vm3, %v15869_v20  ;;  %13671 = vmatpush3.bf16.msra.mxu1 %v13668_v23  ;;  %v4302_v24 = vld [vmem:[#allocation10 + $0x30] sm:$0xff] }
 0x215   : > { %12494 = vmatprep.mubr.msk.f32.mxu0 %vm471_vm0, %v15287_v27  ;;  %4264 = vst.msk [vmem:[#allocation3 + $0xc0] sm:$0xff] %vm4183_vm3, %v15869_v20  ;;  %4265 = vst.msk [vmem:[#allocation3 + $0xc8] sm:$0xff] %vm4183_vm3, %v15869_v20  ;;  %v4303_v27 = vld [vmem:[#allocation10 + $0x38] sm:$0xff] }
 0x216   : > { %4267 = vst.msk [vmem:[#allocation3 + $0xd8] sm:$0xff] %vm4183_vm3, %v15869_v20  ;;  %4268 = vst.msk [vmem:[#allocation3 + $0xe0] sm:$0xff] %vm4183_vm3, %v15869_v20 }
 0x217   : > { %4242 = vst.msk [vmem:[#allocation3 + $0x10] sm:$0x1] %vm4241_vm4, %v15869_v20  ;;  %4245 = vst.msk [vmem:[#allocation3 + $0x28] sm:$0x1] %vm4241_vm4, %v15869_v20 }
 0x218   : > { %12495 = vmatmul.mubr.msk.f32.gmra.mrb[24].mxu0 %vm471_vm0, %v15297_v31  ;;  %4248 = vst.msk [vmem:[#allocation3 + $0x40] sm:$0x1] %vm4241_vm4, %v15869_v20  ;;  %4251 = vst.msk [vmem:[#allocation3 + $0x58] sm:$0x1] %vm4241_vm4, %v15869_v20  ;;  %v13672_v31 = vpack.c.bf16 %v4303_v27, %v4302_v24 }
 0x219   : > { %12497 = vmatprep.mubr.msk.f32.mxu0 %vm471_vm0, %v15299_v37  ;;  %4254 = vst.msk [vmem:[#allocation3 + $0x70] sm:$0x1] %vm4241_vm4, %v15869_v20  ;;  %4257 = vst.msk [vmem:[#allocation3 + $0x88] sm:$0x1] %vm4241_vm4, %v15869_v20  ;;  %v4291_v37 = vld [vmem:[#allocation3 + $0x8] sm:$0xff] }
 0x21a   : > { %4260 = vst.msk [vmem:[#allocation3 + $0xa0] sm:$0x1] %vm4241_vm4, %v15869_v20  ;;  %4263 = vst.msk [vmem:[#allocation3 + $0xb8] sm:$0x1] %vm4241_vm4, %v15869_v20  ;;  %13673 = vmatprep.subr.bf16.mxu1 %v13672_v31  ;;  %12614 = vmatprep.mubr.msk.f32.mxu1 %vm4183_vm3, %v4291_v37 }
 0x21b   : > { %4266 = vst.msk [vmem:[#allocation3 + $0xd0] sm:$0x1] %vm4241_vm4, %v15869_v20  ;;  %4269 = vst.msk [vmem:[#allocation3 + $0xe8] sm:$0x1] %vm4241_vm4, %v15869_v20  ;;  %13675 = vmatpush3.bf16.msra.mxu1 %v13672_v31 }
 0x21c   : > { %12498 = vmatmul.mubr.msk.f32.gmra.mrb[26].mxu0 %vm471_vm0, %v15305_v42  ;;  %v15922_v42 = vpop.f32.mrb[0].mxu1  ;;  %5681 = vst.msk [vmem:[#allocation4 + $0x8] sm:$0x1f] %vm5680_vm6, %v15869_v20  ;;  %5683 = vst.msk [vmem:[#allocation4 + $0x18] sm:$0x1f] %vm5680_vm6, %v15869_v20 }
 0x21d   : > { %12500 = vmatprep.mubr.msk.f32.mxu0 %vm471_vm0, %v15528_v62  ;;  %v15940_v62 = vld [vmem:[%s17440_s2] ss:$0 sm:$0xff]  ;;  %5679 = vst.msk [vmem:[#allocation4] sm:$0xff] %vm5655_vm5, %v15869_v20  ;;  %5682 = vst.msk [vmem:[#allocation4 + $0x10] sm:$0xff] %vm5655_vm5, %v15869_v20 }
 0x21e   : > { %5684 = vst.msk [vmem:[#allocation4 + $0x20] sm:$0xff] %vm5655_vm5, %v15869_v20  ;;  %5686 = vst.msk [vmem:[#allocation4 + $0x30] sm:$0xff] %vm5655_vm5, %v15869_v20 }
 0x21f   : > { %5685 = vst.msk [vmem:[#allocation4 + $0x28] sm:$0x1f] %vm5680_vm6, %v15869_v20  ;;  %5687 = vst.msk [vmem:[#allocation4 + $0x38] sm:$0x1f] %vm5680_vm6, %v15869_v20 }
 0x220   : > { %12501 = vmatmul.mubr.msk.f32.gmra.mrb[28].mxu0 %vm471_vm0, %v15534_v0  ;;  %5688 = vst.msk [vmem:[#allocation4 + $0x40] sm:$0xff] %vm5655_vm5, %v15869_v20  ;;  %5690 = vst.msk [vmem:[#allocation4 + $0x50] sm:$0xff] %vm5655_vm5, %v15869_v20 }
 0x221   : > { %12503 = vmatprep.mubr.msk.f32.mxu0 %vm471_vm0, %v2917_v1  ;;  %5689 = vst.msk [vmem:[#allocation4 + $0x48] sm:$0x1f] %vm5680_vm6, %v15869_v20  ;;  %5691 = vst.msk [vmem:[#allocation4 + $0x58] sm:$0x1f] %vm5680_vm6, %v15869_v20 }
 0x224   : > { %12504 = vmatmul.mubr.msk.f32.gmra.mrb[30].mxu0 %vm471_vm0, %v2918_v2 }
 0x225   : > { %12508 = vmatprep.mubr.msk.f32.mxu0 %vm471_vm0, %v3277_v3 }
 0x228   : > { %12509 = vmatmul.mubr.msk.f32.vlgmr.msra.gmra.mrb[0].mxu0 %vm471_vm0, %v3278_v4 }
 0x229   : > { %12511 = vmatprep.mubr.msk.f32.mxu0 %vm471_vm0, %v3279_v5  ;;  %12557 = vmatpush3.msk.msra.mxu0 %vm773_vm2, %v10929_v29 }
 0x22c   : > { %12512 = vmatmul.mubr.msk.f32.gmra.mrb[2].mxu0 %vm471_vm0, %v3280_v6 }
 0x22d   : > { %12514 = vmatprep.mubr.msk.f32.mxu0 %vm471_vm0, %v3281_v7 }
 0x230   : > { %12515 = vmatmul.mubr.msk.f32.gmra.mrb[4].mxu0 %vm471_vm0, %v3282_v8 }
 0x231   : > { %12517 = vmatprep.mubr.msk.f32.mxu0 %vm471_vm0, %v3283_v9 }
 0x234   : > { %12518 = vmatmul.mubr.msk.f32.gmra.mrb[6].mxu0 %vm471_vm0, %v15103_v39  ;;  %v3307_v39 = vld [vmem:[#allocation2 + $0x228] sm:$0xff] }
 0x235   : > { %12520 = vmatprep.mubr.msk.f32.mxu0 %vm471_vm0, %v15105_v40  ;;  %v17575_v40 = vld [vmem:[#allocation41_spill] sm:$0xff] }
 0x238   : > { %12521 = vmatmul.mubr.msk.f32.gmra.mrb[8].mxu0 %vm471_vm0, %v15109_v41  ;;  %v3308_v41 = vld [vmem:[#allocation2 + $0x230] sm:$0xff] }
 0x239   : > { %12523 = vmatprep.mubr.msk.f32.mxu0 %vm471_vm0, %v15120_v47  ;;  %v17576_v47 = vld [vmem:[#allocation18_spill] sm:$0xff] }
 0x23c   : > { %12524 = vmatmul.mubr.msk.f32.gmra.mrb[10].mxu0 %vm471_vm0, %v15131_v49  ;;  %v17577_v49 = vld [vmem:[#allocation19_spill] sm:$0xff] }
 0x23d   : > { %12526 = vmatprep.mubr.msk.f32.mxu0 %vm471_vm0, %v15133_v50  ;;  %v17578_v50 = vld [vmem:[#allocation20_spill] sm:$0xff] }
 0x240   : > { %12527 = vmatmul.mubr.msk.f32.gmra.mrb[12].mxu0 %vm471_vm0, %v15139_v51  ;;  %v17579_v51 = vld [vmem:[#allocation21_spill] sm:$0xff] }
 0x241   : > { %12529 = vmatprep.mubr.msk.f32.mxu0 %vm471_vm0, %v15141_v52  ;;  %v17580_v52 = vld [vmem:[#allocation22_spill] sm:$0xff] }
 0x244   : > { %12530 = vmatmul.mubr.msk.f32.gmra.mrb[14].mxu0 %vm471_vm0, %v15147_v53  ;;  %v17581_v53 = vld [vmem:[#allocation23_spill] sm:$0xff] }
 0x245   : > { %12532 = vmatprep.mubr.msk.f32.mxu0 %vm471_vm0, %v15149_v54  ;;  %v17582_v54 = vld [vmem:[#allocation24_spill] sm:$0xff] }
 0x248   : > { %12533 = vmatmul.mubr.msk.f32.gmra.mrb[16].mxu0 %vm471_vm0, %v15155_v55  ;;  %v17583_v55 = vld [vmem:[#allocation25_spill] sm:$0xff] }
 0x249   : > { %12535 = vmatprep.mubr.msk.f32.mxu0 %vm471_vm0, %v15157_v56  ;;  %v17584_v56 = vld [vmem:[#allocation26_spill] sm:$0xff] }
 0x24c   : > { %12536 = vmatmul.mubr.msk.f32.gmra.mrb[18].mxu0 %vm471_vm0, %v15163_v57  ;;  %v17585_v57 = vld [vmem:[#allocation27_spill] sm:$0xff] }
 0x24d   : > { %12538 = vmatprep.mubr.msk.f32.mxu0 %vm471_vm0, %v15165_v58  ;;  %v17586_v58 = vld [vmem:[#allocation28_spill] sm:$0xff] }
 0x250   : > { %12539 = vmatmul.mubr.msk.f32.gmra.mrb[20].mxu0 %vm471_vm0, %v15171_v59  ;;  %v17587_v59 = vld [vmem:[#allocation29_spill] sm:$0xff] }
 0x251   : > { %12541 = vmatprep.mubr.msk.f32.mxu0 %vm471_vm0, %v15410_v63 }
 0x254   : > { %12542 = vmatmul.mubr.msk.f32.gmra.mrb[22].mxu0 %vm471_vm0, %v15416_v60 }
 0x255   : > { %12544 = vmatprep.mubr.msk.f32.mxu0 %vm471_vm0, %v17546_v25 }
 0x258   : > { %12545 = vmatmul.mubr.msk.f32.gmra.mrb[24].mxu0 %vm471_vm0, %v15432_v43  ;;  %v4288_v43 = vld [vmem:[#allocation10 + $0x8] sm:$0xff] }
 0x259   : > { %12547 = vmatprep.mubr.msk.f32.mxu0 %vm471_vm0, %v15442_v30  ;;  %v4287_v30 = vld [vmem:[#allocation10] sm:$0xff] }
 0x25c   : > { %12548 = vmatmul.mubr.msk.f32.gmra.mrb[26].mxu0 %vm471_vm0, %v15448_v45  ;;  %v15924_v45 = vpop.f32.mrb[1].mxu1 }
 0x25d   : > { %12550 = vmatprep.mubr.msk.f32.mxu0 %vm471_vm0, %v15601_v26  ;;  %v15926_v60 = vpop.f32.mrb[2].mxu1 }
 0x260   : > { %12551 = vmatmul.mubr.msk.f32.gmra.mrb[28].mxu0 %vm471_vm0, %v17575_v40 }
 0x261   : > { %12553 = vmatprep.mubr.msk.f32.mxu0 %vm471_vm0, %v3307_v39 }
 0x264   : > { %12554 = vmatmul.mubr.msk.f32.gmra.mrb[30].mxu0 %vm471_vm0, %v3308_v41 }
 0x265   : > { %12558 = vmatprep.mubr.msk.f32.mxu0 %vm471_vm0, %v17576_v47 }
 0x268   : > { %12559 = vmatmul.mubr.msk.f32.vlgmr.msra.gmra.mrb[0].mxu0 %vm471_vm0, %v17577_v49 }
 0x269   : > { %12561 = vmatprep.mubr.msk.f32.mxu0 %vm471_vm0, %v17578_v50 }
 0x26c   : > { %12562 = vmatmul.mubr.msk.f32.gmra.mrb[2].mxu0 %vm471_vm0, %v17579_v51 }
 0x26d   : > { %12564 = vmatprep.mubr.msk.f32.mxu0 %vm471_vm0, %v17580_v52 }
 0x270   : > { %12565 = vmatmul.mubr.msk.f32.gmra.mrb[4].mxu0 %vm471_vm0, %v17581_v53 }
 0x271   : > { %12567 = vmatprep.mubr.msk.f32.mxu0 %vm471_vm0, %v17582_v54 }
 0x274   : > { %12568 = vmatmul.mubr.msk.f32.gmra.mrb[6].mxu0 %vm471_vm0, %v17583_v55 }
 0x275   : > { %12570 = vmatprep.mubr.msk.f32.mxu0 %vm471_vm0, %v17584_v56 }
 0x278   : > { %12571 = vmatmul.mubr.msk.f32.gmra.mrb[8].mxu0 %vm471_vm0, %v17585_v57 }
 0x279   : > { %12573 = vmatprep.mubr.msk.f32.mxu0 %vm471_vm0, %v17586_v58 }
 0x27c   : > { %12574 = vmatmul.mubr.msk.f32.gmra.mrb[10].mxu0 %vm471_vm0, %v17587_v59 }
 0x27d   : > { %12576 = vmatprep.mubr.msk.f32.mxu0 %vm471_vm0, %v17588_v10 }
 0x280   : > { %12577 = vmatmul.mubr.msk.f32.gmra.mrb[12].mxu0 %vm471_vm0, %v17589_v11 }
 0x281   : > { %12579 = vmatprep.mubr.msk.f32.mxu0 %vm471_vm0, %v17590_v12 }
 0x284   : > { %12580 = vmatmul.mubr.msk.f32.gmra.mrb[14].mxu0 %vm471_vm0, %v17591_v13 }
 0x285   : > { %12582 = vmatprep.mubr.msk.f32.mxu0 %vm471_vm0, %v17592_v14 }
 0x288   : > { %12583 = vmatmul.mubr.msk.f32.gmra.mrb[16].mxu0 %vm471_vm0, %v17567_v36 }
 0x289   : > { %12585 = vmatprep.mubr.msk.f32.mxu0 %vm471_vm0, %v17568_v38 }
 0x28c   : > { %12586 = vmatmul.mubr.msk.f32.gmra.mrb[18].mxu0 %vm471_vm0, %v17593_v15 }
 0x28d   : > { %12588 = vmatprep.mubr.msk.f32.mxu0 %vm471_vm0, %v17570_v32 }
 0x290   : > { %12589 = vmatmul.mubr.msk.f32.gmra.mrb[20].mxu0 %vm471_vm0, %v17571_v34 }
 0x291   : > { %12591 = vmatprep.mubr.msk.f32.mxu0 %vm471_vm0, %v17594_v16 }
 0x294   : > { %12592 = vmatmul.mubr.msk.f32.gmra.mrb[22].mxu0 %vm471_vm0, %v17573_v46 }
 0x295   : > { %12594 = vmatprep.mubr.msk.f32.mxu0 %vm471_vm0, %v17574_v28  ;;  %v15946_v28 = vld [vmem:[%s17441_s3] ss:$0 sm:$0xff] }
 0x298   : > { %12595 = vmatmul.mubr.msk.f32.gmra.mrb[24].mxu0 %vm471_vm0, %v15446_v44  ;;  %v15934_v44 = vpack.c.bf16 %v4288_v43, %v4287_v30 }
 0x299   : > { %12597 = vmatprep.mubr.msk.f32.mxu0 %vm471_vm0, %v17595_v17 }
 0x29a   : > { %13677 = vmatprep.subr.bf16.mxu1 %v15934_v44 }
 0x29c   : > { %12598 = vmatmul.mubr.msk.f32.gmra.mrb[26].mxu0 %vm471_vm0, %v15460_v61  ;;  %v15928_v61 = vpop.f32.mrb[3].mxu1 }
 0x29d   : > { %12600 = vmatprep.mubr.msk.f32.mxu0 %vm471_vm0, %v15674_v48  ;;  %v15930_v29 = vpop.f32.mrb[4].mxu1 }
 0x29e   : > { %v15932_v63 = vpop.f32.mrb[5].mxu1 }
 0x2a0   : > { %12601 = vmatmul.mubr.msk.f32.gmra.mrb[28].mxu0 %vm471_vm0, %v15680_v35 }
 0x2a1   : > { %12603 = vmatprep.mubr.msk.f32.mxu0 %vm471_vm0, %v3697_v18 }
 0x2a4   : > { %12604 = vmatmul.mubr.msk.f32.gmra.mrb[30].mxu0 %vm471_vm0, %v3698_v19 }
 0x2a5   : > { %13315 = vmatprep.mubr.msk.f32.mxu0 %vm14683_vm7, %v15869_v20 }
 0x33b   : > { %v12560_v0 = vpop.f32.mrb[0].mxu0 }
 0x33c   : > { %v4065_v25 = vmul.f32 %v12560_v0, %v15940_v62  ;;  %v3866_v26 = vpop.f32.mrb[1].mxu0 }
 0x33d   : > { %v4064_v33 = vmul.f32 %v15940_v62, %v3866_v26 }
 0x33e   : > { %v4104_v36 = vadd.f32 %v15946_v28, %v4065_v25 }
 0x33f   : > { %v12563_v35 = vpop.f32.mrb[2].mxu0  ;;  %v4103_v32 = vadd.f32 %v15946_v28, %v4064_v33 }
 0x340   : > { %v4067_v38 = vmul.f32 %v12563_v35, %v15940_v62  ;;  %v3876_v48 = vpop.f32.mrb[3].mxu0  ;;  %v4136_v3 = vmax.f32 %v4104_v36, 0.0 }
 0x341   : > { %v4066_v34 = vmul.f32 %v15940_v62, %v3876_v48  ;;  %v4135_v7 = vmax.f32 %v4103_v32, 0.0  ;;  %v4290_v48 = vld [vmem:[#allocation10 + $0x18] sm:$0xff] }
 0x342   : > { %v4106_v46 = vadd.f32 %v15946_v28, %v4067_v38  ;;  %v4289_v38 = vld [vmem:[#allocation10 + $0x10] sm:$0xff] }
 0x343   : > { %v4105_v1 = vadd.f32 %v15946_v28, %v4066_v34  ;;  %v12566_v2 = vpop.f32.mrb[4].mxu0 }
 0x344   : > { %v4138_v4 = vmax.f32 %v4106_v46, 0.0  ;;  %v4069_v5 = vmul.f32 %v12566_v2, %v15940_v62  ;;  %v3886_v6 = vpop.f32.mrb[5].mxu0 }
 0x345   : > { %v4137_v8 = vmax.f32 %v4105_v1, 0.0  ;;  %v4068_v9 = vmul.f32 %v15940_v62, %v3886_v6 }
 0x346   : > { %v4168_v39 = vmax.f32 %v4136_v3, %v4138_v4  ;;  %v4108_v47 = vadd.f32 %v15946_v28, %v4069_v5 }
 0x347   : > { %v4167_v40 = vmax.f32 %v4135_v7, %v4137_v8  ;;  %v12569_v41 = vpop.f32.mrb[6].mxu0  ;;  %v4107_v51 = vadd.f32 %v15946_v28, %v4068_v9  ;;  %v13680_v8 = vpack.c.bf16 %v4290_v48, %v4289_v38 }
 0x348   : > { %4185 = vst.msk [vmem:[#allocation6 + $0x8] sm:$0xff] %vm4183_vm3, %v4168_v39  ;;  %v4071_v49 = vmul.f32 %v12569_v41, %v15940_v62  ;;  %v3896_v50 = vpop.f32.mrb[7].mxu0  ;;  %v4140_v56 = vmax.f32 %v4108_v47, 0.0  ;;  %v4572_v41 = vld [vmem:[#allocation10 + $0x48] sm:$0xff] }
 0x349   : > { %4184 = vst.msk [vmem:[#allocation6] sm:$0xff] %vm4183_vm3, %v4167_v40  ;;  %v4070_v52 = vmul.f32 %v15940_v62, %v3896_v50  ;;  %v4139_v10 = vmax.f32 %v4107_v51, 0.0  ;;  %v4571_v40 = vld [vmem:[#allocation10 + $0x40] sm:$0xff] }
 0x34a   : > { %v4110_v53 = vadd.f32 %v15946_v28, %v4071_v49 }
 0x34b   : > { %v4109_v54 = vadd.f32 %v15946_v28, %v4070_v52  ;;  %v12572_v55 = vpop.f32.mrb[8].mxu0 }
 0x34c   : > { %v4142_v57 = vmax.f32 %v4110_v53, 0.0  ;;  %v4073_v58 = vmul.f32 %v12572_v55, %v15940_v62  ;;  %v3906_v59 = vpop.f32.mrb[9].mxu0 }
 0x34d   : > { %v4141_v11 = vmax.f32 %v4109_v54, 0.0  ;;  %v4072_v12 = vmul.f32 %v15940_v62, %v3906_v59 }
 0x34e   : > { %v4170_v13 = vmax.f32 %v4140_v56, %v4142_v57  ;;  %v4112_v18 = vadd.f32 %v15946_v28, %v4073_v58  ;;  %v15994_v57 = vpack.c.bf16 %v4572_v41, %v4571_v40 }
 0x34f   : > { %v4169_v14 = vmax.f32 %v4139_v10, %v4141_v11  ;;  %v12575_v15 = vpop.f32.mrb[10].mxu0  ;;  %v4111_v23 = vadd.f32 %v15946_v28, %v4072_v12 }
 0x350   : > { %v4200_v16 = vld [vmem:[#allocation6] ss:$2 sm:$0xff]  ;;  %v4216_v17 = vld [vmem:[#allocation6 + $0x1] ss:$2 sm:$0xff]  ;;  %4187 = vst.msk [vmem:[#allocation6 + $0x18] sm:$0xff] %vm4183_vm3, %v4170_v13  ;;  %v4075_v19 = vmul.f32 %v12575_v15, %v15940_v62  ;;  %v3916_v21 = vpop.f32.mrb[11].mxu0 }
 0x351   : > { %v4231_v22 = vmax.f32 %v4200_v16, %v4216_v17  ;;  %4186 = vst.msk [vmem:[#allocation6 + $0x10] sm:$0xff] %vm4183_vm3, %v4169_v14  ;;  %v4074_v24 = vmul.f32 %v15940_v62, %v3916_v21  ;;  %v4144_v30 = vmax.f32 %v4112_v18, 0.0  ;;  %v4143_v26 = vmax.f32 %v4111_v23, 0.0 }
 0x352   : > { %v4114_v27 = vadd.f32 %v15946_v28, %v4075_v19 }
 0x353   : > { %4271 = vst.msk [vmem:[#allocation3 + $0x20] sm:$0xff] %vm4183_vm3, %v4231_v22  ;;  %v4113_v31 = vadd.f32 %v15946_v28, %v4074_v24  ;;  %v12578_v37 = vpop.f32.mrb[12].mxu0 }
 0x354   : > { %v4146_v43 = vmax.f32 %v4114_v27, 0.0  ;;  %v4077_v0 = vmul.f32 %v12578_v37, %v15940_v62  ;;  %v3926_v25 = vpop.f32.mrb[13].mxu0 }
 0x355   : > { %v4145_v33 = vmax.f32 %v4113_v31, 0.0  ;;  %v4076_v35 = vmul.f32 %v15940_v62, %v3926_v25 }
 0x356   : > { %v4172_v36 = vmax.f32 %v4144_v30, %v4146_v43  ;;  %v4116_v2 = vadd.f32 %v15946_v28, %v4077_v0 }
 0x357   : > { %v4171_v32 = vmax.f32 %v4143_v26, %v4145_v33  ;;  %v12581_v34 = vpop.f32.mrb[14].mxu0  ;;  %v4115_v6 = vadd.f32 %v15946_v28, %v4076_v35 }
 0x358   : > { %v4202_v46 = vld [vmem:[#allocation6 + $0x10] ss:$2 sm:$0xff]  ;;  %v4218_v1 = vld [vmem:[#allocation6 + $0x11] ss:$2 sm:$0xff]  ;;  %4189 = vst.msk [vmem:[#allocation6 + $0x28] sm:$0xff] %vm4183_vm3, %v4172_v36  ;;  %v4079_v3 = vmul.f32 %v12581_v34, %v15940_v62  ;;  %v3936_v4 = vpop.f32.mrb[15].mxu0 }
 0x359   : > { %v4232_v5 = vmax.f32 %v4202_v46, %v4218_v1  ;;  %4188 = vst.msk [vmem:[#allocation6 + $0x20] sm:$0xff] %vm4183_vm3, %v4171_v32  ;;  %v4078_v7 = vmul.f32 %v15940_v62, %v3936_v4  ;;  %v4148_v50 = vmax.f32 %v4116_v2, 0.0  ;;  %v4147_v54 = vmax.f32 %v4115_v6, 0.0 }
 0x35a   : > { %v4118_v9 = vadd.f32 %v15946_v28, %v4079_v3  ;;  %v15985_v39 = vld [vmem:[#allocation3 + $0x20] sm:$0xff] }
 0x35b   : > { %4272 = vst.msk [vmem:[#allocation3 + $0x38] sm:$0xff] %vm4183_vm3, %v4232_v5  ;;  %v4117_v47 = vadd.f32 %v15946_v28, %v4078_v7  ;;  %v12584_v49 = vpop.f32.mrb[16].mxu0  ;;  %12615 = vmatmul.mubr.msk.f32.vlgmr.msra.gmra.mrb[6].mxu1 %vm4183_vm3, %v15985_v39 }
 0x35c   : > { %v4150_v51 = vmax.f32 %v4118_v9, 0.0  ;;  %v4081_v52 = vmul.f32 %v12584_v49, %v15940_v62  ;;  %v3946_v53 = vpop.f32.mrb[17].mxu0  ;;  %13679 = vmatpush3.bf16.msra.mxu1 %v15934_v44 }
 0x35d   : > { %v4149_v55 = vmax.f32 %v4117_v47, 0.0  ;;  %v4080_v56 = vmul.f32 %v15940_v62, %v3946_v53  ;;  %13681 = vmatprep.subr.bf16.mxu1 %v13680_v8 }
 0x35e   : > { %v4174_v58 = vmax.f32 %v4148_v50, %v4150_v51  ;;  %v4120_v13 = vadd.f32 %v15946_v28, %v4081_v52 }
 0x35f   : > { %v4173_v59 = vmax.f32 %v4147_v54, %v4149_v55  ;;  %v12587_v10 = vpop.f32.mrb[18].mxu0  ;;  %v4119_v16 = vadd.f32 %v15946_v28, %v4080_v56 }
 0x360   : > { %v4204_v11 = vld [vmem:[#allocation6 + $0x20] ss:$2 sm:$0xff]  ;;  %v4220_v12 = vld [vmem:[#allocation6 + $0x21] ss:$2 sm:$0xff]  ;;  %4191 = vst.msk [vmem:[#allocation6 + $0x38] sm:$0xff] %vm4183_vm3, %v4174_v58  ;;  %v4083_v14 = vmul.f32 %v12587_v10, %v15940_v62  ;;  %v3956_v15 = vpop.f32.mrb[19].mxu0  ;;  %13683 = vmatpush3.bf16.msra.mxu1 %v13680_v8 }
 0x361   : > { %v4233_v44 = vmax.f32 %v4204_v11, %v4220_v12  ;;  %4190 = vst.msk [vmem:[#allocation6 + $0x30] sm:$0xff] %vm4183_vm3, %v4173_v59  ;;  %v4082_v17 = vmul.f32 %v15940_v62, %v3956_v15  ;;  %13685 = vmatprep.subr.bf16.mxu1 %v15994_v57  ;;  %v4152_v23 = vmax.f32 %v4120_v13, 0.0  ;;  %v4151_v37 = vmax.f32 %v4119_v16, 0.0 }
 0x362   : > { %v4122_v18 = vadd.f32 %v15946_v28, %v4083_v14  ;;  %v16004_v19 = vld [vmem:[#allocation3 + $0x38] sm:$0xff] }
 0x363   : > { %4273 = vst.msk [vmem:[#allocation3 + $0x50] sm:$0xff] %vm4183_vm3, %v4233_v44  ;;  %v4121_v21 = vadd.f32 %v15946_v28, %v4082_v17  ;;  %v12590_v22 = vpop.f32.mrb[20].mxu0  ;;  %12617 = vmatprep.mubr.msk.f32.mxu1 %vm4183_vm3, %v16004_v19 }
 0x364   : > { %v4154_v24 = vmax.f32 %v4122_v18, 0.0  ;;  %v4085_v27 = vmul.f32 %v12590_v22, %v15940_v62  ;;  %v3966_v31 = vpop.f32.mrb[21].mxu0 }
 0x365   : > { %v4153_v30 = vmax.f32 %v4121_v21, 0.0  ;;  %v4084_v43 = vmul.f32 %v15940_v62, %v3966_v31 }
 0x366   : > { %v4176_v0 = vmax.f32 %v4152_v23, %v4154_v24  ;;  %v4124_v36 = vadd.f32 %v15946_v28, %v4085_v27 }
 0x367   : > { %v4175_v25 = vmax.f32 %v4151_v37, %v4153_v30  ;;  %v12593_v26 = vpop.f32.mrb[22].mxu0  ;;  %v4123_v34 = vadd.f32 %v15946_v28, %v4084_v43 }
 0x368   : > { %v4206_v33 = vld [vmem:[#allocation6 + $0x30] ss:$2 sm:$0xff]  ;;  %v4222_v35 = vld [vmem:[#allocation6 + $0x31] ss:$2 sm:$0xff]  ;;  %4193 = vst.msk [vmem:[#allocation6 + $0x48] sm:$0xff] %vm4183_vm3, %v4176_v0  ;;  %v4087_v38 = vmul.f32 %v12593_v26, %v15940_v62  ;;  %v3976_v48 = vpop.f32.mrb[23].mxu0 }
 0x369   : > { %v4234_v32 = vmax.f32 %v4206_v33, %v4222_v35  ;;  %4192 = vst.msk [vmem:[#allocation6 + $0x40] sm:$0xff] %vm4183_vm3, %v4175_v25  ;;  %v4086_v46 = vmul.f32 %v15940_v62, %v3976_v48  ;;  %v4156_v5 = vmax.f32 %v4124_v36, 0.0  ;;  %v4155_v8 = vmax.f32 %v4123_v34, 0.0 }
 0x36a   : > { %v4126_v1 = vadd.f32 %v15946_v28, %v4087_v38  ;;  %v16019_v2 = vld [vmem:[#allocation3 + $0x50] sm:$0xff] }
 0x36b   : > { %4274 = vst.msk [vmem:[#allocation3 + $0x68] sm:$0xff] %vm4183_vm3, %v4234_v32  ;;  %v4125_v3 = vadd.f32 %v15946_v28, %v4086_v46  ;;  %v12596_v4 = vpop.f32.mrb[24].mxu0  ;;  %12618 = vmatmul.mubr.msk.f32.gmra.mrb[8].mxu1 %vm4183_vm3, %v16019_v2 }
 0x36c   : > { %v4158_v6 = vmax.f32 %v4126_v1, 0.0  ;;  %v3986_v7 = vpop.f32.mrb[25].mxu0  ;;  %v4089_v41 = vmul.f32 %v12596_v4, %v15940_v62 }
 0x36d   : > { %v4157_v9 = vmax.f32 %v4125_v3, 0.0  ;;  %v4088_v49 = vmul.f32 %v15940_v62, %v3986_v7  ;;  %v4279_v7 = vld [vmem:[#allocation3 + $0x7] sm:$0xff] }
 0x36e   : > { %v4178_v40 = vmax.f32 %v4156_v5, %v4158_v6  ;;  %v4128_v58 = vadd.f32 %v15946_v28, %v4089_v41  ;;  %v4574_v41 = vld [vmem:[#allocation10 + $0x58] sm:$0xff] }
 0x36f   : > { %v4177_v47 = vmax.f32 %v4155_v8, %v4157_v9  ;;  %v12599_v50 = vpop.f32.mrb[26].mxu0  ;;  %v4127_v11 = vadd.f32 %v15946_v28, %v4088_v49  ;;  %v11040_v49 = vld [vmem:[%s17445_s7 + $0x48] sm:$0xff] }
 0x370   : > { %v4208_v51 = vld [vmem:[#allocation6 + $0x40] ss:$2 sm:$0xff]  ;;  %v4224_v52 = vld [vmem:[#allocation6 + $0x41] ss:$2 sm:$0xff]  ;;  %4195 = vst.msk [vmem:[#allocation6 + $0x58] sm:$0xff] %vm4183_vm3, %v4178_v40  ;;  %v14174_v53 = vadd.f32 %v12599_v50, %v15922_v42  ;;  %v3996_v54 = vpop.f32.mrb[27].mxu0 }
 0x371   : > { %v4235_v55 = vmax.f32 %v4208_v51, %v4224_v52  ;;  %4194 = vst.msk [vmem:[#allocation6 + $0x50] sm:$0xff] %vm4183_vm3, %v4177_v47  ;;  %v14175_v56 = vadd.f32 %v3996_v54, %v15924_v45  ;;  %v4160_v16 = vmax.f32 %v4128_v58, 0.0  ;;  %v4159_v21 = vmax.f32 %v4127_v11, 0.0  ;;  %v4573_v40 = vld [vmem:[#allocation10 + $0x50] sm:$0xff]  ;;  %v11039_v47 = vld [vmem:[%s17445_s7 + $0x40] sm:$0xff]  ;;  %v4722_v58 = vld [vmem:[#allocation10 + $0x68] sm:$0xff] }
 0x372   : > { %v4091_v59 = vmul.f32 %v14174_v53, %v15940_v62  ;;  %v16033_v10 = vld [vmem:[#allocation3 + $0x68] sm:$0xff]  ;;  %v16080_v50 = vpack.c.bf16 %v11040_v49, %v11039_v47  ;;  %v14682_v51 = vmov 0.0|0.0   ;;  %v13688_v52 = vpack.c.bf16 %v4574_v41, %v4573_v40  ;;  %v11041_v53 = vld [vmem:[%s17445_s7 + $0x50] sm:$0xff]  ;;  %v11042_v54 = vld [vmem:[%s17445_s7 + $0x58] sm:$0xff] }
 0x373   : > { %4275 = vst.msk [vmem:[#allocation3 + $0x80] sm:$0xff] %vm4183_vm3, %v4235_v55  ;;  %v4090_v12 = vmul.f32 %v14175_v56, %v15940_v62  ;;  %v12602_v13 = vpop.f32.mrb[28].mxu0  ;;  %12620 = vmatprep.mubr.msk.f32.mxu1 %vm4183_vm3, %v16033_v10  ;;  %14064 = vmatprep.subr.bf16.mxu0 %v14682_v51  ;;  %v16091_v55 = vld [vmem:[#allocation3 + $0x1f] sm:$0xff]  ;;  %v4721_v56 = vld [vmem:[#allocation10 + $0x60] sm:$0xff]  ;;  %v16126_v11 = vpack.c.bf16 %v11042_v54, %v11041_v53  ;;  %v5323_v41 = vld [vmem:[#allocation10 + $0xe8] sm:$0xff] }
 0x374   : > { %v4130_v42 = vadd.f32 %v15946_v28, %v4091_v59  ;;  %v14176_v45 = vadd.f32 %v12602_v13, %v15926_v60  ;;  %v4006_v14 = vpop.f32.mrb[29].mxu0  ;;  %14066 = vmatpush3.bf16.msra.mxu0 %v16080_v50  ;;  %v16120_v59 = vld [vmem:[#allocation3 + $0x37] sm:$0xff]  ;;  %v11043_v13 = vld [vmem:[%s17445_s7 + $0x60] sm:$0xff]  ;;  %v5322_v40 = vld [vmem:[#allocation10 + $0xe0] sm:$0xff] }
 0x375   : > { %v4129_v15 = vadd.f32 %v15946_v28, %v4090_v12  ;;  %v14177_v44 = vadd.f32 %v4006_v14, %v15928_v61  ;;  %14067 = vmatprep.subr.bf16.mxu0 %v14682_v51  ;;  %v13692_v12 = vpack.c.bf16 %v4722_v58, %v4721_v56  ;;  %v13724_v47 = vpack.c.bf16 %v5323_v41, %v5322_v40  ;;  %v5325_v53 = vld [vmem:[#allocation10 + $0xf8] sm:$0xff]  ;;  %v5473_v56 = vld [vmem:[#allocation10 + $0x108] sm:$0xff] }
 0x376   : > { %v4162_v17 = vmax.f32 %v4130_v42, 0.0  ;;  %v4093_v18 = vmul.f32 %v14176_v45, %v15940_v62  ;;  %v11044_v42 = vld [vmem:[%s17445_s7 + $0x68] sm:$0xff] }
 0x377   : > { %v4161_v22 = vmax.f32 %v4129_v15, 0.0  ;;  %v4092_v23 = vmul.f32 %v14177_v44, %v15940_v62  ;;  %v12605_v24 = vpop.f32.mrb[30].mxu0  ;;  %v16134_v45 = vld [vmem:[#allocation3 + $0x4f] sm:$0xff]  ;;  %v16144_v14 = vpack.c.bf16 %v11044_v42, %v11043_v13  ;;  %v11046_v44 = vld [vmem:[%s17445_s7 + $0x78] sm:$0xff]  ;;  %v5475_v13 = vld [vmem:[#allocation10 + $0x118] sm:$0xff] }
 0x378   : > { %v4210_v27 = vld [vmem:[#allocation6 + $0x50] ss:$2 sm:$0xff]  ;;  %v4226_v31 = vld [vmem:[#allocation6 + $0x51] ss:$2 sm:$0xff]  ;;  %v4180_v37 = vmax.f32 %v4160_v16, %v4162_v17  ;;  %v14178_v30 = vadd.f32 %v12605_v24, %v15930_v29  ;;  %v4016_v60 = vpop.f32.mrb[31].mxu0  ;;  %v4132_v61 = vadd.f32 %v15946_v28, %v4093_v18  ;;  %14069 = vmatpush3.bf16.msra.mxu0 %v16126_v11  ;;  %v11045_v15 = vld [vmem:[%s17445_s7 + $0x70] sm:$0xff] }
 0x379   : > { %v4236_v43 = vmax.f32 %v4210_v27, %v4226_v31  ;;  %v4179_v0 = vmax.f32 %v4159_v21, %v4161_v22  ;;  %v14179_v25 = vadd.f32 %v4016_v60, %v15932_v63  ;;  %v4131_v35 = vadd.f32 %v15946_v28, %v4092_v23  ;;  %14070 = vmatprep.subr.bf16.mxu0 %v14682_v51  ;;  %v4562_v21 = vld [vmem:[#allocation3 + $0x9] sm:$0xff]  ;;  %v4723_v23 = vld [vmem:[#allocation10 + $0x70] sm:$0xff]  ;;  %v4724_v24 = vld [vmem:[#allocation10 + $0x78] sm:$0xff] }
 0x37a   : > { %4197 = vst.msk [vmem:[#allocation6 + $0x68] sm:$0xff] %vm4183_vm3, %v4180_v37  ;;  %v4095_v26 = vmul.f32 %v14178_v30, %v15940_v62  ;;  %v16051_v33 = vld [vmem:[#allocation3 + $0x80] sm:$0xff]  ;;  %v4164_v38 = vmax.f32 %v4132_v61, 0.0  ;;  %v16162_v18 = vpack.c.bf16 %v11046_v44, %v11045_v15  ;;  %v13696_v27 = vpack.c.bf16 %v4724_v24, %v4723_v23  ;;  %v4871_v37 = vld [vmem:[#allocation10 + $0x80] sm:$0xff]  ;;  %v4872_v30 = vld [vmem:[#allocation10 + $0x88] sm:$0xff] }
 0x37b   : > { %4276 = vst.msk [vmem:[#allocation3 + $0x98] sm:$0xff] %vm4183_vm3, %v4236_v43  ;;  %4196 = vst.msk [vmem:[#allocation6 + $0x60] sm:$0xff] %vm4183_vm3, %v4179_v0  ;;  %v4094_v29 = vmul.f32 %v14179_v25, %v15940_v62  ;;  %12621 = vmatmul.mubr.msk.f32.gmra.mrb[10].mxu1 %vm4183_vm3, %v16051_v33  ;;  %v4163_v32 = vmax.f32 %v4131_v35, 0.0  ;;  %v16152_v16 = vld [vmem:[#allocation3 + $0x7f] sm:$0xff]  ;;  %v13700_v43 = vpack.c.bf16 %v4872_v30, %v4871_v37  ;;  %v16176_v0 = vld [vmem:[#allocation3 + $0x51] sm:$0xff] }
 0x37c   : > { %v4134_v63 = vadd.f32 %v15946_v28, %v4095_v26  ;;  %14072 = vmatpush3.bf16.msra.mxu0 %v16144_v14  ;;  %v4563_v31 = vld [vmem:[#allocation3 + $0x21] sm:$0xff]  ;;  %v16172_v60 = vld [vmem:[#allocation3 + $0x39] sm:$0xff]  ;;  %v16180_v25 = vld [vmem:[#allocation3 + $0x69] sm:$0xff] }
 0x37d   : > { %v4133_v36 = vadd.f32 %v15946_v28, %v4094_v29  ;;  %14073 = vmatprep.subr.bf16.mxu0 %v14682_v51  ;;  %v16184_v61 = vld [vmem:[#allocation3 + $0x81] sm:$0xff]  ;;  %v4873_v29 = vld [vmem:[#allocation10 + $0x90] sm:$0xff]  ;;  %v11051_v30 = vld [vmem:[%s17445_s7 + $0x90] sm:$0xff] }
 0x37e   : > { %v4166_v48 = vmax.f32 %v4134_v63, 0.0  ;;  %v4874_v63 = vld [vmem:[#allocation10 + $0x98] sm:$0xff] }
 0x37f   : > { %v4165_v34 = vmax.f32 %v4133_v36, 0.0  ;;  %v13704_v36 = vpack.c.bf16 %v4874_v63, %v4873_v29  ;;  %v5703_v44 = vld [vmem:[%s17445_s7 + $0x20] sm:$0xff]  ;;  %v11059_v63 = vld [vmem:[%s17445_s7 + $0xc8] sm:$0xff] }
 0x380   : > { %v4182_v46 = vmax.f32 %v4164_v38, %v4166_v48  ;;  %14075 = vmatpush3.bf16.msra.mxu0 %v16162_v18  ;;  %v5021_v38 = vld [vmem:[#allocation10 + $0xa0] sm:$0xff]  ;;  %v5022_v48 = vld [vmem:[#allocation10 + $0xa8] sm:$0xff]  ;;  %v11049_v24 = vld [vmem:[%s17445_s7 + $0x80] sm:$0xff] }
 0x381   : > { %v4181_v1 = vmax.f32 %v4163_v32, %v4165_v34  ;;  %14076 = vmatprep.subr.bf16.mxu0 %v14682_v51  ;;  %v13708_v32 = vpack.c.bf16 %v5022_v48, %v5021_v38  ;;  %v11058_v29 = vld [vmem:[%s17445_s7 + $0xc0] sm:$0xff]  ;;  %v5863_v38 = vld [vmem:[#allocation4 + $0x9] sm:$0xf]  ;;  %v11060_v48 = vld [vmem:[%s17445_s7 + $0xd0] sm:$0xff] }
 0x382   : > { %v4212_v3 = vld [vmem:[#allocation6 + $0x60] ss:$2 sm:$0xff]  ;;  %v4228_v4 = vld [vmem:[#allocation6 + $0x61] ss:$2 sm:$0xff]  ;;  %4199 = vst.msk [vmem:[#allocation6 + $0x78] sm:$0xff] %vm4183_vm3, %v4182_v46 }
 0x383   : > { %v16062_v5 = vld [vmem:[#allocation3 + $0x98] sm:$0xff]  ;;  %4198 = vst.msk [vmem:[#allocation6 + $0x70] sm:$0xff] %vm4183_vm3, %v4181_v1  ;;  %v4237_v62 = vmax.f32 %v4212_v3, %v4228_v4  ;;  %v5024_v1 = vld [vmem:[#allocation10 + $0xb8] sm:$0xff]  ;;  %v5172_v4 = vld [vmem:[#allocation10 + $0xc0] sm:$0xff] }
 0x384   : > { %12623 = vmatprep.mubr.msk.f32.mxu1 %vm4183_vm3, %v16062_v5  ;;  %v16157_v17 = vld [vmem:[#allocation3 + $0x97] sm:$0xff] }
 0x385   : > { %4277 = vst.msk [vmem:[#allocation3 + $0xb0] sm:$0xff] %vm4183_vm3, %v4237_v62  ;;  %v16188_v26 = vld [vmem:[#allocation3 + $0x99] sm:$0xff]  ;;  %v5173_v62 = vld [vmem:[#allocation10 + $0xc8] sm:$0xff] }
 0x386   : > { %v5023_v46 = vld [vmem:[#allocation10 + $0xb0] sm:$0xff] }
 0x387   : > { %v13712_v3 = vpack.c.bf16 %v5024_v1, %v5023_v46  ;;  %v11062_v1 = vld [vmem:[%s17445_s7 + $0xe0] sm:$0xff] }
 0x38a   : > { %v4214_v28 = vld [vmem:[#allocation6 + $0x70] ss:$2 sm:$0xff]  ;;  %v4230_v6 = vld [vmem:[#allocation6 + $0x71] ss:$2 sm:$0xff] }
 0x38b   : > { %v4238_v8 = vmax.f32 %v4214_v28, %v4230_v6  ;;  %v13716_v28 = vpack.c.bf16 %v5173_v62, %v5172_v4  ;;  %v5174_v6 = vld [vmem:[#allocation10 + $0xd0] sm:$0xff]  ;;  %v11064_v62 = vld [vmem:[%s17445_s7 + $0xf0] sm:$0xff] }
 0x38c   : > { %v16068_v9 = vld [vmem:[#allocation3 + $0xb0] sm:$0xff] }
 0x38d   : > { %12624 = vmatmul.mubr.msk.f32.gmra.mrb[12].mxu1 %vm4183_vm3, %v16068_v9  ;;  %4278 = vst.msk [vmem:[#allocation3 + $0xc8] sm:$0xff] %vm4183_vm3, %v4238_v8  ;;  %v16164_v22 = vld [vmem:[#allocation3 + $0xaf] sm:$0xff] }
 0x38e   : > { %12634 = vmatprep.mubr.msk.f32.mxu1 %vm4183_vm3, %v4279_v7  ;;  %v16192_v35 = vld [vmem:[#allocation3 + $0xb1] sm:$0xff]  ;;  %v5175_v7 = vld [vmem:[#allocation10 + $0xd8] sm:$0xff] }
 0x38f   : > { %v13720_v8 = vpack.c.bf16 %v5175_v7, %v5174_v6  ;;  %v11037_v6 = vld [vmem:[%s17443_s5] ss:$0 sm:$0xff] }
 0x391   : > { %12635 = vmatmul.mubr.msk.f32.vlgmr.msra.gmra.mrb[6].mxu1 %vm4183_vm3, %v16091_v55 }
 0x392   : > { %12637 = vmatprep.mubr.msk.f32.mxu1 %vm4183_vm3, %v16120_v59  ;;  %13687 = vmatpush3.bf16.msra.mxu1 %v15994_v57  ;;  %v16139_v57 = vld [vmem:[#allocation3 + $0x67] sm:$0xff] }
 0x393   : > { %13689 = vmatprep.subr.bf16.mxu1 %v13688_v52 }
 0x394   : > { %v4719_v34 = vld [vmem:[#allocation3 + $0xc7] sm:$0xff] }
 0x395   : > { %12638 = vmatmul.mubr.msk.f32.gmra.mrb[8].mxu1 %vm4183_vm3, %v16134_v45  ;;  %v5019_v49 = vld [vmem:[#allocation3 + $0xc9] sm:$0xff] }
 0x396   : > { %12640 = vmatprep.mubr.msk.f32.mxu1 %vm4183_vm3, %v16139_v57  ;;  %13691 = vmatpush3.bf16.msra.mxu1 %v13688_v52  ;;  %v5324_v52 = vld [vmem:[#allocation10 + $0xf0] sm:$0xff] }
 0x397   : > { %13693 = vmatprep.subr.bf16.mxu1 %v13692_v12  ;;  %v13728_v54 = vpack.c.bf16 %v5325_v53, %v5324_v52 }
 0x399   : > { %12641 = vmatmul.mubr.msk.f32.gmra.mrb[10].mxu1 %vm4183_vm3, %v16152_v16 }
 0x39a   : > { %12643 = vmatprep.mubr.msk.f32.mxu1 %vm4183_vm3, %v16157_v17 }
 0x39d   : > { %12644 = vmatmul.mubr.msk.f32.gmra.mrb[12].mxu1 %vm4183_vm3, %v16164_v22 }
 0x39e   : > { %12654 = vmatprep.mubr.msk.f32.mxu1 %vm4183_vm3, %v4562_v21  ;;  %v5705_v21 = vld [vmem:[%s17445_s7 + $0x30] sm:$0xff] }
 0x3a1   : > { %12655 = vmatmul.mubr.msk.f32.vlgmr.msra.gmra.mrb[6].mxu1 %vm4183_vm3, %v4563_v31 }
 0x3a2   : > { %12657 = vmatprep.mubr.msk.f32.mxu1 %vm4183_vm3, %v16172_v60  ;;  %13695 = vmatpush3.bf16.msra.mxu1 %v13692_v12  ;;  %v5474_v12 = vld [vmem:[#allocation10 + $0x110] sm:$0xff] }
 0x3a3   : > { %13697 = vmatprep.subr.bf16.mxu1 %v13696_v27  ;;  %v13736_v42 = vpack.c.bf16 %v5475_v13, %v5474_v12 }
 0x3a5   : > { %12658 = vmatmul.mubr.msk.f32.gmra.mrb[8].mxu1 %vm4183_vm3, %v16176_v0 }
 0x3a6   : > { %12660 = vmatprep.mubr.msk.f32.mxu1 %vm4183_vm3, %v16180_v25  ;;  %13699 = vmatpush3.bf16.msra.mxu1 %v13696_v27  ;;  %v11050_v27 = vld [vmem:[%s17445_s7 + $0x88] sm:$0xff] }
 0x3a7   : > { %13701 = vmatprep.subr.bf16.mxu1 %v13700_v43  ;;  %v16341_v37 = vpack.c.bf16 %v11050_v27, %v11049_v24 }
 0x3a9   : > { %12661 = vmatmul.mubr.msk.f32.gmra.mrb[10].mxu1 %vm4183_vm3, %v16184_v61 }
 0x3aa   : > { %12663 = vmatprep.mubr.msk.f32.mxu1 %vm4183_vm3, %v16188_v26 }
 0x3ad   : > { %12664 = vmatmul.mubr.msk.f32.gmra.mrb[12].mxu1 %vm4183_vm3, %v16192_v35 }
 0x3ae   : > { %12674 = vmatprep.mubr.msk.f32.mxu1 %vm4183_vm3, %v16091_v55  ;;  %v5472_v55 = vld [vmem:[#allocation10 + $0x100] sm:$0xff] }
 0x3af   : > { %v13732_v58 = vpack.c.bf16 %v5473_v56, %v5472_v55 }
 0x3b1   : > { %12675 = vmatmul.mubr.msk.f32.vlgmr.msra.gmra.mrb[6].mxu1 %vm4183_vm3, %v16120_v59 }
 0x3b2   : > { %12677 = vmatprep.mubr.msk.f32.mxu1 %vm4183_vm3, %v16134_v45  ;;  %13703 = vmatpush3.bf16.msra.mxu1 %v13700_v43 }
 0x3b3   : > { %13705 = vmatprep.subr.bf16.mxu1 %v13704_v36 }
 0x3b5   : > { %12678 = vmatmul.mubr.msk.f32.gmra.mrb[8].mxu1 %vm4183_vm3, %v16139_v57 }
 0x3b6   : > { %12680 = vmatprep.mubr.msk.f32.mxu1 %vm4183_vm3, %v16152_v16  ;;  %13707 = vmatpush3.bf16.msra.mxu1 %v13704_v36  ;;  %v16385_v36 = vpack.c.bf16 %v11059_v63, %v11058_v29 }
 0x3b7   : > { %13709 = vmatprep.subr.bf16.mxu1 %v13708_v32 }
 0x3b9   : > { %12681 = vmatmul.mubr.msk.f32.gmra.mrb[10].mxu1 %vm4183_vm3, %v16157_v17 }
 0x3ba   : > { %12683 = vmatprep.mubr.msk.f32.mxu1 %vm4183_vm3, %v16164_v22 }
 0x3bd   : > { %12684 = vmatmul.mubr.msk.f32.gmra.mrb[12].mxu1 %vm4183_vm3, %v4719_v34 }
 0x3be   : > { %12694 = vmatprep.mubr.msk.f32.mxu1 %vm4183_vm3, %v15985_v39  ;;  %v4869_v39 = vld [vmem:[#allocation3 + $0xc8] sm:$0xff] }
 0x3c1   : > { %12695 = vmatmul.mubr.msk.f32.vlgmr.msra.gmra.mrb[6].mxu1 %vm4183_vm3, %v16004_v19 }
 0x3c2   : > { %12697 = vmatprep.mubr.msk.f32.mxu1 %vm4183_vm3, %v16019_v2  ;;  %13711 = vmatpush3.bf16.msra.mxu1 %v13708_v32  ;;  %v11061_v32 = vld [vmem:[%s17445_s7 + $0xd8] sm:$0xff] }
 0x3c3   : > { %13713 = vmatprep.subr.bf16.mxu1 %v13712_v3  ;;  %v16400_v46 = vpack.c.bf16 %v11061_v32, %v11060_v48 }
 0x3c5   : > { %12698 = vmatmul.mubr.msk.f32.gmra.mrb[8].mxu1 %vm4183_vm3, %v16033_v10 }
 0x3c6   : > { %12700 = vmatprep.mubr.msk.f32.mxu1 %vm4183_vm3, %v16051_v33  ;;  %13715 = vmatpush3.bf16.msra.mxu1 %v13712_v3  ;;  %v11063_v3 = vld [vmem:[%s17445_s7 + $0xe8] sm:$0xff] }
 0x3c7   : > { %13717 = vmatprep.subr.bf16.mxu1 %v13716_v28  ;;  %v16410_v4 = vpack.c.bf16 %v11063_v3, %v11062_v1 }
 0x3c9   : > { %12701 = vmatmul.mubr.msk.f32.gmra.mrb[10].mxu1 %vm4183_vm3, %v16062_v5 }
 0x3ca   : > { %12703 = vmatprep.mubr.msk.f32.mxu1 %vm4183_vm3, %v16068_v9 }
 0x3cd   : > { %12704 = vmatmul.mubr.msk.f32.gmra.mrb[12].mxu1 %vm4183_vm3, %v4869_v39 }
 0x3ce   : > { %12714 = vmatprep.mubr.msk.f32.mxu1 %vm4183_vm3, %v4563_v31  ;;  %v5698_v31 = vld [vmem:[#allocation4 + $0x7] sm:$0xf] }
 0x3d1   : > { %12715 = vmatmul.mubr.msk.f32.vlgmr.msra.gmra.mrb[6].mxu1 %vm4183_vm3, %v16172_v60 }
 0x3d2   : > { %12717 = vmatprep.mubr.msk.f32.mxu1 %vm4183_vm3, %v16176_v0  ;;  %13719 = vmatpush3.bf16.msra.mxu1 %v13716_v28  ;;  %v11065_v28 = vld [vmem:[%s17445_s7 + $0xf8] sm:$0xff] }
 0x3d3   : > { %13721 = vmatprep.subr.bf16.mxu1 %v13720_v8 }
 0x3d5   : > { %12718 = vmatmul.mubr.msk.f32.gmra.mrb[8].mxu1 %vm4183_vm3, %v16180_v25 }
 0x3d6   : > { %12720 = vmatprep.mubr.msk.f32.mxu1 %vm4183_vm3, %v16184_v61  ;;  %13723 = vmatpush3.bf16.msra.mxu1 %v13720_v8  ;;  %v11038_v8 = vld [vmem:[%s17444_s6] ss:$0 sm:$0xff] }
 0x3d7   : > { %13725 = vmatprep.subr.bf16.mxu1 %v13724_v47 }
 0x3d9   : > { %12721 = vmatmul.mubr.msk.f32.gmra.mrb[10].mxu1 %vm4183_vm3, %v16188_v26 }
 0x3da   : > { %12723 = vmatprep.mubr.msk.f32.mxu1 %vm4183_vm3, %v16192_v35 }
 0x3dd   : > { %12724 = vmatmul.mubr.msk.f32.gmra.mrb[12].mxu1 %vm4183_vm3, %v5019_v49 }
 0x3de   : > { %12734 = vmatprep.mubr.msk.f32.mxu1 %vm4183_vm3, %v16120_v59  ;;  %v5170_v59 = vld [vmem:[#allocation3 + $0xdf] sm:$0xff] }
 0x3e1   : > { %12735 = vmatmul.mubr.msk.f32.vlgmr.msra.gmra.mrb[6].mxu1 %vm4183_vm3, %v16134_v45  ;;  %v5701_v45 = vld [vmem:[%s17445_s7 + $0x10] sm:$0xff] }
 0x3e2   : > { %12737 = vmatprep.mubr.msk.f32.mxu1 %vm4183_vm3, %v16139_v57  ;;  %13727 = vmatpush3.bf16.msra.mxu1 %v13724_v47  ;;  %v5702_v57 = vld [vmem:[%s17445_s7 + $0x18] sm:$0xff] }
 0x3e3   : > { %13729 = vmatprep.subr.bf16.mxu1 %v13728_v54  ;;  %v16309_v15 = vpack.c.bf16 %v5702_v57, %v5701_v45 }
 0x3e5   : > { %12738 = vmatmul.mubr.msk.f32.gmra.mrb[8].mxu1 %vm4183_vm3, %v16152_v16  ;;  %v5704_v16 = vld [vmem:[%s17445_s7 + $0x28] sm:$0xff] }
 0x3e6   : > { %12740 = vmatprep.mubr.msk.f32.mxu1 %vm4183_vm3, %v16157_v17  ;;  %13731 = vmatpush3.bf16.msra.mxu1 %v13728_v54  ;;  %v16321_v17 = vpack.c.bf16 %v5704_v16, %v5703_v44 }
 0x3e7   : > { %13733 = vmatprep.subr.bf16.mxu1 %v13732_v58 }
 0x3e9   : > { %12741 = vmatmul.mubr.msk.f32.gmra.mrb[10].mxu1 %vm4183_vm3, %v16164_v22  ;;  %v5706_v22 = vld [vmem:[%s17445_s7 + $0x38] sm:$0xff] }
 0x3ea   : > { %12743 = vmatprep.mubr.msk.f32.mxu1 %vm4183_vm3, %v4719_v34  ;;  %v16331_v23 = vpack.c.bf16 %v5706_v22, %v5705_v21  ;;  %v16395_v34 = vld [vmem:[#allocation5] sm:$0xff] }
 0x3ed   : > { %12744 = vmatmul.mubr.msk.f32.gmra.mrb[12].mxu1 %vm4183_vm3, %v5170_v59 }
 0x3ee   : > { %12754 = vmatprep.mubr.msk.f32.mxu1 %vm4183_vm3, %v16004_v19  ;;  %v5320_v19 = vld [vmem:[#allocation3 + $0xe0] sm:$0xff] }
 0x3f1   : > { %12755 = vmatmul.mubr.msk.f32.vlgmr.msra.gmra.mrb[6].mxu1 %vm4183_vm3, %v16019_v2  ;;  %v5470_v2 = vld [vmem:[#allocation3 + $0xe1] sm:$0xff] }
 0x3f2   : > { %12757 = vmatprep.mubr.msk.f32.mxu1 %vm4183_vm3, %v16033_v10  ;;  %13735 = vmatpush3.bf16.msra.mxu1 %v13732_v58  ;;  %v5699_v10 = vld [vmem:[%s17445_s7] sm:$0xff] }
 0x3f3   : > { %13737 = vmatprep.subr.bf16.mxu1 %v13736_v42 }
 0x3f5   : > { %12758 = vmatmul.mubr.msk.f32.gmra.mrb[8].mxu1 %vm4183_vm3, %v16051_v33  ;;  %v5700_v33 = vld [vmem:[%s17445_s7 + $0x8] sm:$0xff] }
 0x3f6   : > { %12760 = vmatprep.mubr.msk.f32.mxu1 %vm4183_vm3, %v16062_v5  ;;  %13739 = vmatpush3.bf16.msra.mxu1 %v13736_v42  ;;  %v5707_v5 = vld [vmem:[#allocation4 + $0x8] sm:$0xf] }
 0x3f7   : > { %13740 = vmatprep.subr.bf16.mxu1 %v14682_v51 }
 0x3f9   : > { %12761 = vmatmul.mubr.msk.f32.gmra.mrb[10].mxu1 %vm4183_vm3, %v16068_v9  ;;  %v16298_v9 = vpack.c.bf16 %v5700_v33, %v5699_v10 }
 0x3fa   : > { %12763 = vmatprep.mubr.msk.f32.mxu1 %vm4183_vm3, %v4869_v39  ;;  %v16420_v39 = vpack.c.bf16 %v11065_v28, %v11064_v62  ;;  %v11067_v62 = vld [vmem:[%s17445_s7 + $0x100] sm:$0xff]  ;;  %v11068_v28 = vld [vmem:[%s17445_s7 + $0x108] sm:$0xff] }
 0x3fd   : > { %12764 = vmatmul.mubr.msk.f32.gmra.mrb[12].mxu1 %vm4183_vm3, %v5320_v19 }
 0x3fe   : > { %12774 = vmatprep.mubr.msk.f32.mxu1 %vm4183_vm3, %v16172_v60  ;;  %v11052_v60 = vld [vmem:[%s17445_s7 + $0x98] sm:$0xff] }
 0x3ff   : > { %v16355_v43 = vpack.c.bf16 %v11052_v60, %v11051_v30 }
 0x401   : > { %12775 = vmatmul.mubr.msk.f32.vlgmr.msra.gmra.mrb[6].mxu1 %vm4183_vm3, %v16176_v0  ;;  %v11054_v0 = vld [vmem:[%s17445_s7 + $0xa8] sm:$0xff] }
 0x402   : > { %12777 = vmatprep.mubr.msk.f32.mxu1 %vm4183_vm3, %v16180_v25  ;;  %13742 = vmatpush3.bf16.msra.mxu1 %v16080_v50 }
 0x403   : > { %13743 = vmatprep.subr.bf16.mxu1 %v14682_v51 }
 0x405   : > { %12778 = vmatmul.mubr.msk.f32.gmra.mrb[8].mxu1 %vm4183_vm3, %v16184_v61  ;;  %v11055_v61 = vld [vmem:[%s17445_s7 + $0xb0] sm:$0xff] }
 0x406   : > { %12780 = vmatprep.mubr.msk.f32.mxu1 %vm4183_vm3, %v16188_v26  ;;  %13745 = vmatpush3.bf16.msra.mxu1 %v16126_v11  ;;  %v11056_v26 = vld [vmem:[%s17445_s7 + $0xb8] sm:$0xff] }
 0x407   : > { %13746 = vmatprep.subr.bf16.mxu1 %v14682_v51 }
 0x409   : > { %12781 = vmatmul.mubr.msk.f32.gmra.mrb[10].mxu1 %vm4183_vm3, %v16192_v35  ;;  %v16375_v35 = vpack.c.bf16 %v11056_v26, %v11055_v61 }
 0x40a   : > { %12783 = vmatprep.mubr.msk.f32.mxu1 %vm4183_vm3, %v5019_v49  ;;  %13748 = vmatpush3.bf16.msra.mxu1 %v16144_v14 }
 0x40b   : > { %13749 = vmatprep.subr.bf16.mxu1 %v14682_v51 }
 0x40d   : > { %12784 = vmatmul.mubr.msk.f32.gmra.mrb[12].mxu1 %vm4183_vm3, %v5470_v2 }
 0x40e   : > { %13751 = vmatpush3.bf16.msra.mxu1 %v16162_v18  ;;  %12802 = vmatprep.mubr.msk.f32.mxu1 %vm14683_vm7, %v15869_v20 }
 0x40f   : > { %13752 = vmatprep.subr.bf16.mxu1 %v14682_v51 }
 0x411   : > { %12803 = vmatmul.mubr.msk.f32.vlgmr.msra.gmra.mrb[14].mxu1 %vm5655_vm5, %v5707_v5 }
 0x412   : > { %13754 = vmatpush3.bf16.msra.mxu1 %v16298_v9  ;;  %12821 = vmatprep.mubr.msk.f32.mxu1 %vm14683_vm7, %v15869_v20 }
 0x413   : > { %13755 = vmatprep.subr.bf16.mxu1 %v14682_v51 }
 0x416   : > { %13757 = vmatpush3.bf16.msra.mxu1 %v16309_v15 }
 0x417   : > { %13758 = vmatprep.subr.bf16.mxu1 %v14682_v51 }
 0x41a   : > { %13760 = vmatpush3.bf16.msra.mxu1 %v16321_v17 }
 0x41b   : > { %13761 = vmatprep.subr.bf16.mxu1 %v14682_v51 }
 0x41e   : > { %13763 = vmatpush3.bf16.msra.mxu1 %v16331_v23 }
 0x41f   : > { %13764 = vmatprep.subr.bf16.mxu1 %v14682_v51 }
 0x421   : > { %12822 = vmatmul.mubr.msk.f32.vlgmr.msra.gmra.mrb[14].mxu1 %vm5655_vm5, %v5698_v31 }
 0x422   : > { %13766 = vmatpush3.bf16.msra.mxu1 %v16341_v37  ;;  %12840 = vmatprep.mubr.msk.f32.mxu1 %vm14683_vm7, %v15869_v20  ;;  %v11053_v20 = vld [vmem:[%s17445_s7 + $0xa0] sm:$0xff] }
 0x423   : > { %13767 = vmatprep.subr.bf16.mxu1 %v14682_v51  ;;  %v16365_v25 = vpack.c.bf16 %v11054_v0, %v11053_v20 }
 0x426   : > { %13769 = vmatpush3.bf16.msra.mxu1 %v16355_v43 }
 0x427   : > { %13770 = vmatprep.subr.bf16.mxu1 %v14682_v51 }
 0x42a   : > { %13772 = vmatpush3.bf16.msra.mxu1 %v16365_v25 }
 0x42b   : > { %13773 = vmatprep.subr.bf16.mxu1 %v14682_v51 }
 0x42e   : > { %13775 = vmatpush3.bf16.msra.mxu1 %v16375_v35 }
 0x42f   : > { %13776 = vmatprep.subr.bf16.mxu1 %v14682_v51 }
 0x431   : > { %12841 = vmatmul.mubr.msk.f32.vlgmr.msra.gmra.mrb[14].mxu1 %vm5655_vm5, %v5863_v38 }
 0x432   : > { %13778 = vmatpush3.bf16.msra.mxu1 %v16385_v36  ;;  %12859 = vmatprep.mubr.msk.f32.mxu1 %vm14683_vm7, %v16395_v34 }
 0x433   : > { %13779 = vmatprep.subr.bf16.mxu1 %v14682_v51 }
 0x436   : > { %13781 = vmatpush3.bf16.msra.mxu1 %v16400_v46 }
 0x437   : > { %13782 = vmatprep.subr.bf16.mxu1 %v14682_v51 }
 0x43a   : > { %13784 = vmatpush3.bf16.msra.mxu1 %v16410_v4 }
 0x43b   : > { %13785 = vmatprep.subr.bf16.mxu1 %v14682_v51 }
 0x43e   : > { %13787 = vmatpush3.bf16.msra.mxu1 %v16420_v39 }
 0x43f   : > { %13788 = vmatprep.subr.bf16.mxu1 %v14682_v51 }
 0x4d4   : > { %v12776_v7 = vpop.f32.mrb[6].mxu1 }
 0x4d5   : > { %v5621_v40 = vmul.f32 %v12776_v7, %v11037_v6  ;;  %v5566_v41 = vpop.f32.mrb[7].mxu1 }
 0x4d6   : > { %v5620_v47 = vmul.f32 %v11037_v6, %v5566_v41  ;;  %v11069_v41 = vld [vmem:[%s17445_s7 + $0x110] sm:$0xff] }
 0x4d7   : > { %v5636_v49 = vadd.f32 %v11038_v8, %v5621_v40 }
 0x4d8   : > { %v5635_v52 = vadd.f32 %v11038_v8, %v5620_v47  ;;  %v12779_v53 = vpop.f32.mrb[8].mxu1  ;;  %v11070_v47 = vld [vmem:[%s17445_s7 + $0x118] sm:$0xff] }
 0x4d9   : > { %v5644_v54 = vmax.f32 %v5636_v49, 0.0  ;;  %v5623_v55 = vmul.f32 %v12779_v53, %v11037_v6  ;;  %v5576_v56 = vpop.f32.mrb[9].mxu1 }
 0x4da   : > { %v5643_v58 = vmax.f32 %v5635_v52, 0.0  ;;  %v5622_v59 = vmul.f32 %v11037_v6, %v5576_v56  ;;  %v11071_v56 = vld [vmem:[%s17445_s7 + $0x120] sm:$0xff] }
 0x4db   : > { %v5638_v12 = vadd.f32 %v11038_v8, %v5623_v55 }
 0x4dc   : > { %v5651_v13 = vmax.f32 %v5643_v58, %v5644_v54  ;;  %v5637_v42 = vadd.f32 %v11038_v8, %v5622_v59  ;;  %v12782_v19 = vpop.f32.mrb[10].mxu1  ;;  %v16453_v54 = vpack.c.bf16 %v11070_v47, %v11069_v41  ;;  %v11072_v58 = vld [vmem:[%s17445_s7 + $0x128] sm:$0xff]  ;;  %v11096_v41 = vld [vmem:[%s17445_s7 + $0x1d0] sm:$0xff]  ;;  %v11097_v47 = vld [vmem:[%s17445_s7 + $0x1d8] sm:$0xff] }
 0x4dd   : > { %v5646_v2 = vmax.f32 %v5638_v12, 0.0  ;;  %v5625_v10 = vmul.f32 %v12782_v19, %v11037_v6  ;;  %v5586_v33 = vpop.f32.mrb[11].mxu1  ;;  %v16466_v59 = vpack.c.bf16 %v11072_v58, %v11071_v56  ;;  %v11073_v12 = vld [vmem:[%s17445_s7 + $0x130] sm:$0xff] }
 0x4de   : > { %5656 = vst.msk [vmem:[#allocation7] sm:$0xff] %vm5655_vm5, %v5651_v13  ;;  %v5645_v5 = vmax.f32 %v5637_v42, 0.0  ;;  %v5624_v45 = vmul.f32 %v11037_v6, %v5586_v33  ;;  %v11074_v13 = vld [vmem:[%s17445_s7 + $0x138] sm:$0xff]  ;;  %v11100_v58 = vld [vmem:[%s17445_s7 + $0x1f0] sm:$0xff] }
 0x4df   : > { %v5640_v57 = vadd.f32 %v11038_v8, %v5625_v10  ;;  %v16478_v19 = vpack.c.bf16 %v11074_v13, %v11073_v12  ;;  %v11077_v10 = vld [vmem:[%s17445_s7 + $0x148] sm:$0xff]  ;;  %v11101_v12 = vld [vmem:[%s17445_s7 + $0x1f8] sm:$0xff] }
 0x4e0   : > { %v5652_v44 = vmax.f32 %v5645_v5, %v5646_v2  ;;  %v5639_v16 = vadd.f32 %v11038_v8, %v5624_v45  ;;  %v12785_v21 = vpop.f32.mrb[12].mxu1  ;;  %v11076_v2 = vld [vmem:[%s17445_s7 + $0x140] sm:$0xff]  ;;  %v11078_v5 = vld [vmem:[%s17445_s7 + $0x150] sm:$0xff]  ;;  %v11079_v45 = vld [vmem:[%s17445_s7 + $0x158] sm:$0xff] }
 0x4e1   : > { %v5648_v22 = vmax.f32 %v5640_v57, 0.0  ;;  %v5627_v24 = vmul.f32 %v12785_v21, %v11037_v6  ;;  %v5596_v27 = vpop.f32.mrb[13].mxu1  ;;  %v16492_v33 = vpack.c.bf16 %v11077_v10, %v11076_v2  ;;  %v11081_v21 = vld [vmem:[%s17445_s7 + $0x168] sm:$0xff]  ;;  %v11103_v2 = vld [vmem:[%s17445_s7 + $0x200] sm:$0xff] }
 0x4e2   : > { %5657 = vst.msk [vmem:[#allocation7 + $0x8] sm:$0xff] %vm5655_vm5, %v5652_v44  ;;  %v5647_v31 = vmax.f32 %v5639_v16, 0.0  ;;  %v5626_v30 = vmul.f32 %v11037_v6, %v5596_v27  ;;  %v16505_v44 = vpack.c.bf16 %v11079_v45, %v11078_v5  ;;  %v11080_v16 = vld [vmem:[%s17445_s7 + $0x160] sm:$0xff]  ;;  %v11083_v27 = vld [vmem:[%s17445_s7 + $0x178] sm:$0xff]  ;;  %v11104_v10 = vld [vmem:[%s17445_s7 + $0x208] sm:$0xff] }
 0x4e3   : > { %v5642_v60 = vadd.f32 %v11038_v8, %v5627_v24  ;;  %v11082_v24 = vld [vmem:[%s17445_s7 + $0x170] sm:$0xff]  ;;  %v16654_v5 = vpack.c.bf16 %v11104_v10, %v11103_v2 }
 0x4e4   : > { %v5653_v20 = vmax.f32 %v5647_v31, %v5648_v22  ;;  %v5641_v0 = vadd.f32 %v11038_v8, %v5626_v30  ;;  %v16442_v8 = vpack.c.bf16 %v11068_v28, %v11067_v62  ;;  %v16519_v22 = vpack.c.bf16 %v11081_v21, %v11080_v16  ;;  %v11105_v45 = vld [vmem:[%s17445_s7 + $0x210] sm:$0xff] }
 0x4e5   : > { %v5660_v61 = vld [vmem:[#allocation7] ss:$2 sm:$0xf]  ;;  %v5668_v26 = vld [vmem:[#allocation7 + $0x1] ss:$2 sm:$0xf]  ;;  %v16532_v30 = vpack.c.bf16 %v11083_v27, %v11082_v24 }
 0x4e6   : > { %v5675_v29 = vmax.f32 %v5660_v61, %v5668_v26  ;;  %5658 = vst.msk [vmem:[#allocation7 + $0x10] sm:$0xff] %vm5655_vm5, %v5653_v20  ;;  %v5650_v63 = vmax.f32 %v5642_v60, 0.0  ;;  %v5649_v38 = vmax.f32 %v5641_v0, 0.0  ;;  %v11085_v60 = vld [vmem:[%s17445_s7 + $0x180] sm:$0xff]  ;;  %v11086_v20 = vld [vmem:[%s17445_s7 + $0x188] sm:$0xff]  ;;  %v11087_v61 = vld [vmem:[%s17445_s7 + $0x190] sm:$0xff] }
 0x4e7   : > { %v16546_v0 = vpack.c.bf16 %v11086_v20, %v11085_v60  ;;  %v11088_v26 = vld [vmem:[%s17445_s7 + $0x198] sm:$0xff]  ;;  %v11107_v24 = vld [vmem:[%s17445_s7 + $0x220] sm:$0xff]  ;;  %v11108_v27 = vld [vmem:[%s17445_s7 + $0x228] sm:$0xff] }
 0x4e8   : > { %v5654_v48 = vmax.f32 %v5649_v38, %v5650_v63  ;;  %5694 = vst.msk [vmem:[#allocation4 + $0x18] sm:$0xf] %vm5693_vm8, %v5675_v29  ;;  %v16559_v63 = vpack.c.bf16 %v11088_v26, %v11087_v61  ;;  %v11089_v38 = vld [vmem:[%s17445_s7 + $0x1a0] sm:$0xff]  ;;  %v11109_v60 = vld [vmem:[%s17445_s7 + $0x230] sm:$0xff]  ;;  %v11110_v20 = vld [vmem:[%s17445_s7 + $0x238] sm:$0xff] }
 0x4e9   : > { %v5662_v32 = vld [vmem:[#allocation7 + $0x8] ss:$2 sm:$0xf]  ;;  %v5670_v1 = vld [vmem:[#allocation7 + $0x9] ss:$2 sm:$0xf]  ;;  %v16694_v26 = vpack.c.bf16 %v11110_v20, %v11109_v60 }
 0x4ea   : > { %v5676_v3 = vmax.f32 %v5662_v32, %v5670_v1  ;;  %5659 = vst.msk [vmem:[#allocation7 + $0x18] sm:$0xff] %vm5655_vm5, %v5654_v48  ;;  %v11090_v48 = vld [vmem:[%s17445_s7 + $0x1a8] sm:$0xff]  ;;  %v11091_v1 = vld [vmem:[%s17445_s7 + $0x1b0] sm:$0xff]  ;;  %v11212_v20 = vld [vmem:[%s17445_s7 + $0xe0] sm:$0xff] }
 0x4eb   : > { %v16573_v32 = vpack.c.bf16 %v11090_v48, %v11089_v38  ;;  %v11205_v10 = vld [vmem:[%s17445_s7 + $0xb0] sm:$0xff] }
 0x4ec   : > { %5695 = vst.msk [vmem:[#allocation4 + $0x28] sm:$0xf] %vm5693_vm8, %v5676_v3  ;;  %v11092_v3 = vld [vmem:[%s17445_s7 + $0x1b8] sm:$0xff] }
 0x4ed   : > { %v5664_v6 = vld [vmem:[#allocation7 + $0x10] ss:$2 sm:$0xf]  ;;  %v5672_v7 = vld [vmem:[#allocation7 + $0x11] ss:$2 sm:$0xf]  ;;  %v16586_v28 = vpack.c.bf16 %v11092_v3, %v11091_v1 }
 0x4ee   : > { %v5677_v40 = vmax.f32 %v5664_v6, %v5672_v7  ;;  %v11094_v6 = vld [vmem:[%s17445_s7 + $0x1c0] sm:$0xff]  ;;  %v11095_v7 = vld [vmem:[%s17445_s7 + $0x1c8] sm:$0xff]  ;;  %v7239_v1 = vld [vmem:[%s17445_s7 + $0x18] sm:$0xff] }
 0x4ef   : > { %v5947_v49 = vld [vmem:[#allocation4 + $0x17] sm:$0xf] }
 0x4f0   : > { %12860 = vmatmul.mubr.msk.f32.vlgmr.msra.gmra.mrb[14].mxu1 %vm5655_vm5, %v5947_v49  ;;  %5696 = vst.msk [vmem:[#allocation4 + $0x38] sm:$0xf] %vm5693_vm8, %v5677_v40  ;;  %v6031_v57 = vld [vmem:[#allocation4 + $0x18] sm:$0xf]  ;;  %v16600_v40 = vpack.c.bf16 %v11095_v7, %v11094_v6 }
 0x4f1   : > { %v5666_v52 = vld [vmem:[#allocation7 + $0x18] ss:$2 sm:$0xf]  ;;  %v5674_v53 = vld [vmem:[#allocation7 + $0x19] ss:$2 sm:$0xf]  ;;  %13790 = vmatpush3.bf16.msra.mxu1 %v16442_v8  ;;  %12878 = vmatprep.mubr.msk.f32.mxu1 %vm14683_vm7, %v16395_v34 }
 0x4f2   : > { %v5678_v55 = vmax.f32 %v5666_v52, %v5674_v53  ;;  %13791 = vmatprep.subr.bf16.mxu1 %v14682_v51  ;;  %v6115_v29 = vld [vmem:[#allocation4 + $0x19] sm:$0xf]  ;;  %v16613_v52 = vpack.c.bf16 %v11097_v47, %v11096_v41  ;;  %v11098_v53 = vld [vmem:[%s17445_s7 + $0x1e0] sm:$0xff]  ;;  %v7243_v41 = vld [vmem:[%s17445_s7 + $0x38] sm:$0xff] }
 0x4f3   : > { %v6200_v49 = vld [vmem:[#allocation4 + $0x27] sm:$0xf]  ;;  %v7241_v6 = vld [vmem:[%s17445_s7 + $0x28] sm:$0xff] }
 0x4f4   : > { %5697 = vst.msk [vmem:[#allocation4 + $0x48] sm:$0xf] %vm5693_vm8, %v5678_v55  ;;  %v11099_v55 = vld [vmem:[%s17445_s7 + $0x1e8] sm:$0xff]  ;;  %v6284_v16 = vld [vmem:[#allocation4 + $0x28] sm:$0xf] }
 0x4f5   : > { %13793 = vmatpush3.bf16.msra.mxu1 %v16453_v54  ;;  %v16627_v56 = vpack.c.bf16 %v11099_v55, %v11098_v53  ;;  %v7244_v3 = vld [vmem:[#allocation4 + $0x28] sm:$0xf]  ;;  %v11201_v55 = vld [vmem:[%s17445_s7 + $0x90] sm:$0xff] }
 0x4f6   : > { %13794 = vmatprep.subr.bf16.mxu1 %v14682_v51 }
 0x4f7   : > { %v8009_v42 = vld [vmem:[#allocation4 + $0x38] sm:$0xf] }
 0x4f8   : > { %13316 = vmatmul.mubr.msk.f32.vlgmr.msra.gmra.mrb[32].mxu0 %vm5655_vm5, %v8009_v42  ;;  %v8000_v31 = vld [vmem:[#allocation4 + $0x37] sm:$0xf]  ;;  %v16640_v42 = vpack.c.bf16 %v11101_v12, %v11100_v58  ;;  %v7235_v58 = vld [vmem:[#allocation4 + $0x27] sm:$0xf] }
 0x4f9   : > { %13796 = vmatpush3.bf16.msra.mxu1 %v16466_v59  ;;  %14078 = vmatpush3.bf16.msra.mxu0 %v16298_v9  ;;  %v8164_v62 = vld [vmem:[#allocation4 + $0x39] sm:$0xf] }
 0x4fa   : > { %13797 = vmatprep.subr.bf16.mxu1 %v14682_v51  ;;  %14079 = vmatprep.subr.bf16.mxu0 %v14682_v51 }
 0x4fb   : > { %13334 = vmatprep.mubr.msk.f32.mxu0 %vm14683_vm7, %v16395_v34  ;;  %v8247_v13 = vld [vmem:[#allocation4 + $0x47] sm:$0xf] }
 0x4fc   : > { %v8330_v61 = vld [vmem:[#allocation4 + $0x48] sm:$0xf] }
 0x4fd   : > { %13799 = vmatpush3.bf16.msra.mxu1 %v16478_v19  ;;  %14081 = vmatpush3.bf16.msra.mxu0 %v16309_v15  ;;  %v8413_v38 = vld [vmem:[#allocation4 + $0x49] sm:$0xf] }
 0x4fe   : > { %13800 = vmatprep.subr.bf16.mxu1 %v14682_v51  ;;  %14082 = vmatprep.subr.bf16.mxu0 %v14682_v51 }
 0x500   : > { %12879 = vmatmul.mubr.msk.f32.vlgmr.msra.gmra.mrb[14].mxu1 %vm5655_vm5, %v6031_v57  ;;  %v11106_v57 = vld [vmem:[%s17445_s7 + $0x218] sm:$0xff] }
 0x501   : > { %13802 = vmatpush3.bf16.msra.mxu1 %v16492_v33  ;;  %14084 = vmatpush3.bf16.msra.mxu0 %v16321_v17  ;;  %v16667_v21 = vpack.c.bf16 %v11106_v57, %v11105_v45  ;;  %v11208_v57 = vld [vmem:[%s17445_s7 + $0xc0] sm:$0xff] }
 0x502   : > { %13803 = vmatprep.subr.bf16.mxu1 %v14682_v51  ;;  %14085 = vmatprep.subr.bf16.mxu0 %v14682_v51 }
 0x503   : > { %12897 = vmatprep.mubr.msk.f32.mxu1 %vm14683_vm7, %v16395_v34 }
 0x505   : > { %13805 = vmatpush3.bf16.msra.mxu1 %v16505_v44  ;;  %14087 = vmatpush3.bf16.msra.mxu0 %v16331_v23 }
 0x506   : > { %13806 = vmatprep.subr.bf16.mxu1 %v14682_v51  ;;  %14088 = vmatprep.subr.bf16.mxu0 %v14682_v51 }
 0x508   : > { %13335 = vmatmul.mubr.msk.f32.vlgmr.msra.gmra.mrb[32].mxu0 %vm5655_vm5, %v8000_v31  ;;  %v16681_v31 = vpack.c.bf16 %v11108_v27, %v11107_v24  ;;  %v11210_v24 = vld [vmem:[%s17445_s7 + $0xd0] sm:$0xff]  ;;  %v11211_v27 = vld [vmem:[%s17445_s7 + $0xd8] sm:$0xff] }
 0x509   : > { %13808 = vmatpush3.bf16.msra.mxu1 %v16519_v22  ;;  %14090 = vmatpush3.bf16.msra.mxu0 %v16341_v37  ;;  %v13996_v60 = vpack.c.bf16 %v11211_v27, %v11210_v24  ;;  %v11248_v27 = vld [vmem:[%s17445_s7 + $0x1e0] sm:$0xff] }
 0x50a   : > { %13809 = vmatprep.subr.bf16.mxu1 %v14682_v51  ;;  %14091 = vmatprep.subr.bf16.mxu0 %v14682_v51 }
 0x50b   : > { %13353 = vmatprep.mubr.msk.f32.mxu0 %vm14683_vm7, %v16395_v34 }
 0x50d   : > { %13811 = vmatpush3.bf16.msra.mxu1 %v16532_v30  ;;  %14093 = vmatpush3.bf16.msra.mxu0 %v16355_v43 }
 0x50e   : > { %13812 = vmatprep.subr.bf16.mxu1 %v14682_v51  ;;  %14094 = vmatprep.subr.bf16.mxu0 %v14682_v51 }
 0x510   : > { %12898 = vmatmul.mubr.msk.f32.vlgmr.msra.gmra.mrb[14].mxu1 %vm5655_vm5, %v6115_v29  ;;  %v6368_v29 = vld [vmem:[#allocation4 + $0x29] sm:$0xf] }
 0x511   : > { %13814 = vmatpush3.bf16.msra.mxu1 %v16546_v0  ;;  %14096 = vmatpush3.bf16.msra.mxu0 %v16365_v25 }
 0x512   : > { %13815 = vmatprep.subr.bf16.mxu1 %v14682_v51  ;;  %14097 = vmatprep.subr.bf16.mxu0 %v14682_v51 }
 0x513   : > { %12916 = vmatprep.mubr.msk.f32.mxu1 %vm14683_vm7, %v16395_v34 }
 0x515   : > { %13817 = vmatpush3.bf16.msra.mxu1 %v16559_v63  ;;  %14099 = vmatpush3.bf16.msra.mxu0 %v16375_v35 }
 0x516   : > { %13818 = vmatprep.subr.bf16.mxu1 %v14682_v51  ;;  %14100 = vmatprep.subr.bf16.mxu0 %v14682_v51 }
 0x518   : > { %13354 = vmatmul.mubr.msk.f32.vlgmr.msra.gmra.mrb[32].mxu0 %vm5655_vm5, %v8164_v62 }
 0x519   : > { %13820 = vmatpush3.bf16.msra.mxu1 %v16573_v32  ;;  %14102 = vmatpush3.bf16.msra.mxu0 %v16385_v36 }
 0x51a   : > { %13821 = vmatprep.subr.bf16.mxu1 %v14682_v51  ;;  %14103 = vmatprep.subr.bf16.mxu0 %v14682_v51 }
 0x51b   : > { %13372 = vmatprep.mubr.msk.f32.mxu0 %vm14683_vm7, %v16395_v34 }
 0x51d   : > { %13823 = vmatpush3.bf16.msra.mxu1 %v16586_v28  ;;  %14105 = vmatpush3.bf16.msra.mxu0 %v16400_v46 }
 0x51e   : > { %13824 = vmatprep.subr.bf16.mxu1 %v14682_v51  ;;  %14106 = vmatprep.subr.bf16.mxu0 %v14682_v51 }
 0x520   : > { %12917 = vmatmul.mubr.msk.f32.vlgmr.msra.gmra.mrb[14].mxu1 %vm5655_vm5, %v6200_v49  ;;  %v11199_v49 = vld [vmem:[%s17445_s7 + $0x80] sm:$0xff] }
 0x521   : > { %13826 = vmatpush3.bf16.msra.mxu1 %v16600_v40  ;;  %14108 = vmatpush3.bf16.msra.mxu0 %v16410_v4 }
 0x522   : > { %13827 = vmatprep.subr.bf16.mxu1 %v14682_v51  ;;  %14109 = vmatprep.subr.bf16.mxu0 %v14682_v51 }
 0x523   : > { %12935 = vmatprep.mubr.msk.f32.mxu1 %vm14683_vm7, %v16395_v34 }
 0x525   : > { %13829 = vmatpush3.bf16.msra.mxu1 %v16613_v52  ;;  %14111 = vmatpush3.bf16.msra.mxu0 %v16420_v39 }
 0x526   : > { %13830 = vmatprep.subr.bf16.mxu1 %v14682_v51  ;;  %14112 = vmatprep.subr.bf16.mxu0 %v14682_v51 }
 0x528   : > { %13373 = vmatmul.mubr.msk.f32.vlgmr.msra.gmra.mrb[32].mxu0 %vm5655_vm5, %v8247_v13  ;;  %v11203_v13 = vld [vmem:[%s17445_s7 + $0xa0] sm:$0xff] }
 0x529   : > { %13832 = vmatpush3.bf16.msra.mxu1 %v16627_v56  ;;  %14114 = vmatpush3.bf16.msra.mxu0 %v16442_v8 }
 0x52a   : > { %13833 = vmatprep.subr.bf16.mxu1 %v14682_v51  ;;  %14115 = vmatprep.subr.bf16.mxu0 %v14682_v51 }
 0x52b   : > { %13391 = vmatprep.mubr.msk.f32.mxu0 %vm14683_vm7, %v16395_v34 }
 0x52d   : > { %13835 = vmatpush3.bf16.msra.mxu1 %v16640_v42  ;;  %14117 = vmatpush3.bf16.msra.mxu0 %v16453_v54 }
 0x52e   : > { %13836 = vmatprep.subr.bf16.mxu1 %v14682_v51  ;;  %14118 = vmatprep.subr.bf16.mxu0 %v14682_v51 }
 0x530   : > { %12936 = vmatmul.mubr.msk.f32.vlgmr.msra.gmra.mrb[14].mxu1 %vm5655_vm5, %v6284_v16  ;;  %v11209_v16 = vld [vmem:[%s17445_s7 + $0xc8] sm:$0xff] }
 0x531   : > { %13838 = vmatpush3.bf16.msra.mxu1 %v16654_v5  ;;  %14120 = vmatpush3.bf16.msra.mxu0 %v16466_v59 }
 0x532   : > { %13839 = vmatprep.subr.bf16.mxu1 %v14682_v51  ;;  %14121 = vmatprep.subr.bf16.mxu0 %v14682_v51 }
 0x533   : > { %12954 = vmatprep.mubr.msk.f32.mxu1 %vm14683_vm7, %v16395_v34 }
 0x535   : > { %13841 = vmatpush3.bf16.msra.mxu1 %v16667_v21  ;;  %14123 = vmatpush3.bf16.msra.mxu0 %v16478_v19 }
 0x536   : > { %13842 = vmatprep.subr.bf16.mxu1 %v14682_v51  ;;  %14124 = vmatprep.subr.bf16.mxu0 %v14682_v51 }
 0x538   : > { %13392 = vmatmul.mubr.msk.f32.vlgmr.msra.gmra.mrb[32].mxu0 %vm5655_vm5, %v8330_v61  ;;  %v11213_v61 = vld [vmem:[%s17445_s7 + $0xe8] sm:$0xff] }
 0x539   : > { %13844 = vmatpush3.bf16.msra.mxu1 %v16681_v31  ;;  %14126 = vmatpush3.bf16.msra.mxu0 %v16492_v33 }
 0x53a   : > { %13845 = vmatprep.subr.bf16.mxu1 %v14682_v51  ;;  %14127 = vmatprep.subr.bf16.mxu0 %v14682_v51 }
 0x53b   : > { %13410 = vmatprep.mubr.msk.f32.mxu0 %vm14683_vm7, %v16395_v34 }
 0x53d   : > { %13847 = vmatpush3.bf16.msra.mxu1 %v16694_v26  ;;  %14129 = vmatpush3.bf16.msra.mxu0 %v16505_v44 }
 0x53e   : > { %13848 = vmatprep.subr.bf16.mxu1 %v14682_v51  ;;  %14130 = vmatprep.subr.bf16.mxu0 %v14682_v51 }
 0x540   : > { %12955 = vmatmul.mubr.msk.f32.vlgmr.msra.gmra.mrb[14].mxu1 %vm5655_vm5, %v6368_v29  ;;  %v11214_v29 = vld [vmem:[%s17445_s7 + $0xf0] sm:$0xff] }
 0x541   : > { %13850 = vmatpush3.bf16.msra.mxu1 %v16080_v50  ;;  %14132 = vmatpush3.bf16.msra.mxu0 %v16519_v22  ;;  %v6479_v50 = vld [vmem:[#allocation4 + $0x18] sm:$0xf] }
 0x542   : > { %13851 = vmatprep.subr.bf16.mxu1 %v14682_v51  ;;  %14133 = vmatprep.subr.bf16.mxu0 %v14682_v51 }
 0x543   : > { %12973 = vmatprep.mubr.msk.f32.mxu1 %vm14683_vm7, %v16395_v34 }
 0x545   : > { %13853 = vmatpush3.bf16.msra.mxu1 %v16126_v11  ;;  %14135 = vmatpush3.bf16.msra.mxu0 %v16532_v30  ;;  %v8497_v11 = vld [vmem:[#allocation4 + $0x57] sm:$0xf] }
 0x546   : > { %13854 = vmatprep.subr.bf16.mxu1 %v14682_v51  ;;  %14136 = vmatprep.subr.bf16.mxu0 %v14682_v51 }
 0x548   : > { %13411 = vmatmul.mubr.msk.f32.vlgmr.msra.gmra.mrb[32].mxu0 %vm5655_vm5, %v8413_v38  ;;  %v11215_v38 = vld [vmem:[%s17445_s7 + $0xf8] sm:$0xff] }
 0x549   : > { %13856 = vmatpush3.bf16.msra.mxu1 %v16144_v14  ;;  %14138 = vmatpush3.bf16.msra.mxu0 %v16546_v0  ;;  %v6470_v14 = vld [vmem:[#allocation4 + $0x17] sm:$0xf] }
 0x54a   : > { %13857 = vmatprep.subr.bf16.mxu1 %v14682_v51  ;;  %14139 = vmatprep.subr.bf16.mxu0 %v14682_v51 }
 0x54b   : > { %13429 = vmatprep.mubr.msk.f32.mxu0 %vm14683_vm7, %v16395_v34 }
 0x54d   : > { %13859 = vmatpush3.bf16.msra.mxu1 %v16162_v18  ;;  %14141 = vmatpush3.bf16.msra.mxu0 %v16559_v63  ;;  %v8580_v18 = vld [vmem:[#allocation4 + $0x58] sm:$0xf] }
 0x54e   : > { %13860 = vmatprep.subr.bf16.mxu1 %v14682_v51  ;;  %14142 = vmatprep.subr.bf16.mxu0 %v14682_v51 }
 0x550   : > { %12974 = vmatmul.mubr.msk.f32.vlgmr.msra.gmra.mrb[16].mxu1 %vm5655_vm5, %v6479_v50  ;;  %v14002_v50 = vpack.c.bf16 %v11215_v38, %v11214_v29  ;;  %v11253_v29 = vld [vmem:[%s17445_s7 + $0x200] sm:$0xff]  ;;  %v11254_v38 = vld [vmem:[%s17445_s7 + $0x208] sm:$0xff] }
 0x551   : > { %13862 = vmatpush3.bf16.msra.mxu1 %v16298_v9  ;;  %14144 = vmatpush3.bf16.msra.mxu0 %v16573_v32  ;;  %v6634_v9 = vld [vmem:[#allocation4 + $0x19] sm:$0xf] }
 0x552   : > { %13863 = vmatprep.subr.bf16.mxu1 %v14682_v51  ;;  %14145 = vmatprep.subr.bf16.mxu0 %v14682_v51 }
 0x553   : > { %12992 = vmatprep.mubr.msk.f32.mxu1 %vm14683_vm7, %v16395_v34 }
 0x555   : > { %13865 = vmatpush3.bf16.msra.mxu1 %v16309_v15  ;;  %14147 = vmatpush3.bf16.msra.mxu0 %v16586_v28  ;;  %v8663_v15 = vld [vmem:[#allocation4 + $0x59] sm:$0xf] }
 0x556   : > { %13866 = vmatprep.subr.bf16.mxu1 %v14682_v51  ;;  %14148 = vmatprep.subr.bf16.mxu0 %v14682_v51 }
 0x558   : > { %13430 = vmatmul.mubr.msk.f32.vlgmr.msra.gmra.mrb[32].mxu0 %vm5655_vm5, %v8497_v11  ;;  %v11217_v11 = vld [vmem:[%s17445_s7 + $0x100] sm:$0xff] }
 0x559   : > { %13868 = vmatpush3.bf16.msra.mxu1 %v16321_v17  ;;  %14150 = vmatpush3.bf16.msra.mxu0 %v16600_v40  ;;  %v6717_v17 = vld [vmem:[#allocation4 + $0x27] sm:$0xf] }
 0x55a   : > { %13869 = vmatprep.subr.bf16.mxu1 %v14682_v51  ;;  %14151 = vmatprep.subr.bf16.mxu0 %v14682_v51 }
 0x55b   : > { %13448 = vmatprep.mubr.msk.f32.mxu0 %vm14683_vm7, %v16395_v34 }
 0x55d   : > { %13871 = vmatpush3.bf16.msra.mxu1 %v16331_v23  ;;  %14153 = vmatpush3.bf16.msra.mxu0 %v16613_v52  ;;  %v6800_v23 = vld [vmem:[#allocation4 + $0x28] sm:$0xf] }
 0x55e   : > { %13872 = vmatprep.subr.bf16.mxu1 %v14682_v51  ;;  %14154 = vmatprep.subr.bf16.mxu0 %v14682_v51 }
 0x560   : > { %12993 = vmatmul.mubr.msk.f32.vlgmr.msra.gmra.mrb[16].mxu1 %vm5655_vm5, %v6470_v14  ;;  %v11218_v14 = vld [vmem:[%s17445_s7 + $0x108] sm:$0xff] }
 0x561   : > { %13874 = vmatpush3.bf16.msra.mxu1 %v16341_v37  ;;  %14156 = vmatpush3.bf16.msra.mxu0 %v16627_v56  ;;  %v6883_v37 = vld [vmem:[#allocation4 + $0x29] sm:$0xf] }
 0x562   : > { %13875 = vmatprep.subr.bf16.mxu1 %v14682_v51  ;;  %14157 = vmatprep.subr.bf16.mxu0 %v14682_v51 }
 0x563   : > { %13011 = vmatprep.mubr.msk.f32.mxu1 %vm14683_vm7, %v16395_v34 }
 0x565   : > { %13877 = vmatpush3.bf16.msra.mxu1 %v16355_v43  ;;  %14159 = vmatpush3.bf16.msra.mxu0 %v16640_v42  ;;  %v6967_v43 = vld [vmem:[#allocation4 + $0x37] sm:$0xf] }
 0x566   : > { %13878 = vmatprep.subr.bf16.mxu1 %v14682_v51  ;;  %14160 = vmatprep.subr.bf16.mxu0 %v14682_v51 }
 0x568   : > { %13449 = vmatmul.mubr.msk.f32.vlgmr.msra.gmra.mrb[32].mxu0 %vm5655_vm5, %v8580_v18  ;;  %v14005_v18 = vpack.c.bf16 %v11218_v14, %v11217_v11 }
 0x569   : > { %13880 = vmatpush3.bf16.msra.mxu1 %v16365_v25  ;;  %14162 = vmatpush3.bf16.msra.mxu0 %v16654_v5  ;;  %v7050_v25 = vld [vmem:[#allocation4 + $0x38] sm:$0xf] }
 0x56a   : > { %13881 = vmatprep.subr.bf16.mxu1 %v14682_v51  ;;  %14163 = vmatprep.subr.bf16.mxu0 %v14682_v51 }
 0x56b   : > { %13467 = vmatprep.mubr.msk.f32.mxu0 %vm14683_vm7, %v16395_v34 }
 0x56d   : > { %13883 = vmatpush3.bf16.msra.mxu1 %v16375_v35  ;;  %14165 = vmatpush3.bf16.msra.mxu0 %v16667_v21  ;;  %v11189_v35 = vld [vmem:[%s17445_s7 + $0x40] sm:$0xff] }
 0x56e   : > { %13884 = vmatprep.subr.bf16.mxu1 %v14682_v51  ;;  %14166 = vmatprep.subr.bf16.mxu0 %v14682_v51 }
 0x570   : > { %13012 = vmatmul.mubr.msk.f32.vlgmr.msra.gmra.mrb[16].mxu1 %vm5655_vm5, %v6634_v9  ;;  %v11219_v9 = vld [vmem:[%s17445_s7 + $0x110] sm:$0xff] }
 0x571   : > { %13886 = vmatpush3.bf16.msra.mxu1 %v16385_v36  ;;  %14168 = vmatpush3.bf16.msra.mxu0 %v16681_v31  ;;  %v11190_v36 = vld [vmem:[%s17445_s7 + $0x48] sm:$0xff] }
 0x572   : > { %13887 = vmatprep.subr.bf16.mxu1 %v14682_v51  ;;  %14169 = vmatprep.subr.bf16.mxu0 %v14682_v51 }
 0x573   : > { %13030 = vmatprep.mubr.msk.f32.mxu1 %vm14683_vm7, %v16395_v34 }
 0x575   : > { %13889 = vmatpush3.bf16.msra.mxu1 %v16400_v46  ;;  %14171 = vmatpush3.bf16.msra.mxu0 %v16694_v26  ;;  %v13957_v46 = vpack.c.bf16 %v11190_v36, %v11189_v35  ;;  %v16997_v36 = vld [vmem:[%s17447_s9] ss:$0 sm:$0xff] }
 0x576   : > { %13890 = vmatprep.subr.bf16.mxu1 %v14682_v51  ;;  %13602 = vmatprep.subr.mxu0 %v16395_v34 }
 0x578   : > { %13468 = vmatmul.mubr.msk.f32.vlgmr.msra.gmra.mrb[32].mxu0 %vm5655_vm5, %v8663_v15  ;;  %v11220_v15 = vld [vmem:[%s17445_s7 + $0x118] sm:$0xff] }
 0x579   : > { %13892 = vmatpush3.bf16.msra.mxu1 %v16410_v4  ;;  %13604 = vmatprep.mubr.msk.f32.mxu0 %vm14683_vm7, %v16395_v34  ;;  %v11191_v4 = vld [vmem:[%s17445_s7 + $0x50] sm:$0xff] }
 0x57a   : > { %13893 = vmatprep.subr.bf16.mxu1 %v14682_v51 }
 0x57d   : > { %13895 = vmatpush3.bf16.msra.mxu1 %v16420_v39  ;;  %v11192_v39 = vld [vmem:[%s17445_s7 + $0x58] sm:$0xff] }
 0x57e   : > { %13896 = vmatprep.subr.bf16.mxu1 %v14682_v51 }
 0x580   : > { %13031 = vmatmul.mubr.msk.f32.vlgmr.msra.gmra.mrb[16].mxu1 %vm5655_vm5, %v6717_v17  ;;  %v7482_v17 = vld [vmem:[#allocation4 + $0x37] sm:$0xf] }
 0x581   : > { %13898 = vmatpush3.bf16.msra.mxu1 %v16442_v8  ;;  %13049 = vmatprep.mubr.msk.f32.mxu1 %vm14683_vm7, %v16395_v34  ;;  %v7133_v8 = vld [vmem:[#allocation4 + $0x39] sm:$0xf] }
 0x582   : > { %13899 = vmatprep.subr.bf16.mxu1 %v14682_v51 }
 0x585   : > { %13901 = vmatpush3.bf16.msra.mxu1 %v16453_v54  ;;  %v13960_v54 = vpack.c.bf16 %v11192_v39, %v11191_v4 }
 0x586   : > { %13902 = vmatprep.subr.bf16.mxu1 %v14682_v51 }
 0x589   : > { %13904 = vmatpush3.bf16.msra.mxu1 %v16466_v59  ;;  %v11193_v59 = vld [vmem:[%s17445_s7 + $0x60] sm:$0xff] }
 0x58a   : > { %13905 = vmatprep.subr.bf16.mxu1 %v14682_v51 }
 0x58d   : > { %13907 = vmatpush3.bf16.msra.mxu1 %v16478_v19  ;;  %v11194_v19 = vld [vmem:[%s17445_s7 + $0x68] sm:$0xff] }
 0x58e   : > { %13908 = vmatprep.subr.bf16.mxu1 %v14682_v51 }
 0x590   : > { %13050 = vmatmul.mubr.msk.f32.vlgmr.msra.gmra.mrb[16].mxu1 %vm5655_vm5, %v6800_v23  ;;  %v16983_v23 = vld [vmem:[%s17446_s8] ss:$0 sm:$0xff] }
 0x591   : > { %13910 = vmatpush3.bf16.msra.mxu1 %v16492_v33  ;;  %13068 = vmatprep.mubr.msk.f32.mxu1 %vm14683_vm7, %v16395_v34  ;;  %v13963_v33 = vpack.c.bf16 %v11194_v19, %v11193_v59  ;;  %v11224_v59 = vld [vmem:[%s17445_s7 + $0x138] sm:$0xff] }
 0x592   : > { %13911 = vmatprep.subr.bf16.mxu1 %v14682_v51 }
 0x595   : > { %13913 = vmatpush3.bf16.msra.mxu1 %v16505_v44  ;;  %v11195_v44 = vld [vmem:[%s17445_s7 + $0x70] sm:$0xff] }
 0x596   : > { %13914 = vmatprep.subr.bf16.mxu1 %v14682_v51 }
 0x599   : > { %13916 = vmatpush3.bf16.msra.mxu1 %v16519_v22  ;;  %v11196_v22 = vld [vmem:[%s17445_s7 + $0x78] sm:$0xff] }
 0x59a   : > { %13917 = vmatprep.subr.bf16.mxu1 %v14682_v51 }
 0x59d   : > { %13919 = vmatpush3.bf16.msra.mxu1 %v16532_v30  ;;  %v13966_v30 = vpack.c.bf16 %v11196_v22, %v11195_v44  ;;  %v11226_v44 = vld [vmem:[%s17445_s7 + $0x140] sm:$0xff]  ;;  %v11227_v22 = vld [vmem:[%s17445_s7 + $0x148] sm:$0xff] }
 0x59e   : > { %13920 = vmatprep.subr.bf16.mxu1 %v14682_v51 }
 0x5a0   : > { %13069 = vmatmul.mubr.msk.f32.vlgmr.msra.gmra.mrb[16].mxu1 %vm5655_vm5, %v6883_v37  ;;  %v14008_v37 = vpack.c.bf16 %v11220_v15, %v11219_v9  ;;  %v11255_v15 = vld [vmem:[%s17445_s7 + $0x210] sm:$0xff] }
 0x5a1   : > { %13922 = vmatpush3.bf16.msra.mxu1 %v16546_v0  ;;  %13087 = vmatprep.mubr.msk.f32.mxu1 %vm14683_vm7, %v16395_v34  ;;  %v7236_v0 = vld [vmem:[%s17445_s7] sm:$0xff] }
 0x5a2   : > { %13923 = vmatprep.subr.bf16.mxu1 %v14682_v51 }
 0x5a5   : > { %13925 = vmatpush3.bf16.msra.mxu1 %v16559_v63  ;;  %v7237_v63 = vld [vmem:[%s17445_s7 + $0x8] sm:$0xff] }
 0x5a6   : > { %13926 = vmatprep.subr.bf16.mxu1 %v14682_v51  ;;  %v13969_v48 = vpack.c.bf16 %v7237_v63, %v7236_v0  ;;  %v11228_v0 = vld [vmem:[%s17445_s7 + $0x150] sm:$0xff]  ;;  %v11229_v63 = vld [vmem:[%s17445_s7 + $0x158] sm:$0xff] }
 0x5a9   : > { %13928 = vmatpush3.bf16.msra.mxu1 %v16573_v32  ;;  %v7238_v32 = vld [vmem:[%s17445_s7 + $0x10] sm:$0xff] }
 0x5aa   : > { %13929 = vmatprep.subr.bf16.mxu1 %v14682_v51  ;;  %v13972_v62 = vpack.c.bf16 %v7239_v1, %v7238_v32  ;;  %v14020_v32 = vpack.c.bf16 %v11229_v63, %v11228_v0  ;;  %v11230_v1 = vld [vmem:[%s17445_s7 + $0x160] sm:$0xff]  ;;  %v8962_v0 = vld [vmem:[#allocation5 + $0x9] sm:$0x3]  ;;  %v17163_v63 = vld [vmem:[#allocation12 + $0x8] sm:$0xff] }
 0x5ad   : > { %13931 = vmatpush3.bf16.msra.mxu1 %v16586_v28  ;;  %v7240_v28 = vld [vmem:[%s17445_s7 + $0x20] sm:$0xff] }
 0x5ae   : > { %13932 = vmatprep.subr.bf16.mxu1 %v14682_v51  ;;  %v13975_v7 = vpack.c.bf16 %v7241_v6, %v7240_v28  ;;  %v11232_v28 = vld [vmem:[%s17445_s7 + $0x170] sm:$0xff] }
 0x5b0   : > { %13088 = vmatmul.mubr.msk.f32.vlgmr.msra.gmra.mrb[16].mxu1 %vm5655_vm5, %v6967_v43  ;;  %v11221_v43 = vld [vmem:[%s17445_s7 + $0x120] sm:$0xff] }
 0x5b1   : > { %13934 = vmatpush3.bf16.msra.mxu1 %v16600_v40  ;;  %13106 = vmatprep.mubr.msk.f32.mxu1 %vm14683_vm7, %v16395_v34  ;;  %v7242_v40 = vld [vmem:[%s17445_s7 + $0x30] sm:$0xff] }
 0x5b2   : > { %13935 = vmatprep.subr.bf16.mxu1 %v14682_v51  ;;  %v13978_v47 = vpack.c.bf16 %v7243_v41, %v7242_v40  ;;  %v11236_v40 = vld [vmem:[%s17445_s7 + $0x188] sm:$0xff] }
 0x5b5   : > { %13937 = vmatpush3.bf16.msra.mxu1 %v16613_v52  ;;  %v11200_v52 = vld [vmem:[%s17445_s7 + $0x88] sm:$0xff] }
 0x5b6   : > { %13938 = vmatprep.subr.bf16.mxu1 %v14682_v51  ;;  %v13981_v53 = vpack.c.bf16 %v11200_v52, %v11199_v49  ;;  %v11238_v49 = vld [vmem:[%s17445_s7 + $0x198] sm:$0xff]  ;;  %v7648_v52 = vld [vmem:[#allocation4 + $0x39] sm:$0xf] }
 0x5b9   : > { %13940 = vmatpush3.bf16.msra.mxu1 %v16627_v56  ;;  %v11202_v56 = vld [vmem:[%s17445_s7 + $0x98] sm:$0xff] }
 0x5ba   : > { %13941 = vmatprep.subr.bf16.mxu1 %v14682_v51  ;;  %v13984_v12 = vpack.c.bf16 %v11202_v56, %v11201_v55  ;;  %v17054_v55 = vld [vmem:[#allocation5] sm:$0xff]  ;;  %v11239_v56 = vld [vmem:[%s17445_s7 + $0x1a0] sm:$0xff] }
 0x5bd   : > { %13943 = vmatpush3.bf16.msra.mxu1 %v16640_v42  ;;  %v11204_v42 = vld [vmem:[%s17445_s7 + $0xa8] sm:$0xff] }
 0x5be   : > { %13944 = vmatprep.subr.bf16.mxu1 %v14682_v51  ;;  %v13987_v2 = vpack.c.bf16 %v11204_v42, %v11203_v13  ;;  %v11241_v13 = vld [vmem:[%s17445_s7 + $0x1b0] sm:$0xff]  ;;  %v11242_v42 = vld [vmem:[%s17445_s7 + $0x1b8] sm:$0xff] }
 0x5c0   : > { %13107 = vmatmul.mubr.msk.f32.vlgmr.msra.gmra.mrb[16].mxu1 %vm5655_vm5, %v7050_v25  ;;  %v11222_v25 = vld [vmem:[%s17445_s7 + $0x128] sm:$0xff] }
 0x5c1   : > { %13946 = vmatpush3.bf16.msra.mxu1 %v16654_v5  ;;  %13125 = vmatprep.mubr.msk.f32.mxu1 %vm14683_vm7, %v16395_v34  ;;  %v11206_v5 = vld [vmem:[%s17445_s7 + $0xb8] sm:$0xff]  ;;  %v14011_v39 = vpack.c.bf16 %v11222_v25, %v11221_v43 }
 0x5c2   : > { %13947 = vmatprep.subr.bf16.mxu1 %v14682_v51  ;;  %v13990_v45 = vpack.c.bf16 %v11206_v5, %v11205_v10  ;;  %v11244_v10 = vld [vmem:[%s17445_s7 + $0x1c0] sm:$0xff]  ;;  %v11245_v5 = vld [vmem:[%s17445_s7 + $0x1c8] sm:$0xff] }
 0x5c5   : > { %13949 = vmatpush3.bf16.msra.mxu1 %v16667_v21  ;;  %v13993_v21 = vpack.c.bf16 %v11209_v16, %v11208_v57  ;;  %v11246_v57 = vld [vmem:[%s17445_s7 + $0x1d0] sm:$0xff]  ;;  %v11247_v16 = vld [vmem:[%s17445_s7 + $0x1d8] sm:$0xff] }
 0x5c6   : > { %13950 = vmatprep.subr.bf16.mxu1 %v14682_v51  ;;  %v14044_v24 = vpack.c.bf16 %v11247_v16, %v11246_v57  ;;  %v17233_v57 = vld [vmem:[#allocation12 + $0x78] sm:$0xff]  ;;  %v17238_v16 = vld [vmem:[#allocation12 + $0x80] sm:$0xff] }
 0x5c9   : > { %13952 = vmatpush3.bf16.msra.mxu1 %v16681_v31  ;;  %v7399_v31 = vld [vmem:[#allocation4 + $0x29] sm:$0xf] }
 0x5ca   : > { %13953 = vmatprep.subr.bf16.mxu1 %v14682_v51 }
 0x5cd   : > { %13955 = vmatpush3.bf16.msra.mxu1 %v16694_v26  ;;  %v13999_v26 = vpack.c.bf16 %v11213_v61, %v11212_v20  ;;  %v11250_v20 = vld [vmem:[%s17445_s7 + $0x1f0] sm:$0xff]  ;;  %v11251_v61 = vld [vmem:[%s17445_s7 + $0x1f8] sm:$0xff] }
 0x5ce   : > { %13956 = vmatprep.subr.bf16.mxu1 %v14682_v51 }
 0x5d0   : > { %13126 = vmatmul.mubr.msk.f32.vlgmr.msra.gmra.mrb[16].mxu1 %vm5655_vm5, %v7133_v8 }
 0x5d1   : > { %13958 = vmatpush3.bf16.msra.mxu1 %v13957_v46  ;;  %13144 = vmatprep.mubr.msk.f32.mxu1 %vm14683_vm7, %v16395_v34 }
 0x5d2   : > { %13959 = vmatprep.subr.bf16.mxu1 %v14682_v51 }
 0x5d5   : > { %13961 = vmatpush3.bf16.msra.mxu1 %v13960_v54  ;;  %v11223_v54 = vld [vmem:[%s17445_s7 + $0x130] sm:$0xff] }
 0x5d6   : > { %13962 = vmatprep.subr.bf16.mxu1 %v14682_v51 }
 0x5d9   : > { %13964 = vmatpush3.bf16.msra.mxu1 %v13963_v33  ;;  %v14014_v33 = vpack.c.bf16 %v11224_v59, %v11223_v54  ;;  %v7898_v59 = vld [vmem:[#allocation4 + $0x49] sm:$0xf] }
 0x5da   : > { %13965 = vmatprep.subr.bf16.mxu1 %v14682_v51 }
 0x5dd   : > { %13967 = vmatpush3.bf16.msra.mxu1 %v13966_v30  ;;  %v14017_v30 = vpack.c.bf16 %v11227_v22, %v11226_v44  ;;  %v8793_v44 = vld [vmem:[#allocation5 + $0x7] sm:$0x3]  ;;  %v17153_v22 = vld [vmem:[#allocation12 + $0x28] sm:$0x1f] }
 0x5de   : > { %13968 = vmatprep.subr.bf16.mxu1 %v14682_v51 }
 0x5e0   : > { %13145 = vmatmul.mubr.msk.f32.vlgmr.msra.gmra.mrb[18].mxu1 %vm5655_vm5, %v7244_v3  ;;  %v11231_v3 = vld [vmem:[%s17445_s7 + $0x168] sm:$0xff] }
 0x5e1   : > { %13970 = vmatpush3.bf16.msra.mxu1 %v13969_v48  ;;  %13163 = vmatprep.mubr.msk.f32.mxu1 %vm14683_vm7, %v16395_v34  ;;  %v7565_v48 = vld [vmem:[#allocation4 + $0x38] sm:$0xf] }
 0x5e2   : > { %13971 = vmatprep.subr.bf16.mxu1 %v14682_v51 }
 0x5e5   : > { %13973 = vmatpush3.bf16.msra.mxu1 %v13972_v62  ;;  %v14023_v62 = vpack.c.bf16 %v11231_v3, %v11230_v1  ;;  %v17179_v1 = vld [vmem:[#allocation12 + $0x38] sm:$0xff]  ;;  %v17184_v3 = vld [vmem:[#allocation12 + $0x40] sm:$0x1f] }
 0x5e6   : > { %13974 = vmatprep.subr.bf16.mxu1 %v14682_v51 }
 0x5e9   : > { %13976 = vmatpush3.bf16.msra.mxu1 %v13975_v7  ;;  %v11235_v7 = vld [vmem:[%s17445_s7 + $0x180] sm:$0xff] }
 0x5ea   : > { %13977 = vmatprep.subr.bf16.mxu1 %v14682_v51  ;;  %v14029_v41 = vpack.c.bf16 %v11236_v40, %v11235_v7 }
 0x5ed   : > { %13979 = vmatpush3.bf16.msra.mxu1 %v13978_v47  ;;  %v11237_v47 = vld [vmem:[%s17445_s7 + $0x190] sm:$0xff] }
 0x5ee   : > { %13980 = vmatprep.subr.bf16.mxu1 %v14682_v51 }
 0x5f0   : > { %13164 = vmatmul.mubr.msk.f32.vlgmr.msra.gmra.mrb[18].mxu1 %vm5655_vm5, %v7235_v58  ;;  %v11240_v58 = vld [vmem:[%s17445_s7 + $0x1a8] sm:$0xff] }
 0x5f1   : > { %13982 = vmatpush3.bf16.msra.mxu1 %v13981_v53  ;;  %13182 = vmatprep.mubr.msk.f32.mxu1 %vm14683_vm7, %v16395_v34  ;;  %v14032_v53 = vpack.c.bf16 %v11238_v49, %v11237_v47 }
 0x5f2   : > { %13983 = vmatprep.subr.bf16.mxu1 %v14682_v51 }
 0x5f5   : > { %13985 = vmatpush3.bf16.msra.mxu1 %v13984_v12  ;;  %v14035_v12 = vpack.c.bf16 %v11240_v58, %v11239_v56  ;;  %v17194_v58 = vld [vmem:[#allocation12 + $0x48] sm:$0xff] }
 0x5f6   : > { %13986 = vmatprep.subr.bf16.mxu1 %v14682_v51 }
 0x5f9   : > { %13988 = vmatpush3.bf16.msra.mxu1 %v13987_v2  ;;  %v14038_v2 = vpack.c.bf16 %v11242_v42, %v11241_v13  ;;  %v17203_v13 = vld [vmem:[#allocation12 + $0x50] sm:$0xff]  ;;  %v17209_v42 = vld [vmem:[#allocation12 + $0x58] sm:$0x1f] }
 0x5fa   : > { %13989 = vmatprep.subr.bf16.mxu1 %v14682_v51 }
 0x5fd   : > { %13991 = vmatpush3.bf16.msra.mxu1 %v13990_v45  ;;  %v14041_v45 = vpack.c.bf16 %v11245_v5, %v11244_v10  ;;  %v17222_v5 = vld [vmem:[#allocation12 + $0x68] sm:$0xff] }
 0x5fe   : > { %13992 = vmatprep.subr.bf16.mxu1 %v14682_v51 }
 0x600   : > { %13183 = vmatmul.mubr.msk.f32.vlgmr.msra.gmra.mrb[18].mxu1 %vm5655_vm5, %v7399_v31  ;;  %v11249_v31 = vld [vmem:[%s17445_s7 + $0x1e8] sm:$0xff] }
 0x601   : > { %13994 = vmatpush3.bf16.msra.mxu1 %v13993_v21  ;;  %13201 = vmatprep.mubr.msk.f32.mxu1 %vm14683_vm7, %v16395_v34  ;;  %v7732_v21 = vld [vmem:[#allocation4 + $0x47] sm:$0xf] }
 0x602   : > { %13995 = vmatprep.subr.bf16.mxu1 %v14682_v51 }
 0x605   : > { %13997 = vmatpush3.bf16.msra.mxu1 %v13996_v60  ;;  %v14047_v60 = vpack.c.bf16 %v11249_v31, %v11248_v27 }
 0x606   : > { %13998 = vmatprep.subr.bf16.mxu1 %v14682_v51 }
 0x609   : > { %14000 = vmatpush3.bf16.msra.mxu1 %v13999_v26  ;;  %v14050_v26 = vpack.c.bf16 %v11251_v61, %v11250_v20 }
 0x60a   : > { %14001 = vmatprep.subr.bf16.mxu1 %v14682_v51 }
 0x60d   : > { %14003 = vmatpush3.bf16.msra.mxu1 %v14002_v50 }
 0x60e   : > { %14004 = vmatprep.subr.bf16.mxu1 %v14682_v51 }
 0x610   : > { %13202 = vmatmul.mubr.msk.f32.vlgmr.msra.gmra.mrb[18].mxu1 %vm5655_vm5, %v7482_v17  ;;  %v11256_v17 = vld [vmem:[%s17445_s7 + $0x218] sm:$0xff] }
 0x611   : > { %14006 = vmatpush3.bf16.msra.mxu1 %v14005_v18  ;;  %13220 = vmatprep.mubr.msk.f32.mxu1 %vm14683_vm7, %v16395_v34  ;;  %v14053_v18 = vpack.c.bf16 %v11254_v38, %v11253_v29  ;;  %v14056_v25 = vpack.c.bf16 %v11256_v17, %v11255_v15  ;;  %v9579_v29 = vld [vmem:[%s17449_s11] sm:$0xff] }
 0x612   : > { %14007 = vmatprep.subr.bf16.mxu1 %v14682_v51 }
 0x613   : > { %v6447_v35 = vpop.f32.mrb[14].mxu1 }
 0x614   : > { %v6459_v46 = vmul.f32 %v16983_v23, %v6447_v35  ;;  %v12956_v4 = vpop.f32.mrb[15].mxu1  ;;  %v11257_v35 = vld [vmem:[%s17445_s7 + $0x220] sm:$0xff] }
 0x615   : > { %14009 = vmatpush3.bf16.msra.mxu1 %v14008_v37  ;;  %v7815_v37 = vld [vmem:[#allocation4 + $0x48] sm:$0xf] }
 0x616   : > { %v6467_v8 = vadd.f32 %v16997_v36, %v6459_v46  ;;  %14010 = vmatprep.subr.bf16.mxu1 %v14682_v51  ;;  %v11258_v46 = vld [vmem:[%s17445_s7 + $0x228] sm:$0xff] }
 0x617   : > { %v14059_v4 = vpack.c.bf16 %v11258_v46, %v11257_v35 }
 0x618   : > { %v6468_v19 = vmax.f32 %v6467_v8, 0.0  ;;  %v11260_v8 = vld [vmem:[%s17445_s7 + $0x238] sm:$0xff] }
 0x619   : > { %14012 = vmatpush3.bf16.msra.mxu1 %v14011_v39  ;;  %v11259_v39 = vld [vmem:[%s17445_s7 + $0x230] sm:$0xff] }
 0x61a   : > { %6469 = vst [vmem:[#allocation8] sm:$0xf] %v6468_v19  ;;  %14013 = vmatprep.subr.bf16.mxu1 %v14682_v51  ;;  %v14062_v54 = vpack.c.bf16 %v11260_v8, %v11259_v39  ;;  %v8797_v19 = vld [vmem:[#allocation5 + $0x8] sm:$0x3] }
 0x61d   : > { %14015 = vmatpush3.bf16.msra.mxu1 %v14014_v33  ;;  %v17141_v33 = vld [vmem:[#allocation12 + $0x18] sm:$0xff] }
 0x61e   : > { %14016 = vmatprep.subr.bf16.mxu1 %v14682_v51 }
 0x620   : > { %13221 = vmatmul.mubr.msk.f32.vlgmr.msra.gmra.mrb[18].mxu1 %vm5655_vm5, %v7565_v48  ;;  %v17169_v48 = vld [vmem:[#allocation12 + $0x10] sm:$0x1f] }
 0x621   : > { %14018 = vmatpush3.bf16.msra.mxu1 %v14017_v30  ;;  %13239 = vmatprep.mubr.msk.f32.mxu1 %vm14683_vm7, %v16395_v34  ;;  %v11233_v34 = vld [vmem:[%s17445_s7 + $0x178] sm:$0xff]  ;;  %v17158_v30 = vld [vmem:[#allocation12] sm:$0xff]  ;;  %v8765_v40 = vld [vmem:[#allocation8] sm:$0xf] }
 0x622   : > { %14019 = vmatprep.subr.bf16.mxu1 %v14682_v51  ;;  %v14026_v6 = vpack.c.bf16 %v11233_v34, %v11232_v28 }
 0x625   : > { %14021 = vmatpush3.bf16.msra.mxu1 %v14020_v32  ;;  %v17174_v32 = vld [vmem:[#allocation12 + $0x30] sm:$0xff] }
 0x626   : > { %14022 = vmatprep.subr.bf16.mxu1 %v14682_v51 }
 0x629   : > { %14024 = vmatpush3.bf16.msra.mxu1 %v14023_v62 }
 0x62a   : > { %14025 = vmatprep.subr.bf16.mxu1 %v14682_v51 }
 0x62d   : > { %14027 = vmatpush3.bf16.msra.mxu1 %v14026_v6 }
 0x62e   : > { %14028 = vmatprep.subr.bf16.mxu1 %v14682_v51 }
 0x630   : > { %13240 = vmatmul.mubr.msk.f32.vlgmr.msra.gmra.mrb[18].mxu1 %vm5655_vm5, %v7648_v52 }
 0x631   : > { %14030 = vmatpush3.bf16.msra.mxu1 %v14029_v41  ;;  %13258 = vmatprep.mubr.msk.f32.mxu1 %vm14683_vm7, %v17054_v55 }
 0x632   : > { %14031 = vmatprep.subr.bf16.mxu1 %v14682_v51 }
 0x635   : > { %14033 = vmatpush3.bf16.msra.mxu1 %v14032_v53 }
 0x636   : > { %14034 = vmatprep.subr.bf16.mxu1 %v14682_v51 }
 0x639   : > { %14036 = vmatpush3.bf16.msra.mxu1 %v14035_v12 }
 0x63a   : > { %14037 = vmatprep.subr.bf16.mxu1 %v14682_v51 }
 0x63d   : > { %14039 = vmatpush3.bf16.msra.mxu1 %v14038_v2  ;;  %v17214_v2 = vld [vmem:[#allocation12 + $0x60] sm:$0xff] }
 0x63e   : > { %14040 = vmatprep.subr.bf16.mxu1 %v14682_v51 }
 0x640   : > { %13259 = vmatmul.mubr.msk.f32.vlgmr.msra.gmra.mrb[18].mxu1 %vm5655_vm5, %v7732_v21  ;;  %v17243_v21 = vld [vmem:[#allocation12 + $0x88] sm:$0x1f] }
 0x641   : > { %14042 = vmatpush3.bf16.msra.mxu1 %v14041_v45  ;;  %13277 = vmatprep.mubr.msk.f32.mxu1 %vm14683_vm7, %v17054_v55  ;;  %v17228_v45 = vld [vmem:[#allocation12 + $0x70] sm:$0x1f] }
 0x642   : > { %14043 = vmatprep.subr.bf16.mxu1 %v14682_v51 }
 0x645   : > { %14045 = vmatpush3.bf16.msra.mxu1 %v14044_v24 }
 0x646   : > { %14046 = vmatprep.subr.bf16.mxu1 %v14682_v51 }
 0x649   : > { %14048 = vmatpush3.bf16.msra.mxu1 %v14047_v60 }
 0x64a   : > { %14049 = vmatprep.subr.bf16.mxu1 %v14682_v51 }
 0x64b   : > { %v8741_v50 = vpop.f32.mrb[32].mxu0 }
 0x64c   : > { %v8753_v11 = vmul.f32 %v16983_v23, %v8741_v50  ;;  %v13469_v14 = vpop.f32.mrb[33].mxu0 }
 0x64d   : > { %14051 = vmatpush3.bf16.msra.mxu1 %v14050_v26 }
 0x64e   : > { %v8761_v9 = vadd.f32 %v16997_v36, %v8753_v11  ;;  %14052 = vmatprep.subr.bf16.mxu1 %v14682_v51  ;;  %v14684_v11 = vmov 0  }
 0x64f   : > { %14600 = vset.pattern.permute.xlu0 %v14684_v11  ;;  %14601 = vset.pattern.permute.xlu1 %v14684_v11 }
 0x650   : > { %v8762_v43 = vmax.f32 %v8761_v9, 0.0  ;;  %13278 = vmatmul.mubr.msk.f32.vlgmr.msra.gmra.mrb[18].mxu1 %vm5655_vm5, %v7815_v37  ;;  %9584 = vperm.xlu0 %14600, %v9579_v29  }
 0x651   : > { %14054 = vmatpush3.bf16.msra.mxu1 %v14053_v18  ;;  %13296 = vmatprep.mubr.msk.f32.mxu1 %vm14683_vm7, %v17054_v55  ;;  %v9580_v18 = vld [vmem:[%s17449_s11 + $0x8] sm:$0xff] }
 0x652   : > { %8764 = vst [vmem:[#allocation8 + $0xc] sm:$0xf] %v8762_v43  ;;  %14055 = vmatprep.subr.bf16.mxu1 %v14682_v51 }
 0x654   : > { %9589 = vperm.xlu0 %14600, %v9580_v18  }
 0x655   : > { %14057 = vmatpush3.bf16.msra.mxu1 %v14056_v25 }
 0x656   : > { %14058 = vmatprep.subr.bf16.mxu1 %v14682_v51 }
 0x659   : > { %14060 = vmatpush3.bf16.msra.mxu1 %v14059_v4  ;;  %v8768_v61 = vld [vmem:[#allocation8 + $0xc] sm:$0xf] }
 0x65a   : > { %14061 = vmatprep.subr.bf16.mxu1 %v14682_v51  ;;  %v17147_v51 = vld [vmem:[#allocation12 + $0x20] sm:$0xff] }
 0x65d   : > { %14063 = vmatpush3.bf16.msra.mxu1 %v14062_v54 }
 0x65e   : > { %13470 = vmatprep.subr.mxu1 %v17054_v55 }
 0x660   : > { %13297 = vmatmul.mubr.msk.f32.vlgmr.msra.gmra.mrb[18].mxu1 %vm5655_vm5, %v7898_v59 }
 0x661   : > { %13472 = vmatprep.mubr.msk.f32.mxu1 %vm14683_vm7, %v17054_v55 }
 0x666   : > { %13471 = vmatpush3.xpose.msra.mxu1 %v8797_v19 }
 0x667   : > { %13481 = vmatprep.subr.mxu1 %v17054_v55 }
 0x669   : > { %13473 = vmatmul.mubr.f32.vlgmr.msra.gmra.mrb[20].mxu1 %v17141_v33 }
 0x66a   : > { %13475 = vmatprep.mubr.msk.f32.mxu1 %vm14683_vm7, %v17054_v55  ;;  %13482 = vmatpush3.xpose.msra.mxu1 %v8793_v44 }
 0x66b   : > { %13492 = vmatprep.subr.mxu1 %v17054_v55 }
 0x66d   : > { %13476 = vmatmul.mubr.f32.gmra.mrb[22].mxu1 %v17147_v51 }
 0x66e   : > { %13478 = vmatprep.mubr.msk.f32.mxu1 %vm14683_vm7, %v17054_v55 }
 0x671   : > { %13479 = vmatmul.mubr.f32.gmra.mrb[24].mxu1 %v17153_v22 }
 0x672   : > { %13483 = vmatprep.mubr.msk.f32.mxu1 %vm14683_vm7, %v17054_v55 }
 0x675   : > { %13484 = vmatmul.mubr.f32.vlgmr.msra.gmra.mrb[26].mxu1 %v17158_v30 }
 0x676   : > { %13486 = vmatprep.mubr.msk.f32.mxu1 %vm14683_vm7, %v17054_v55  ;;  %13493 = vmatpush3.xpose.msra.mxu1 %v8962_v0 }
 0x677   : > { %13503 = vmatprep.subr.mxu1 %v17054_v55 }
 0x679   : > { %13487 = vmatmul.mubr.f32.gmra.mrb[28].mxu1 %v17163_v63 }
 0x67a   : > { %13489 = vmatprep.mubr.msk.f32.mxu1 %vm14683_vm7, %v17054_v55 }
 0x67d   : > { %13490 = vmatmul.mubr.f32.gmra.mrb[30].mxu1 %v17169_v48 }
 0x67e   : > { %13494 = vmatprep.mubr.msk.f32.mxu1 %vm14683_vm7, %v17054_v55 }
 0x681   : > { %13495 = vmatmul.mubr.f32.vlgmr.msra.gmra.mrb[32].mxu1 %v17174_v32 }
 0x682   : > { %13497 = vmatprep.mubr.msk.f32.mxu1 %vm14683_vm7, %v17054_v55 }
 0x685   : > { %13498 = vmatmul.mubr.f32.gmra.mrb[34].mxu1 %v17179_v1 }
 0x686   : > { %13500 = vmatprep.mubr.msk.f32.mxu1 %vm14683_vm7, %v17054_v55 }
 0x689   : > { %13501 = vmatmul.mubr.f32.gmra.mrb[36].mxu1 %v17184_v3 }
 0x68a   : > { %13505 = vmatprep.mubr.msk.f32.mxu1 %vm14683_vm7, %v17054_v55 }
 0x6a3   : > { %v7211_v62 = vpop.f32.mrb[16].mxu1 }
 0x6a4   : > { %v7223_v28 = vmul.f32 %v16983_v23, %v7211_v62  ;;  %v13127_v34 = vpop.f32.mrb[17].mxu1 }
 0x6a5   : > { %v17261_v34 = vld [vmem:[#allocation12 + $0x90] sm:$0xff] }
 0x6a6   : > { %v7231_v6 = vadd.f32 %v16997_v36, %v7223_v28 }
 0x6a8   : > { %v7232_v7 = vmax.f32 %v7231_v6, 0.0 }
 0x6aa   : > { %7234 = vst [vmem:[#allocation8 + $0x4] sm:$0xf] %v7232_v7 }
 0x6b1   : > { %v8767_v41 = vld [vmem:[#allocation8 + $0x4] sm:$0xf] }
 0x6b2   : > { %v8769_v47 = vmax.f32 %v8765_v40, %v8767_v41 }
 0x6b4   : > { %8771 = vst [vmem:[#allocation9] sm:$0xf] %v8769_v47 }
 0x6bb   : > { %v8773_v49 = vld [vmem:[#allocation9] ss:$2 sm:$0x3]  ;;  %v8777_v52 = vld [vmem:[#allocation9 + $0x1] ss:$2 sm:$0x3] }
 0x6bc   : > { %v8780_v53 = vmax.f32 %v8773_v49, %v8777_v52  ;;  %v17272_v52 = vld [vmem:[#allocation12 + $0x98] sm:$0xff] }
 0x6be   : > { %8791 = vst [vmem:[#allocation5 + $0x18] sm:$0x3] %v8780_v53 }
 0x6c5   : > { %v17191_v56 = vld [vmem:[#allocation5 + $0x17] sm:$0x3]  ;;  %v17217_v10 = vld [vmem:[#allocation5 + $0x19] sm:$0x3] }
 0x6c6   : > { %13504 = vmatpush3.xpose.msra.mxu1 %v17191_v56  ;;  %v17198_v12 = vld [vmem:[#allocation5 + $0x18] sm:$0x3] }
 0x6c7   : > { %13514 = vmatprep.subr.mxu1 %v17054_v55 }
 0x6c9   : > { %13506 = vmatmul.mubr.f32.vlgmr.msra.gmra.mrb[38].mxu1 %v17194_v58 }
 0x6ca   : > { %13515 = vmatpush3.xpose.msra.mxu1 %v17198_v12  ;;  %13508 = vmatprep.mubr.msk.f32.mxu1 %vm14683_vm7, %v17054_v55 }
 0x6cb   : > { %13525 = vmatprep.subr.mxu1 %v17054_v55 }
 0x6cd   : > { %13509 = vmatmul.mubr.f32.gmra.mrb[40].mxu1 %v17203_v13 }
 0x6ce   : > { %13511 = vmatprep.mubr.msk.f32.mxu1 %vm14683_vm7, %v17054_v55 }
 0x6d1   : > { %13512 = vmatmul.mubr.f32.gmra.mrb[42].mxu1 %v17209_v42 }
 0x6d2   : > { %13516 = vmatprep.mubr.msk.f32.mxu1 %vm14683_vm7, %v17054_v55 }
 0x6d5   : > { %13517 = vmatmul.mubr.f32.vlgmr.msra.gmra.mrb[44].mxu1 %v17214_v2 }
 0x6d6   : > { %13526 = vmatpush3.xpose.msra.mxu1 %v17217_v10  ;;  %13519 = vmatprep.mubr.msk.f32.mxu1 %vm14683_vm7, %v17054_v55 }
 0x6d7   : > { %13536 = vmatprep.subr.mxu1 %v17054_v55 }
 0x6d9   : > { %13520 = vmatmul.mubr.f32.gmra.mrb[46].mxu1 %v17222_v5 }
 0x6da   : > { %13522 = vmatprep.mubr.msk.f32.mxu1 %vm14683_vm7, %v17054_v55 }
 0x6dd   : > { %13523 = vmatmul.mubr.f32.gmra.mrb[48].mxu1 %v17228_v45 }
 0x6de   : > { %13527 = vmatprep.mubr.msk.f32.mxu1 %vm14683_vm7, %v17054_v55 }
 0x6e1   : > { %13528 = vmatmul.mubr.f32.vlgmr.msra.gmra.mrb[50].mxu1 %v17233_v57 }
 0x6e2   : > { %13530 = vmatprep.mubr.msk.f32.mxu1 %vm14683_vm7, %v17054_v55 }
 0x6e5   : > { %13531 = vmatmul.mubr.f32.gmra.mrb[52].mxu1 %v17238_v16 }
 0x6e6   : > { %13533 = vmatprep.mubr.msk.f32.mxu1 %vm14683_vm7, %v17054_v55 }
 0x6e9   : > { %13534 = vmatmul.mubr.f32.gmra.mrb[54].mxu1 %v17243_v21 }
 0x6ea   : > { %13538 = vmatprep.mubr.msk.f32.mxu1 %vm14683_vm7, %v17054_v55 }
 0x733   : > { %v7976_v24 = vpop.f32.mrb[18].mxu1 }
 0x734   : > { %v7988_v27 = vmul.f32 %v16983_v23, %v7976_v24  ;;  %v13298_v31 = vpop.f32.mrb[19].mxu1  ;;  %v9581_v23 = vld [vmem:[%s17449_s11 + $0x10] sm:$0x1f] }
 0x735   : > { %9594 = vperm.xlu1 %14601, %v9581_v23   ;;  %v9405_v31 = vld [vmem:[#allocation12 + $0xa8] sm:$0xff] }
 0x736   : > { %v7996_v60 = vadd.f32 %v16997_v36, %v7988_v27  ;;  %v17286_v27 = vld [vmem:[#allocation12 + $0xa0] sm:$0x1f] }
 0x738   : > { %v7997_v20 = vmax.f32 %v7996_v60, 0.0  ;;  %v9406_v60 = vld [vmem:[#allocation12 + $0xb0] sm:$0xff] }
 0x73a   : > { %7999 = vst [vmem:[#allocation8 + $0x8] sm:$0xf] %v7997_v20  ;;  %v10262_v20 = vld [vmem:[#allocation5 + $0x39] sm:$0x3] }
 0x73c   : > { %v8868_v38 = vpop.f32.mrb[20].mxu1 }
 0x73d   : > { %v13474_v14 = vpop.f32.mrb[21].mxu1 }
 0x740   : > { %v8873_v36 = vpop.f32.mrb[22].mxu1 }
 0x741   : > { %v8766_v26 = vld [vmem:[#allocation8 + $0x8] sm:$0xf]  ;;  %v13477_v9 = vpop.f32.mrb[23].mxu1 }
 0x742   : > { %v8770_v50 = vmax.f32 %v8766_v26, %v8768_v61 }
 0x744   : > { %8772 = vst [vmem:[#allocation9 + $0x4] sm:$0xf] %v8770_v50  ;;  %v8878_v15 = vpop.f32.mrb[24].mxu1 }
 0x745   : > { %v13480_v17 = vpop.f32.mrb[25].mxu1 }
 0x748   : > { %v8948_v37 = vpop.f32.mrb[26].mxu1 }
 0x749   : > { %v8949_v43 = vadd.f32 %v8948_v37, %v8868_v38  ;;  %v13485_v25 = vpop.f32.mrb[27].mxu1  ;;  %v11340_v37 = vld.sshfl [vmem:[%s17450_s12 + $0x4] sm:$0x33 pattern:$0x76325410] }
 0x74a   : > { %v17404_v25 = vld.sshfl [vmem:[%s17450_s12] sm:$0x33 pattern:$0x76325410] }
 0x74b   : > { %v8775_v35 = vld [vmem:[#allocation9 + $0x4] ss:$2 sm:$0x3]  ;;  %v8779_v46 = vld [vmem:[#allocation9 + $0x5] ss:$2 sm:$0x3] }
 0x74c   : > { %v8781_v4 = vmax.f32 %v8775_v35, %v8779_v46  ;;  %v8953_v39 = vpop.f32.mrb[28].mxu1  ;;  %v10466_v35 = vcombine.high %v17404_v25, %v17404_v25 }
 0x74d   : > { %v8954_v8 = vadd.f32 %v8953_v39, %v8873_v36  ;;  %v13488_v54 = vpop.f32.mrb[29].mxu1 }
 0x74e   : > { %8792 = vst [vmem:[#allocation5 + $0x28] sm:$0x3] %v8781_v4 }
 0x750   : > { %v8958_v59 = vpop.f32.mrb[30].mxu1 }
 0x751   : > { %v8959_v19 = vadd.f32 %v8958_v59, %v8878_v15  ;;  %v13491_v44 = vpop.f32.mrb[31].mxu1 }
 0x754   : > { %v9033_v0 = vpop.f32.mrb[32].mxu1 }
 0x755   : > { %v9315_v62 = vld [vmem:[#allocation5 + $0x27] sm:$0x3]  ;;  %v17259_v28 = vadd.f32 %v9033_v0, %v8949_v43  ;;  %v13496_v6 = vpop.f32.mrb[33].mxu1  ;;  %v9491_v41 = vld [vmem:[#allocation5 + $0x29] sm:$0x3]  ;;  %v10359_v43 = vcombine.high %v11340_v37, %v11340_v37 }
 0x756   : > { %13537 = vmatpush3.xpose.msra.mxu1 %v9315_v62  ;;  %13603 = vmatpush3.xpose.msra.mxu0 %v9315_v62  ;;  %v17266_v40 = vld [vmem:[#allocation5 + $0x28] sm:$0x3] }
 0x757   : > { %13547 = vmatprep.subr.mxu1 %v17054_v55  ;;  %13624 = vmatprep.subr.mxu0 %v17054_v55 }
 0x758   : > { %v9038_v7 = vpop.f32.mrb[34].mxu1 }
 0x759   : > { %13539 = vmatmul.mubr.f32.vlgmr.msra.gmra.mrb[56].mxu1 %v17261_v34  ;;  %13605 = vmatmul.mubr.f32.vlgmr.msra.gmra.mrb[34].mxu0 %v17194_v58  ;;  %v17269_v47 = vadd.f32 %v9038_v7, %v8954_v8  ;;  %v13499_v49 = vpop.f32.mrb[35].mxu1 }
 0x75a   : > { %13548 = vmatpush3.xpose.msra.mxu1 %v17266_v40  ;;  %13625 = vmatpush3.xpose.msra.mxu0 %v9491_v41 }
 0x75b   : > { %13541 = vmatprep.mubr.msk.f32.mxu1 %vm14683_vm7, %v17054_v55  ;;  %13558 = vmatprep.subr.mxu1 %v17054_v55 }
 0x75c   : > { %13607 = vmatprep.mubr.msk.f32.mxu0 %vm14683_vm7, %v17054_v55  ;;  %13646 = vmatprep.subr.mxu0 %v17054_v55  ;;  %v9043_v53 = vpop.f32.mrb[36].mxu1 }
 0x75d   : > { %13542 = vmatmul.mubr.f32.gmra.mrb[58].mxu1 %v17272_v52  ;;  %13608 = vmatmul.mubr.f32.gmra.mrb[36].mxu0 %v17203_v13  ;;  %v17282_v58 = vadd.f32 %v9043_v53, %v8959_v19  ;;  %v13502_v24 = vpop.f32.mrb[37].mxu1  ;;  %v10178_v13 = vld [vmem:[#allocation5 + $0x38] sm:$0x3] }
 0x75e   : > { %13544 = vmatprep.mubr.msk.f32.mxu1 %vm14683_vm7, %v17054_v55  ;;  %13610 = vmatprep.mubr.msk.f32.mxu0 %vm14683_vm7, %v17054_v55 }
 0x761   : > { %13545 = vmatmul.mubr.f32.gmra.mrb[60].mxu1 %v17286_v27  ;;  %13611 = vmatmul.mubr.f32.gmra.mrb[38].mxu0 %v17209_v42  ;;  %v9407_v42 = vld [vmem:[#allocation12 + $0xb8] sm:$0x1f] }
 0x762   : > { %13549 = vmatprep.mubr.msk.f32.mxu1 %vm14683_vm7, %v17054_v55  ;;  %13626 = vmatprep.mubr.msk.f32.mxu0 %vm14683_vm7, %v17054_v55 }
 0x765   : > { %13550 = vmatmul.mubr.f32.vlgmr.msra.gmra.mrb[62].mxu1 %v9405_v31  ;;  %13627 = vmatmul.mubr.f32.vlgmr.msra.gmra.mrb[40].mxu0 %v17233_v57  ;;  %v17310_v57 = vld [vmem:[#allocation12 + $0xc0] sm:$0xff] }
 0x766   : > { %13559 = vmatpush3.xpose.msra.mxu1 %v9491_v41  ;;  %13552 = vmatprep.mubr.msk.f32.mxu1 %vm14683_vm7, %v17054_v55 }
 0x767   : > { %13569 = vmatprep.subr.mxu1 %v17054_v55  ;;  %13629 = vmatprep.mubr.msk.f32.mxu0 %vm14683_vm7, %v17054_v55 }
 0x768   : > { %13647 = vmatpush3.xpose.msra.mxu0 %v10178_v13 }
 0x769   : > { %13553 = vmatmul.mubr.f32.gmra.mrb[64].mxu1 %v9406_v60  ;;  %13630 = vmatmul.mubr.f32.gmra.mrb[42].mxu0 %v17238_v16  ;;  %v17318_v16 = vld [vmem:[#allocation12 + $0xc8] sm:$0xff] }
 0x76a   : > { %13555 = vmatprep.mubr.msk.f32.mxu1 %vm14683_vm7, %v17054_v55  ;;  %13632 = vmatprep.mubr.msk.f32.mxu0 %vm14683_vm7, %v17054_v55 }
 0x76b   : > { %11341 = vmatprep.subr.msk.mxu0 %vm10370_vm9, %v10359_v43 }
 0x76d   : > { %13556 = vmatmul.mubr.f32.gmra.mrb[66].mxu1 %v9407_v42  ;;  %13633 = vmatmul.mubr.f32.gmra.mrb[44].mxu0 %v17243_v21  ;;  %v17326_v21 = vld [vmem:[#allocation12 + $0xd0] sm:$0x1f] }
 0x76e   : > { %13560 = vmatprep.mubr.msk.f32.mxu1 %vm14683_vm7, %v17054_v55  ;;  %13648 = vmatprep.mubr.msk.f32.mxu0 %vm14683_vm7, %v17054_v55 }
 0x771   : > { %13561 = vmatmul.mubr.f32.vlgmr.msra.gmra.mrb[68].mxu1 %v17310_v57  ;;  %13649 = vmatmul.mubr.f32.vlgmr.msra.gmra.mrb[46].mxu0 %v9405_v31 }
 0x772   : > { %13570 = vmatpush3.xpose.msra.mxu1 %v17198_v12  ;;  %13563 = vmatprep.mubr.msk.f32.mxu1 %vm14683_vm7, %v17054_v55 }
 0x773   : > { %13580 = vmatprep.subr.mxu1 %v17054_v55  ;;  %13651 = vmatprep.mubr.msk.f32.mxu0 %vm14683_vm7, %v17054_v55 }
 0x774   : > { %11342 = vmatpush1.msk.msra.mxu0 %vm10370_vm9, %v11340_v37 }
 0x775   : > { %13564 = vmatmul.mubr.f32.gmra.mrb[70].mxu1 %v17318_v16  ;;  %13652 = vmatmul.mubr.f32.gmra.mrb[48].mxu0 %v9406_v60 }
 0x776   : > { %13566 = vmatprep.mubr.msk.f32.mxu1 %vm14683_vm7, %v17054_v55  ;;  %13654 = vmatprep.mubr.msk.f32.mxu0 %vm14683_vm7, %v17054_v55 }
 0x777   : > { %11347 = vmatprep.subr.msk.mxu0 %vm10370_vm9, %v10466_v35 }
 0x779   : > { %13567 = vmatmul.mubr.f32.gmra.mrb[72].mxu1 %v17326_v21  ;;  %13655 = vmatmul.mubr.f32.gmra.mrb[50].mxu0 %v9407_v42 }
 0x77a   : > { %13571 = vmatprep.mubr.msk.f32.mxu1 %vm14683_vm7, %v17054_v55  ;;  %10439 = vmatprep.mubr.f32.mxu0 %v17054_v55 }
 0x77d   : > { %13572 = vmatmul.mubr.f32.vlgmr.msra.gmra.mrb[74].mxu1 %v17141_v33 }
 0x77e   : > { %13581 = vmatpush3.xpose.msra.mxu1 %v17191_v56  ;;  %13574 = vmatprep.mubr.msk.f32.mxu1 %vm14683_vm7, %v17054_v55 }
 0x77f   : > { %13591 = vmatprep.subr.mxu1 %v17054_v55 }
 0x781   : > { %13575 = vmatmul.mubr.f32.gmra.mrb[76].mxu1 %v17147_v51 }
 0x782   : > { %13577 = vmatprep.mubr.msk.f32.mxu1 %vm14683_vm7, %v17054_v55 }
 0x785   : > { %13578 = vmatmul.mubr.f32.gmra.mrb[78].mxu1 %v17153_v22 }
 0x786   : > { %13582 = vmatprep.mubr.msk.f32.mxu1 %vm14683_vm7, %v17054_v55 }
 0x789   : > { %13583 = vmatmul.mubr.f32.vlgmr.msra.gmra.mrb[80].mxu1 %v17158_v30  ;;  %v10094_v30 = vld [vmem:[#allocation5 + $0x37] sm:$0x3] }
 0x78a   : > { %13592 = vmatpush3.xpose.msra.mxu1 %v17217_v10  ;;  %13585 = vmatprep.mubr.msk.f32.mxu1 %vm14683_vm7, %v17054_v55 }
 0x78b   : > { %13613 = vmatprep.subr.mxu1 %v17054_v55 }
 0x78d   : > { %13586 = vmatmul.mubr.f32.gmra.mrb[82].mxu1 %v17163_v63 }
 0x78e   : > { %13588 = vmatprep.mubr.msk.f32.mxu1 %vm14683_vm7, %v17054_v55 }
 0x791   : > { %13589 = vmatmul.mubr.f32.gmra.mrb[84].mxu1 %v17169_v48 }
 0x792   : > { %13593 = vmatprep.mubr.msk.f32.mxu1 %vm14683_vm7, %v17054_v55 }
 0x795   : > { %13594 = vmatmul.mubr.f32.vlgmr.msra.gmra.mrb[86].mxu1 %v17174_v32 }
 0x796   : > { %13614 = vmatpush3.xpose.msra.mxu1 %v17266_v40  ;;  %13596 = vmatprep.mubr.msk.f32.mxu1 %vm14683_vm7, %v17054_v55 }
 0x797   : > { %13635 = vmatprep.subr.mxu1 %v17054_v55 }
 0x799   : > { %13597 = vmatmul.mubr.f32.gmra.mrb[88].mxu1 %v17179_v1 }
 0x79a   : > { %13599 = vmatprep.mubr.msk.f32.mxu1 %vm14683_vm7, %v17054_v55 }
 0x79c   : > { %v9121_v33 = vpop.f32.mrb[38].mxu1 }
 0x79d   : > { %13600 = vmatmul.mubr.f32.gmra.mrb[90].mxu1 %v17184_v3  ;;  %v9135_v51 = vadd.f32 %v9121_v33, %v17259_v28  ;;  %v13507_v22 = vpop.f32.mrb[39].mxu1 }
 0x79e   : > { %13615 = vmatprep.mubr.msk.f32.mxu1 %vm14683_vm7, %v17054_v55 }
 0x7a0   : > { %v9126_v63 = vpop.f32.mrb[40].mxu1 }
 0x7a1   : > { %13616 = vmatmul.mubr.f32.vlgmr.msra.gmra.mrb[92].mxu1 %v17214_v2  ;;  %v9136_v48 = vadd.f32 %v9126_v63, %v17269_v47  ;;  %v13510_v32 = vpop.f32.mrb[41].mxu1 }
 0x7a2   : > { %13618 = vmatprep.mubr.msk.f32.mxu1 %vm14683_vm7, %v17054_v55  ;;  %13636 = vmatpush3.xpose.msra.mxu1 %v10094_v30 }
 0x7a3   : > { %13657 = vmatprep.subr.mxu1 %v17054_v55 }
 0x7a4   : > { %v9131_v1 = vpop.f32.mrb[42].mxu1 }
 0x7a5   : > { %13619 = vmatmul.mubr.f32.gmra.mrb[94].mxu1 %v17222_v5  ;;  %v9137_v3 = vadd.f32 %v9131_v1, %v17282_v58  ;;  %v13513_v56 = vpop.f32.mrb[43].mxu1 }
 0x7a6   : > { %13621 = vmatprep.mubr.msk.f32.mxu1 %vm14683_vm7, %v17054_v55 }
 0x7a8   : > { %v9209_v12 = vpop.f32.mrb[44].mxu1 }
 0x7a9   : > { %13622 = vmatmul.mubr.f32.gmra.mrb[96].mxu1 %v17228_v45  ;;  %v9223_v2 = vadd.f32 %v9209_v12, %v9135_v51  ;;  %v13518_v10 = vpop.f32.mrb[45].mxu1 }
 0x7aa   : > { %13637 = vmatprep.mubr.msk.f32.mxu1 %vm14683_vm7, %v17054_v55 }
 0x7ac   : > { %v9214_v61 = vpop.f32.mrb[46].mxu1 }
 0x7ad   : > { %13638 = vmatmul.mubr.f32.vlgmr.msra.gmra.mrb[98].mxu1 %v17261_v34  ;;  %v9224_v26 = vadd.f32 %v9214_v61, %v9136_v48  ;;  %v13521_v5 = vpop.f32.mrb[47].mxu1 }
 0x7ae   : > { %13640 = vmatprep.mubr.msk.f32.mxu1 %vm14683_vm7, %v17054_v55  ;;  %13658 = vmatpush3.xpose.msra.mxu1 %v10262_v20 }
 0x7b0   : > { %v9219_v29 = vpop.f32.mrb[48].mxu1 }
 0x7b1   : > { %13641 = vmatmul.mubr.f32.gmra.mrb[100].mxu1 %v17272_v52  ;;  %v9225_v38 = vadd.f32 %v9219_v29, %v9137_v3  ;;  %v13524_v45 = vpop.f32.mrb[49].mxu1 }
 0x7b2   : > { %13643 = vmatprep.mubr.msk.f32.mxu1 %vm14683_vm7, %v17054_v55 }
 0x7b4   : > { %v9297_v50 = vpop.f32.mrb[50].mxu1 }
 0x7b5   : > { %13644 = vmatmul.mubr.f32.gmra.mrb[102].mxu1 %v17286_v27  ;;  %v9311_v11 = vadd.f32 %v9297_v50, %v9223_v2  ;;  %v13529_v23 = vpop.f32.mrb[51].mxu1 }
 0x7b6   : > { %13659 = vmatprep.mubr.msk.f32.mxu1 %vm14683_vm7, %v17054_v55 }
 0x7b8   : > { %v9302_v14 = vpop.f32.mrb[52].mxu1 }
 0x7b9   : > { %13660 = vmatmul.mubr.f32.vlgmr.msra.gmra.mrb[104].mxu1 %v17310_v57  ;;  %v9312_v36 = vadd.f32 %v9302_v14, %v9224_v26  ;;  %v13532_v18 = vpop.f32.mrb[53].mxu1 }
 0x7ba   : > { %13662 = vmatprep.mubr.msk.f32.mxu1 %vm14683_vm7, %v17054_v55 }
 0x7bc   : > { %v9307_v9 = vpop.f32.mrb[54].mxu1 }
 0x7bd   : > { %13663 = vmatmul.mubr.f32.gmra.mrb[106].mxu1 %v17318_v16  ;;  %v9313_v15 = vadd.f32 %v9307_v9, %v9225_v38  ;;  %v13535_v17 = vpop.f32.mrb[55].mxu1 }
 0x7be   : > { %13665 = vmatprep.mubr.msk.f32.mxu1 %vm14683_vm7, %v17054_v55 }
 0x7c1   : > { %13666 = vmatmul.mubr.f32.gmra.mrb[108].mxu1 %v17326_v21 }
 0x82c   : > { %v9386_v46 = vpop.f32.mrb[56].mxu1  ;;  %v9910_v4 = vpop.f32.mrb[34].mxu0 }
 0x82d   : > { %v9400_v39 = vadd.f32 %v9386_v46, %v9311_v11  ;;  %v13540_v8 = vpop.f32.mrb[57].mxu1  ;;  %v13606_v54 = vpop.f32.mrb[35].mxu0 }
 0x830   : > { %v9391_v59 = vpop.f32.mrb[58].mxu1  ;;  %v9915_v19 = vpop.f32.mrb[36].mxu0 }
 0x831   : > { %v9401_v44 = vadd.f32 %v9391_v59, %v9312_v36  ;;  %v13543_v0 = vpop.f32.mrb[59].mxu1  ;;  %v13609_v62 = vpop.f32.mrb[37].mxu0 }
 0x834   : > { %v9396_v28 = vpop.f32.mrb[60].mxu1  ;;  %v9920_v34 = vpop.f32.mrb[38].mxu0 }
 0x835   : > { %v9402_v6 = vadd.f32 %v9396_v28, %v9313_v15  ;;  %v13546_v7 = vpop.f32.mrb[61].mxu1  ;;  %v13612_v40 = vpop.f32.mrb[39].mxu0 }
 0x838   : > { %v9474_v41 = vpop.f32.mrb[62].mxu1  ;;  %v10076_v47 = vpop.f32.mrb[40].mxu0 }
 0x839   : > { %v9488_v49 = vadd.f32 %v9474_v41, %v9400_v39  ;;  %v13551_v52 = vpop.f32.mrb[63].mxu1  ;;  %v13628_v53 = vpop.f32.mrb[41].mxu0 }
 0x83c   : > { %v9479_v58 = vpop.f32.mrb[64].mxu1  ;;  %v10081_v24 = vpop.f32.mrb[42].mxu0 }
 0x83d   : > { %v9489_v27 = vadd.f32 %v9479_v58, %v9401_v44  ;;  %v13554_v31 = vpop.f32.mrb[65].mxu1  ;;  %v13631_v13 = vpop.f32.mrb[43].mxu0 }
 0x840   : > { %v9484_v60 = vpop.f32.mrb[66].mxu1  ;;  %v10086_v42 = vpop.f32.mrb[44].mxu0 }
 0x841   : > { %v9490_v57 = vadd.f32 %v9484_v60, %v9402_v6  ;;  %v13557_v16 = vpop.f32.mrb[67].mxu1  ;;  %v13634_v21 = vpop.f32.mrb[45].mxu0 }
 0x844   : > { %v9562_v33 = vpop.f32.mrb[68].mxu1  ;;  %v10245_v51 = vpop.f32.mrb[46].mxu0 }
 0x845   : > { %v17409_v22 = vadd.f32 %v9562_v33, %v9488_v49  ;;  %v13562_v30 = vpop.f32.mrb[69].mxu1  ;;  %v13650_v63 = vpop.f32.mrb[47].mxu0 }
 0x848   : > { %v9567_v48 = vpop.f32.mrb[70].mxu1  ;;  %v10250_v32 = vpop.f32.mrb[48].mxu0 }
 0x849   : > { %v17411_v1 = vadd.f32 %v9567_v48, %v9489_v27  ;;  %v13565_v3 = vpop.f32.mrb[71].mxu1  ;;  %v13653_v56 = vpop.f32.mrb[49].mxu0 }
 0x84c   : > { %v9572_v12 = vpop.f32.mrb[72].mxu1  ;;  %v10255_v2 = vpop.f32.mrb[50].mxu0 }
 0x84d   : > { %v17413_v10 = vadd.f32 %v9572_v12, %v9490_v57  ;;  %v13568_v20 = vpop.f32.mrb[73].mxu1  ;;  %v13656_v61 = vpop.f32.mrb[51].mxu0 }
 0x84e   : > { %v9585_v12 = vpop.permute.xlu0 %9584 }
 0x850   : > { %v9667_v26 = vpop.f32.mrb[74].mxu1 }
 0x851   : > { %v13573_v5 = vpop.f32.mrb[75].mxu1 }
 0x854   : > { %v9672_v29 = vpop.f32.mrb[76].mxu1 }
 0x855   : > { %v13576_v38 = vpop.f32.mrb[77].mxu1 }
 0x858   : > { %v9677_v45 = vpop.f32.mrb[78].mxu1 }
 0x859   : > { %v13579_v50 = vpop.f32.mrb[79].mxu1 }
 0x85a   : > { %v9595_v50 = vpop.permute.xlu1 %9594 }
 0x85c   : > { %v9747_v11 = vpop.f32.mrb[80].mxu1 }
 0x85d   : > { %v9748_v23 = vadd.f32 %v9747_v11, %v9667_v26  ;;  %v13584_v14 = vpop.f32.mrb[81].mxu1 }
 0x85e   : > { %v9599_v14 = vadd.f32 %v9595_v50, %v17413_v10 }
 0x860   : > { %v9752_v36 = vpop.f32.mrb[82].mxu1 }
 0x861   : > { %v9753_v18 = vadd.f32 %v9752_v36, %v9672_v29  ;;  %v13587_v9 = vpop.f32.mrb[83].mxu1 }
 0x864   : > { %v9757_v15 = vpop.f32.mrb[84].mxu1 }
 0x865   : > { %v9758_v17 = vadd.f32 %v9757_v15, %v9677_v45  ;;  %v13590_v37 = vpop.f32.mrb[85].mxu1 }
 0x868   : > { %v9827_v43 = vpop.f32.mrb[86].mxu1 }
 0x869   : > { %v9841_v35 = vadd.f32 %v9827_v43, %v9748_v23  ;;  %v13595_v46 = vpop.f32.mrb[87].mxu1  ;;  %v9597_v23 = vadd.f32 %v9585_v12, %v17409_v22 }
 0x86b   : > { %v9924_v39 = vadd.f32 %v9910_v4, %v9841_v35 }
 0x86c   : > { %v9832_v8 = vpop.f32.mrb[88].mxu1 }
 0x86d   : > { %v9842_v54 = vadd.f32 %v9832_v8, %v9753_v18  ;;  %v13598_v59 = vpop.f32.mrb[89].mxu1 }
 0x86f   : > { %v9925_v44 = vadd.f32 %v9915_v19, %v9842_v54 }
 0x870   : > { %v9837_v0 = vpop.f32.mrb[90].mxu1 }
 0x871   : > { %v9843_v62 = vadd.f32 %v9837_v0, %v9758_v17  ;;  %v13601_v28 = vpop.f32.mrb[91].mxu1 }
 0x873   : > { %v9926_v6 = vadd.f32 %v9920_v34, %v9843_v62 }
 0x874   : > { %v9993_v7 = vpop.f32.mrb[92].mxu1 }
 0x875   : > { %v10007_v40 = vadd.f32 %v9993_v7, %v9924_v39  ;;  %v13617_v41 = vpop.f32.mrb[93].mxu1 }
 0x877   : > { %v10090_v49 = vadd.f32 %v10076_v47, %v10007_v40 }
 0x878   : > { %v9998_v52 = vpop.f32.mrb[94].mxu1 }
 0x879   : > { %v10008_v53 = vadd.f32 %v9998_v52, %v9925_v44  ;;  %v13620_v58 = vpop.f32.mrb[95].mxu1 }
 0x87b   : > { %v10091_v27 = vadd.f32 %v10081_v24, %v10008_v53 }
 0x87c   : > { %v10003_v31 = vpop.f32.mrb[96].mxu1 }
 0x87d   : > { %v10009_v13 = vadd.f32 %v10003_v31, %v9926_v6  ;;  %v13623_v60 = vpop.f32.mrb[97].mxu1 }
 0x87f   : > { %v10092_v4 = vadd.f32 %v10086_v42, %v10009_v13 }
 0x880   : > { %v10161_v57 = vpop.f32.mrb[98].mxu1 }
 0x881   : > { %v10175_v16 = vadd.f32 %v10161_v57, %v10090_v49  ;;  %v13639_v21 = vpop.f32.mrb[99].mxu1 }
 0x883   : > { %v10259_v19 = vadd.f32 %v10245_v51, %v10175_v16  ;;  %v9590_v51 = vpop.permute.xlu0 %9589 }
 0x884   : > { %v10166_v33 = vpop.f32.mrb[100].mxu1 }
 0x885   : > { %v10176_v30 = vadd.f32 %v10166_v33, %v10091_v27  ;;  %v13642_v63 = vpop.f32.mrb[101].mxu1 }
 0x887   : > { %v10260_v34 = vadd.f32 %v10250_v32, %v10176_v30 }
 0x888   : > { %v10171_v48 = vpop.f32.mrb[102].mxu1 }
 0x889   : > { %v10177_v3 = vadd.f32 %v10171_v48, %v10092_v4  ;;  %v13645_v56 = vpop.f32.mrb[103].mxu1 }
 0x88b   : > { %v10261_v47 = vadd.f32 %v10255_v2, %v10177_v3 }
 0x88c   : > { %v10329_v20 = vpop.f32.mrb[104].mxu1 }
 0x88d   : > { %v10343_v61 = vadd.f32 %v10329_v20, %v10259_v19  ;;  %v13661_v24 = vpop.f32.mrb[105].mxu1 }
 0x88f   : > { %v10346_v26 = vadd.f32 %v10343_v61, %v9585_v12 }
 0x890   : > { %v10334_v5 = vpop.f32.mrb[106].mxu1 }
 0x891   : > { %v10344_v42 = vadd.f32 %v10334_v5, %v10260_v34  ;;  %11343 = vmatmul.mubr.msk.f32.vlgmr.msra.gmra.mrb[52].mxu0 %vm10360_vm10, %v10346_v26  ;;  %v13664_v29 = vpop.f32.mrb[107].mxu1 }
 0x892   : > { %10445 = vmatprep.mubr.f32.mxu0 %v17054_v55  ;;  %11348 = vmatpush1.msk.msra.mxu0 %vm10370_vm9, %v17404_v25  ;;  %v9598_v25 = vadd.f32 %v9590_v51, %v17411_v1 }
 0x893   : > { %v10347_v32 = vadd.f32 %v10344_v42, %v9590_v51 }
 0x894   : > { %v10339_v38 = vpop.f32.mrb[108].mxu1 }
 0x895   : > { %v10345_v2 = vadd.f32 %v10339_v38, %v10261_v47  ;;  %11344 = vmatmul.mubr.msk.f32.gmra.mrb[54].mxu0 %vm10360_vm10, %v10347_v32  ;;  %v13667_v45 = vpop.f32.mrb[109].mxu1 }
 0x896   : > { %10451 = vmatprep.mubr.f32.mxu0 %v17054_v55 }
 0x897   : > { %v10348_v11 = vadd.f32 %v10345_v2, %v9595_v50 }
 0x899   : > { %11345 = vmatmul.mubr.msk.f32.gmra.mrb[56].mxu0 %vm10360_vm10, %v10348_v11 }
 0x89a   : > { %10544 = vmatprep.mubr.f32.mxu0 %v17054_v55 }
 0x89d   : > { %11349 = vmatmul.mubr.msk.f32.vlgmr.msra.gmra.mrb[52].mxu0 %vm10360_vm10, %v9597_v23 }
 0x89e   : > { %10550 = vmatprep.mubr.f32.mxu0 %v17054_v55 }
 0x8a1   : > { %11350 = vmatmul.mubr.msk.f32.gmra.mrb[54].mxu0 %vm10360_vm10, %v9598_v25 }
 0x8a2   : > { %10556 = vmatprep.mubr.f32.mxu0 %v17054_v55 }
 0x8a5   : > { %11351 = vmatmul.mubr.msk.f32.gmra.mrb[56].mxu0 %vm10360_vm10, %v9599_v14 }
 0x970   : > { %v10546_v22 = vpop.f32.mrb[52].mxu0 }
 0x971   : > { %10563 = vst [vmem:[%s470_s17] sm:$0xff] %v10546_v22  ;;  %v10548_v36 = vpop.f32.mrb[53].mxu0 }
 0x972   : > { %10564 = vst [vmem:[%s470_s17 + $0x8] sm:$0xff] %v10548_v36 }
 0x974   : > { %v10552_v18 = vpop.f32.mrb[54].mxu0 }
 0x975   : > { %10565 = vst [vmem:[%s470_s17 + $0x10] sm:$0xff] %v10552_v18  ;;  %v10554_v1 = vpop.f32.mrb[55].mxu0 }
 0x976   : > { %10566 = vst [vmem:[%s470_s17 + $0x18] sm:$0xff] %v10554_v1 }
 0x978   : > { %v10558_v9 = vpop.f32.mrb[56].mxu0 }
 0x979   : > { %10567 = vst [vmem:[%s470_s17 + $0x20] sm:$0x1f] %v10558_v9  ;;  %v10560_v55 = vpop.f32.mrb[57].mxu0 }
 0x97a   : > { %10568 = vst [vmem:[%s470_s17 + $0x28] sm:$0x1f] %v10560_v55 }
 0x97b PF: > { %s25_s25 = sadd.s32 1, %s14675_s25  }
 0x97c   : > { %p22_p5 = scmp.ge.s32.totalorder %s25_s25, 4  }
 0x97e   :  { %24 = sbr.rel (!%p22_p5) target bundleno = 2 (0x2), region = 184 }
 0x985   :  { %10590 = vsyncpa [#allocation11], 1 }
 0x986   :  { %10592 = vsyncpa [#allocation11 + $0x1], 1 }
 0x987   :  { %10593 = vsyncpa [#allocation13], 1 }

</bundles_post_ra>
